<compile_context>
chip_gen: v7x
topology: tpu7x:2x2x1
jax: 0.10.0
libtpu: 0.0.40
codegen_flags: <defaults>
</compile_context>

<pallas_src>
import functools

import jax
import jax.numpy as jnp
from jax.experimental import pallas as pl
from jax.experimental.pallas import tpu as pltpu

# ------------------------------ configuration -------------------------------
INPUT_FRAMES = 3
TARGET_FRAMES = 2

ENC_CIN = 3                       # 2 stacked frames + height
ENC_D_C = [4, 8, 8]
ENC_D_K = [3, 4, 4]
ENC_D_S = [1, 2, 2]
ENC_D_P = [1, 1, 1]
ENC_GRU_C = [8, 8, 8]
ENC_GRU_K = [3, 3, 3]
ENC_GRU_S = [1, 1, 1]
ENC_GRU_P = [1, 1, 1]

FC_U_CIN = [8, 8, 8]              # = ENC_GRU_C reversed
FC_U_COUT = [8, 8, 4]             # last one = link_size for the flow
FC_U_K = [4, 4, 3]
FC_U_S = [2, 2, 1]
FC_U_P = [1, 1, 1]


def _round_up(x, m):
    return ((x + m - 1) // m) * m


def _num_tensorcores():
    # v7x has 2 TensorCores per chip; v5e/v6e have 1.  Used only to decide
    # whether a >1 grid (megacore sharding) is worth the extra pipeline steps.
    try:
        kind = jax.devices()[0].device_kind.lower()
    except Exception:
        return 1
    return 2 if ("v7" in kind or "tpu7" in kind) else 1


_NUM_TC = _num_tensorcores()


# ------------------------------ Pallas kernel -------------------------------

def _mm_bias_act_kernel(x_ref, w_ref, b_ref, o_ref, *, act):
    # bf16 operands, f32 accumulate, f32 epilogue (bias + activation)
    acc = jnp.dot(x_ref[...], w_ref[...], preferred_element_type=jnp.float32)
    acc = acc + b_ref[...]
    if act == "relu":
        acc = jnp.maximum(acc, 0.0)
    elif act == "sigmoid":
        acc = jax.nn.sigmoid(acc)
    elif act == "tanh":
        acc = jnp.tanh(acc)
    # act == "none" -> linear
    o_ref[...] = acc.astype(o_ref.dtype)


def matmul_bias_act(xp, wp, bp, act, out_dtype=jnp.float32):
    """(M,Kp) bf16 patches (already K-padded) @ (Kp,Np) bf16 weights + bias.

    Tiling: single block on 1-TC chips (M<=1024 here), TM=256 parallel grid
    only on 2-TC chips so the largest layers can shard across TensorCores.
    """
    M, Kp = xp.shape
    Np = wp.shape[1]
    if M <= 256 or (_NUM_TC == 1 and M <= 1024):
        tm = _round_up(max(M, 16), 16)
        grid_m = 1
    else:
        tm = 256
        grid_m = pl.cdiv(M, tm)
    Mp = grid_m * tm
    if Mp != M:
        xp = jnp.pad(xp, ((0, Mp - M), (0, 0)))
    out = pl.pallas_call(
        functools.partial(_mm_bias_act_kernel, act=act),
        out_shape=jax.ShapeDtypeStruct((Mp, Np), out_dtype),
        grid=(grid_m,),
        in_specs=[
            pl.BlockSpec((tm, Kp), lambda i: (i, 0)),
            pl.BlockSpec((Kp, Np), lambda i: (0, 0)),
            pl.BlockSpec((1, Np), lambda i: (0, 0)),
        ],
        out_specs=pl.BlockSpec((tm, Np), lambda i: (i, 0)),
        compiler_params=pltpu.CompilerParams(dimension_semantics=("parallel",)),
    )(xp, wp, bp)
    return out[:M] if Mp != M else out


# ----------------------------- conv / deconv glue ----------------------------
# Feature maps are NHWC end-to-end (lane axis = channels / output channels).

def im2col_nhwc(x, k, stride, pad, kp):
    """im2col with the bf16 cast and the K zero-padding (to kp) fused into the
    concatenate that materializes the patches."""
    B, H, W, C = x.shape
    xb = x.astype(jnp.bfloat16)
    if pad > 0:
        xb = jnp.pad(xb, ((0, 0), (pad, pad), (pad, pad), (0, 0)))
    Ho = (H + 2 * pad - k) // stride + 1
    Wo = (W + 2 * pad - k) // stride + 1
    cols = []
    for di in range(k):
        for dj in range(k):
            cols.append(xb[:, di:di + stride * Ho:stride, dj:dj + stride * Wo:stride, :])
    K = k * k * C
    if kp > K:
        cols.append(jnp.zeros((B, Ho, Wo, kp - K), jnp.bfloat16))
    patches = jnp.concatenate(cols, axis=-1)             # (B, Ho, Wo, Kp), (ki,kj,cin)
    return patches.reshape(B * Ho * Wo, kp), Ho, Wo


def conv2d_nhwc(x, wp, bp, *, cout, k, stride, pad, act, out_dtype=jnp.float32):
    B = x.shape[0]
    patches, Ho, Wo = im2col_nhwc(x, k, stride, pad, wp.shape[0])
    y = matmul_bias_act(patches, wp, bp, act, out_dtype)  # (M, Np)
    return y[:, :cout].reshape(B, Ho, Wo, cout)


def deconv2d_nhwc(x, wp, bp, *, cout, k, stride, pad, act, out_dtype=jnp.float32):
    # ConvTranspose2d(stride, pad) == interior-dilate by stride + edge-pad
    # (k-1-pad) + conv(stride=1, pad=0) with pre-flipped/transposed weights.
    # lax.pad with interior padding avoids the zeros+scatter dilation.
    ep = k - 1 - pad
    xb = x.astype(jnp.bfloat16)
    zero = jnp.zeros((), dtype=xb.dtype)
    xd = jax.lax.pad(xb, zero,
                     ((0, 0, 0), (ep, ep, stride - 1), (ep, ep, stride - 1), (0, 0, 0)))
    return conv2d_nhwc(xd, wp, bp, cout=cout, k=k, stride=1, pad=0, act=act,
                       out_dtype=out_dtype)


# ---------------------------------- cells ------------------------------------

def convgru_cell(gp, x, h, *, gc, k, stride, pad):
    """ConvGRU with fused gate matmul:
      columns [0:gc]    -> update gate z (pre-sigmoid)
      columns [gc:2gc]  -> reset  gate r (pre-sigmoid)
      columns [2gc:3gc] -> candidate's x-contribution (+bias), h-rows zeroed
    followed by one small matmul over im2col(r*h) for the candidate's h part."""
    stacked = jnp.concatenate([x.astype(jnp.bfloat16), h.astype(jnp.bfloat16)], axis=-1)
    zrx = conv2d_nhwc(stacked, gp["zrx_w"], gp["zrx_b"], cout=3 * gc,
                      k=k, stride=stride, pad=pad, act="none", out_dtype=jnp.float32)
    z = jax.nn.sigmoid(zrx[..., :gc])
    r = jax.nn.sigmoid(zrx[..., gc:2 * gc])
    cand_x = zrx[..., 2 * gc:3 * gc]
    rh = (r * h).astype(jnp.bfloat16)
    cand_h = conv2d_nhwc(rh, gp["cand_h_w"], gp["cand_h_b"], cout=gc,
                         k=k, stride=stride, pad=pad, act="none", out_dtype=jnp.float32)
    cand = jnp.tanh(cand_x + cand_h)
    # TODO(synk): GRU combine convention (h*(1-z)+cand*z) assumed from canonical ConvGRU.
    return h * (1.0 - z) + cand * z


def encoder_forward(enc, x, hidden):
    inp = x
    new_hidden = []
    for i in range(3):
        dp = enc["down"][i]
        inp = conv2d_nhwc(inp, dp["w"], dp["b"], cout=ENC_D_C[i], k=ENC_D_K[i],
                          stride=ENC_D_S[i], pad=ENC_D_P[i], act="relu",
                          out_dtype=jnp.bfloat16)
        h = hidden[i]
        if h is None:
            B, Hh, Ww, _ = inp.shape
            h = jnp.zeros((B, Hh, Ww, ENC_GRU_C[i]), jnp.float32)
        h = convgru_cell(enc["gru"][i], inp, h, gc=ENC_GRU_C[i], k=ENC_GRU_K[i],
                         stride=ENC_GRU_S[i], pad=ENC_GRU_P[i])
        new_hidden.append(h)            # hidden state kept f32
        inp = h
    return new_hidden


# -------------------------- flow-based grid sampling --------------------------

def grid_sample_project(map_nhwc, flow_nhwc, w_out, b_out):
    """F.grid_sample(mode='bilinear', padding_mode='border', align_corners=False)
    applied per flow-direction, expressed as a one-hot (HW x HW) matvec with
    the final 1x1 output conv (2->1 channels) and its ReLU folded in."""
    B, H, W, C = map_nhwc.shape
    assert C == 1
    link = flow_nhwc.shape[-1]
    half = link // 2
    HW = H * W
    flow = flow_nhwc.astype(jnp.float32)

    yy, xx = jnp.meshgrid(jnp.arange(H, dtype=jnp.float32),
                          jnp.arange(W, dtype=jnp.float32), indexing="ij")
    y_norm = yy * 2.0 / H - 1.0
    x_norm = xx * 2.0 / W - 1.0
    u = flow[..., :half]                                  # (B,H,W,half)
    v = flow[..., half:]
    gx = x_norm[None, :, :, None] + u
    gy = y_norm[None, :, :, None] + v

    ix = jnp.clip(((gx + 1.0) * W - 1.0) / 2.0, 0.0, W - 1.0)
    iy = jnp.clip(((gy + 1.0) * H - 1.0) / 2.0, 0.0, H - 1.0)
    x0 = jnp.floor(ix)
    y0 = jnp.floor(iy)
    x1 = jnp.minimum(x0 + 1.0, W - 1.0)
    y1 = jnp.minimum(y0 + 1.0, H - 1.0)
    wx1 = ix - x0
    wx0 = 1.0 - wx1
    wy1 = iy - y0
    wy0 = 1.0 - wy1

    base = jnp.arange(HW, dtype=jnp.int32)
    w_dir = w_out.reshape(half)                           # per-direction 1x1-conv weight

    def corner(yi, xi, wgt):
        idx = (yi.astype(jnp.int32) * W + xi.astype(jnp.int32)).reshape(B, HW, half)
        wv = wgt.reshape(B, HW, half) * w_dir[None, None, :]
        oh = (idx[..., None] == base).astype(jnp.float32) * wv[..., None]  # (B,HW,half,HW)
        return oh.sum(axis=2)                                              # (B,HW,HW)

    Wc = (corner(y0, x0, wy0 * wx0) + corner(y0, x1, wy0 * wx1)
          + corner(y1, x0, wy1 * wx0) + corner(y1, x1, wy1 * wx1))

    map_flat = map_nhwc.reshape(B, HW).astype(jnp.float32)
    out = jnp.einsum("bpq,bq->bp", Wc, map_flat) + b_out
    out = jnp.maximum(out, 0.0)                           # folded output-layer ReLU
    return out.reshape(B, H, W, 1)


def forecaster_forward(fc, hidden_rev, map_):
    out = None
    for i in range(3):
        if i == 0:
            stack_input = hidden_rev[0]
        else:
            stack_input = jnp.concatenate(
                [hidden_rev[i].astype(jnp.bfloat16), out], axis=-1)
        lp = fc["layers"][i]
        out_dtype = jnp.bfloat16 if i < 2 else jnp.float32
        out = deconv2d_nhwc(stack_input, lp["w"], lp["b"], cout=FC_U_COUT[i],
                            k=FC_U_K[i], stride=FC_U_S[i], pad=FC_U_P[i], act="relu",
                            out_dtype=out_dtype)
    flow = out                                            # (B,16,16,4) f32
    return grid_sample_project(map_, flow, fc["out_w"], fc["out_b"])


# ---------------------------------- model ------------------------------------

def model_forward(params, x, height):
    # x: (B, frames, 1, H, W)   height: (B, H, W)
    x_nhwc = jnp.transpose(x, (0, 1, 3, 4, 2))            # (B, frames, H, W, 1)
    height_e = height[..., None]                          # (B, H, W, 1)
    hidden = [None, None, None]
    forecasts = []
    for i in range(INPUT_FRAMES - 1):
        inp = jnp.concatenate([x_nhwc[:, i], x_nhwc[:, i + 1], height_e], axis=-1)
        hidden = encoder_forward(params["encoder"], inp, hidden)
    out = forecaster_forward(params["forecaster"], hidden[::-1], x_nhwc[:, -1])
    forecasts.append(out)                                 # (B,H,W,1)
    for i in range(TARGET_FRAMES - 1):
        if i == 0:
            inp = jnp.concatenate([x_nhwc[:, -1], forecasts[i], height_e], axis=-1)
        else:
            inp = jnp.concatenate([forecasts[i - 1], forecasts[i], height_e], axis=-1)
        hidden = encoder_forward(params["encoder"], inp, hidden)
        out = forecaster_forward(params["forecaster"], hidden[::-1], forecasts[i])
        forecasts.append(out)
    forecasts = jnp.concatenate([jnp.transpose(f, (0, 3, 1, 2)) for f in forecasts], axis=1)
    # target_RAD=True -> no dBZ->rain conversion (reference branch references an undefined var).
    return forecasts                                      # (B, target_frames, H, W)


# ------------------------------ parameter prep --------------------------------
# Weights are reshaped to matmul form ((ki,kj,cin) x cout), cast to bf16 and
# padded to (Kp, Np) ONCE here; biases padded to (1, Np) f32 once.

def _prep_conv_weight(w_conv, b):
    # w_conv: (Cout, Cin, k, k) PyTorch Conv2d layout
    Cout, Cin, k, _ = w_conv.shape
    K = k * k * Cin
    Kp = _round_up(K, 128)
    Np = _round_up(Cout, 128)
    wm = jnp.transpose(w_conv, (2, 3, 1, 0)).reshape(K, Cout)
    wp = jnp.zeros((Kp, Np), jnp.bfloat16).at[:K, :Cout].set(wm.astype(jnp.bfloat16))
    bp = jnp.zeros((1, Np), jnp.float32).at[0, :Cout].set(b.astype(jnp.float32))
    return wp, bp


def _prep_deconv_weight(wt, b):
    # wt: (Cin, Cout, k, k) PyTorch ConvTranspose2d layout -> equivalent conv weight
    w_conv = jnp.flip(wt, axis=(2, 3)).transpose(1, 0, 2, 3)
    return _prep_conv_weight(w_conv, b)


def _prep_gru_weights(wz, wr, wo, bz, br, bo, *, cin_x, gc):
    # wz/wr/wo: (gc, cin_x+gc, k, k) over concat([x, h]) / concat([x, r*h])
    k = wz.shape[-1]
    stacked_c = cin_x + gc
    wo_x = wo[:, :cin_x]                                  # candidate, x channels
    wo_h = wo[:, cin_x:]                                  # candidate, h channels
    wo_x_full = jnp.zeros((gc, stacked_c, k, k), jnp.float32).at[:, :cin_x].set(wo_x)
    w_fused = jnp.concatenate([wz, wr, wo_x_full], axis=0)   # (3gc, stacked_c, k, k)
    b_fused = jnp.concatenate([bz, br, bo], axis=0)
    zrx_w, zrx_b = _prep_conv_weight(w_fused, b_fused)
    cand_h_w, cand_h_b = _prep_conv_weight(wo_h, jnp.zeros((gc,), jnp.float32))
    return {"zrx_w": zrx_w, "zrx_b": zrx_b, "cand_h_w": cand_h_w, "cand_h_b": cand_h_b}


def init_params(key):
    keys = iter(jax.random.split(key, 64))

    def conv_w(cout, cin, k):
        return jax.random.normal(next(keys), (cout, cin, k, k), jnp.float32) * 0.1

    down, gru = [], []
    in_c = ENC_CIN
    for i in range(3):
        w, b = _prep_conv_weight(conv_w(ENC_D_C[i], in_c, ENC_D_K[i]),
                                 jnp.zeros((ENC_D_C[i],), jnp.float32))
        down.append({"w": w, "b": b})
        gc = ENC_GRU_C[i]
        cin_x = ENC_D_C[i]
        stacked_c = cin_x + gc
        wz = conv_w(gc, stacked_c, ENC_GRU_K[i])
        wr = conv_w(gc, stacked_c, ENC_GRU_K[i])
        wo = conv_w(gc, stacked_c, ENC_GRU_K[i])
        zeros = jnp.zeros((gc,), jnp.float32)
        gru.append(_prep_gru_weights(wz, wr, wo, zeros, zeros, zeros, cin_x=cin_x, gc=gc))
        in_c = gc

    layers = []
    for i in range(3):
        cin = FC_U_CIN[i] if i == 0 else FC_U_CIN[i] + FC_U_COUT[i - 1]
        wt = jax.random.normal(next(keys), (cin, FC_U_COUT[i], FC_U_K[i], FC_U_K[i]),
                               jnp.float32) * 0.1
        w, b = _prep_deconv_weight(wt, jnp.zeros((FC_U_COUT[i],), jnp.float32))
        layers.append({"w": w, "b": b})

    # Final 1x1 conv (cin = link_size/2 = 2, cout = 1) kept as a raw vector; it
    # is folded into the grid_sample matvec (no Pallas launch for a matvec).
    out_w = jax.random.normal(next(keys), (1, FC_U_COUT[-1] // 2, 1, 1), jnp.float32) * 0.1
    out_w = out_w.reshape(FC_U_COUT[-1] // 2)
    out_b = jnp.float32(2.0 / FC_U_COUT[-1])

    return {"encoder": {"down": down, "gru": gru},
            "forecaster": {"layers": layers, "out_w": out_w, "out_b": out_b}}


# ----------------------------------- main -------------------------------------

if __name__ == "__main__":
    key = jax.random.PRNGKey(0)
    kp, kx, kh = jax.random.split(key, 3)
    params = init_params(kp)

    B, H, W = 2, 16, 16
    x = jax.random.normal(kx, (B, INPUT_FRAMES, 1, H, W), jnp.float32)
    height = jax.random.normal(kh, (B, H, W), jnp.float32) * 0.1

    fwd = jax.jit(model_forward)
    out = fwd(params, x, height)
    jax.block_until_ready(out)
    assert out.shape == (B, TARGET_FRAMES, H, W), out.shape
    assert jnp.all(jnp.isfinite(out))
    print("KERNEL_OK")
</pallas_src>

<mosaic_0001>
module attributes {stable_mosaic.version = 11 : i64} {
  func.func @_mm_bias_act_kernel(%arg0: i32, %arg1: memref<512x128xbf16, #tpu.memory_space<vmem>>, %arg2: memref<128x128xbf16, #tpu.memory_space<vmem>>, %arg3: memref<1x128xf32, #tpu.memory_space<vmem>>, %arg4: memref<512x128xbf16, #tpu.memory_space<vmem>>) attributes {dimension_semantics = [#tpu.dimension_semantics<parallel>], iteration_bounds = array<i64: 1>, scalar_prefetch = 0 : i64, scratch_operands = 0 : i64, tpu.core_type = #tpu.core_type<tc>, window_params = [{transform_indices = @transform_0, window_bounds = array<i64: 512, 128>}, {pipeline_mode = #tpu.pipeline_mode<synchronous>, transform_indices = @transform_1, window_bounds = array<i64: 128, 128>}, {pipeline_mode = #tpu.pipeline_mode<synchronous>, transform_indices = @transform_2, window_bounds = array<i64: 1, 128>}, {transform_indices = @transform_3, window_bounds = array<i64: 512, 128>}]} {
    %c0 = arith.constant 0 : index
    %c0_0 = arith.constant 0 : index
    %0 = vector.load %arg1[%c0, %c0_0] : memref<512x128xbf16, #tpu.memory_space<vmem>>, vector<512x128xbf16>
    %c0_1 = arith.constant 0 : index
    %c0_2 = arith.constant 0 : index
    %1 = vector.load %arg2[%c0_1, %c0_2] : memref<128x128xbf16, #tpu.memory_space<vmem>>, vector<128x128xbf16>
    %cst = arith.constant dense<0.000000e+00> : vector<512x128xf32>
    %2 = tpu.matmul %0, %1, %cst {dimension_numbers = #tpu.dot_dimension_numbers<[1], [0], [0], [1], [0, 0, 1, 1], [], []>} : vector<512x128xbf16>, vector<128x128xbf16>, vector<512x128xf32> -> vector<512x128xf32>
    %c0_3 = arith.constant 0 : index
    %c0_4 = arith.constant 0 : index
    %3 = vector.load %arg3[%c0_3, %c0_4] : memref<1x128xf32, #tpu.memory_space<vmem>>, vector<1x128xf32>
    %4 = vector.broadcast %3 : vector<1x128xf32> to vector<512x128xf32>
    %5 = arith.addf %2, %4 : vector<512x128xf32>
    %cst_5 = arith.constant 0.000000e+00 : f32
    %6 = vector.broadcast %cst_5 : f32 to vector<512x128xf32>
    %7 = arith.maximumf %5, %6 : vector<512x128xf32>
    %8 = arith.truncf %7 : vector<512x128xf32> to vector<512x128xbf16>
    %c0_6 = arith.constant 0 : index
    %c0_7 = arith.constant 0 : index
    %9 = vector.load %arg4[%c0_6, %c0_7] : memref<512x128xbf16, #tpu.memory_space<vmem>>, vector<512x128xbf16>
    tpu.vector_store %arg4[%c0_6, %c0_7], %8 {strides = array<i32>} : memref<512x128xbf16, #tpu.memory_space<vmem>>, vector<512x128xbf16>,
    return
  }
  func.func @transform_0(%arg0: i32) -> (i32, i32) {
    %c0_i32 = arith.constant 0 : i32
    %c0_i32_0 = arith.constant 0 : i32
    return %arg0, %c0_i32 : i32, i32
  }
  func.func @transform_1(%arg0: i32) -> (i32, i32) {
    %c0_i32 = arith.constant 0 : i32
    %c0_i32_0 = arith.constant 0 : i32
    %c0_i32_1 = arith.constant 0 : i32
    return %c0_i32, %c0_i32_0 : i32, i32
  }
  func.func @transform_2(%arg0: i32) -> (i32, i32) {
    %c0_i32 = arith.constant 0 : i32
    %c0_i32_0 = arith.constant 0 : i32
    %c0_i32_1 = arith.constant 0 : i32
    return %c0_i32, %c0_i32_0 : i32, i32
  }
  func.func @transform_3(%arg0: i32) -> (i32, i32) {
    %c0_i32 = arith.constant 0 : i32
    %c0_i32_0 = arith.constant 0 : i32
    return %arg0, %c0_i32 : i32, i32
  }
}

module attributes {stable_mosaic.version = 11 : i64} {
  func.func @_mm_bias_act_kernel(%arg0: i32, %arg1: memref<512x128xbf16, #tpu.memory_space<vmem>>, %arg2: memref<128x128xbf16, #tpu.memory_space<vmem>>, %arg3: memref<1x128xf32, #tpu.memory_space<vmem>>, %arg4: memref<512x128xf32, #tpu.memory_space<vmem>>) attributes {dimension_semantics = [#tpu.dimension_semantics<parallel>], iteration_bounds = array<i64: 1>, scalar_prefetch = 0 : i64, scratch_operands = 0 : i64, tpu.core_type = #tpu.core_type<tc>, window_params = [{transform_indices = @transform_0, window_bounds = array<i64: 512, 128>}, {pipeline_mode = #tpu.pipeline_mode<synchronous>, transform_indices = @transform_1, window_bounds = array<i64: 128, 128>}, {pipeline_mode = #tpu.pipeline_mode<synchronous>, transform_indices = @transform_2, window_bounds = array<i64: 1, 128>}, {transform_indices = @transform_3, window_bounds = array<i64: 512, 128>}]} {
    %c0 = arith.constant 0 : index
    %c0_0 = arith.constant 0 : index
    %0 = vector.load %arg1[%c0, %c0_0] : memref<512x128xbf16, #tpu.memory_space<vmem>>, vector<512x128xbf16>
    %c0_1 = arith.constant 0 : index
    %c0_2 = arith.constant 0 : index
    %1 = vector.load %arg2[%c0_1, %c0_2] : memref<128x128xbf16, #tpu.memory_space<vmem>>, vector<128x128xbf16>
    %cst = arith.constant dense<0.000000e+00> : vector<512x128xf32>
    %2 = tpu.matmul %0, %1, %cst {dimension_numbers = #tpu.dot_dimension_numbers<[1], [0], [0], [1], [0, 0, 1, 1], [], []>} : vector<512x128xbf16>, vector<128x128xbf16>, vector<512x128xf32> -> vector<512x128xf32>
    %c0_3 = arith.constant 0 : index
    %c0_4 = arith.constant 0 : index
    %3 = vector.load %arg3[%c0_3, %c0_4] : memref<1x128xf32, #tpu.memory_space<vmem>>, vector<1x128xf32>
    %4 = vector.broadcast %3 : vector<1x128xf32> to vector<512x128xf32>
    %5 = arith.addf %2, %4 : vector<512x128xf32>
    %c0_5 = arith.constant 0 : index
    %c0_6 = arith.constant 0 : index
    %6 = vector.load %arg4[%c0_5, %c0_6] : memref<512x128xf32, #tpu.memory_space<vmem>>, vector<512x128xf32>
    tpu.vector_store %arg4[%c0_5, %c0_6], %5 {strides = array<i32>} : memref<512x128xf32, #tpu.memory_space<vmem>>, vector<512x128xf32>,
    return
  }
  func.func @transform_0(%arg0: i32) -> (i32, i32) {
    %c0_i32 = arith.constant 0 : i32
    %c0_i32_0 = arith.constant 0 : i32
    return %arg0, %c0_i32 : i32, i32
  }
  func.func @transform_1(%arg0: i32) -> (i32, i32) {
    %c0_i32 = arith.constant 0 : i32
    %c0_i32_0 = arith.constant 0 : i32
    %c0_i32_1 = arith.constant 0 : i32
    return %c0_i32, %c0_i32_0 : i32, i32
  }
  func.func @transform_2(%arg0: i32) -> (i32, i32) {
    %c0_i32 = arith.constant 0 : i32
    %c0_i32_0 = arith.constant 0 : i32
    %c0_i32_1 = arith.constant 0 : i32
    return %c0_i32, %c0_i32_0 : i32, i32
  }
  func.func @transform_3(%arg0: i32) -> (i32, i32) {
    %c0_i32 = arith.constant 0 : i32
    %c0_i32_0 = arith.constant 0 : i32
    return %arg0, %c0_i32 : i32, i32
  }
}

module attributes {stable_mosaic.version = 11 : i64} {
  func.func @_mm_bias_act_kernel(%arg0: i32, %arg1: memref<128x128xbf16, #tpu.memory_space<vmem>>, %arg2: memref<128x128xbf16, #tpu.memory_space<vmem>>, %arg3: memref<1x128xf32, #tpu.memory_space<vmem>>, %arg4: memref<128x128xbf16, #tpu.memory_space<vmem>>) attributes {dimension_semantics = [#tpu.dimension_semantics<parallel>], iteration_bounds = array<i64: 1>, scalar_prefetch = 0 : i64, scratch_operands = 0 : i64, tpu.core_type = #tpu.core_type<tc>, window_params = [{transform_indices = @transform_0, window_bounds = array<i64: 128, 128>}, {pipeline_mode = #tpu.pipeline_mode<synchronous>, transform_indices = @transform_1, window_bounds = array<i64: 128, 128>}, {pipeline_mode = #tpu.pipeline_mode<synchronous>, transform_indices = @transform_2, window_bounds = array<i64: 1, 128>}, {transform_indices = @transform_3, window_bounds = array<i64: 128, 128>}]} {
    %c0 = arith.constant 0 : index
    %c0_0 = arith.constant 0 : index
    %0 = vector.load %arg1[%c0, %c0_0] : memref<128x128xbf16, #tpu.memory_space<vmem>>, vector<128x128xbf16>
    %c0_1 = arith.constant 0 : index
    %c0_2 = arith.constant 0 : index
    %1 = vector.load %arg2[%c0_1, %c0_2] : memref<128x128xbf16, #tpu.memory_space<vmem>>, vector<128x128xbf16>
    %cst = arith.constant dense<0.000000e+00> : vector<128x128xf32>
    %2 = tpu.matmul %0, %1, %cst {dimension_numbers = #tpu.dot_dimension_numbers<[1], [0], [0], [1], [0, 0, 1, 1], [], []>} : vector<128x128xbf16>, vector<128x128xbf16>, vector<128x128xf32> -> vector<128x128xf32>
    %c0_3 = arith.constant 0 : index
    %c0_4 = arith.constant 0 : index
    %3 = vector.load %arg3[%c0_3, %c0_4] : memref<1x128xf32, #tpu.memory_space<vmem>>, vector<1x128xf32>
    %4 = vector.broadcast %3 : vector<1x128xf32> to vector<128x128xf32>
    %5 = arith.addf %2, %4 : vector<128x128xf32>
    %cst_5 = arith.constant 0.000000e+00 : f32
    %6 = vector.broadcast %cst_5 : f32 to vector<128x128xf32>
    %7 = arith.maximumf %5, %6 : vector<128x128xf32>
    %8 = arith.truncf %7 : vector<128x128xf32> to vector<128x128xbf16>
    %c0_6 = arith.constant 0 : index
    %c0_7 = arith.constant 0 : index
    %9 = vector.load %arg4[%c0_6, %c0_7] : memref<128x128xbf16, #tpu.memory_space<vmem>>, vector<128x128xbf16>
    tpu.vector_store %arg4[%c0_6, %c0_7], %8 {strides = array<i32>} : memref<128x128xbf16, #tpu.memory_space<vmem>>, vector<128x128xbf16>,
    return
  }
  func.func @transform_0(%arg0: i32) -> (i32, i32) {
    %c0_i32 = arith.constant 0 : i32
    %c0_i32_0 = arith.constant 0 : i32
    return %arg0, %c0_i32 : i32, i32
  }
  func.func @transform_1(%arg0: i32) -> (i32, i32) {
    %c0_i32 = arith.constant 0 : i32
    %c0_i32_0 = arith.constant 0 : i32
    %c0_i32_1 = arith.constant 0 : i32
    return %c0_i32, %c0_i32_0 : i32, i32
  }
  func.func @transform_2(%arg0: i32) -> (i32, i32) {
    %c0_i32 = arith.constant 0 : i32
    %c0_i32_0 = arith.constant 0 : i32
    %c0_i32_1 = arith.constant 0 : i32
    return %c0_i32, %c0_i32_0 : i32, i32
  }
  func.func @transform_3(%arg0: i32) -> (i32, i32) {
    %c0_i32 = arith.constant 0 : i32
    %c0_i32_0 = arith.constant 0 : i32
    return %arg0, %c0_i32 : i32, i32
  }
}

module attributes {stable_mosaic.version = 11 : i64} {
  func.func @_mm_bias_act_kernel(%arg0: i32, %arg1: memref<128x256xbf16, #tpu.memory_space<vmem>>, %arg2: memref<256x128xbf16, #tpu.memory_space<vmem>>, %arg3: memref<1x128xf32, #tpu.memory_space<vmem>>, %arg4: memref<128x128xf32, #tpu.memory_space<vmem>>) attributes {dimension_semantics = [#tpu.dimension_semantics<parallel>], iteration_bounds = array<i64: 1>, scalar_prefetch = 0 : i64, scratch_operands = 0 : i64, tpu.core_type = #tpu.core_type<tc>, window_params = [{transform_indices = @transform_0, window_bounds = array<i64: 128, 256>}, {pipeline_mode = #tpu.pipeline_mode<synchronous>, transform_indices = @transform_1, window_bounds = array<i64: 256, 128>}, {pipeline_mode = #tpu.pipeline_mode<synchronous>, transform_indices = @transform_2, window_bounds = array<i64: 1, 128>}, {transform_indices = @transform_3, window_bounds = array<i64: 128, 128>}]} {
    %c0 = arith.constant 0 : index
    %c0_0 = arith.constant 0 : index
    %0 = vector.load %arg1[%c0, %c0_0] : memref<128x256xbf16, #tpu.memory_space<vmem>>, vector<128x256xbf16>
    %c0_1 = arith.constant 0 : index
    %c0_2 = arith.constant 0 : index
    %1 = vector.load %arg2[%c0_1, %c0_2] : memref<256x128xbf16, #tpu.memory_space<vmem>>, vector<256x128xbf16>
    %cst = arith.constant dense<0.000000e+00> : vector<128x128xf32>
    %2 = tpu.matmul %0, %1, %cst {dimension_numbers = #tpu.dot_dimension_numbers<[1], [0], [0], [1], [0, 0, 1, 1], [], []>} : vector<128x256xbf16>, vector<256x128xbf16>, vector<128x128xf32> -> vector<128x128xf32>
    %c0_3 = arith.constant 0 : index
    %c0_4 = arith.constant 0 : index
    %3 = vector.load %arg3[%c0_3, %c0_4] : memref<1x128xf32, #tpu.memory_space<vmem>>, vector<1x128xf32>
    %4 = vector.broadcast %3 : vector<1x128xf32> to vector<128x128xf32>
    %5 = arith.addf %2, %4 : vector<128x128xf32>
    %c0_5 = arith.constant 0 : index
    %c0_6 = arith.constant 0 : index
    %6 = vector.load %arg4[%c0_5, %c0_6] : memref<128x128xf32, #tpu.memory_space<vmem>>, vector<128x128xf32>
    tpu.vector_store %arg4[%c0_5, %c0_6], %5 {strides = array<i32>} : memref<128x128xf32, #tpu.memory_space<vmem>>, vector<128x128xf32>,
    return
  }
  func.func @transform_0(%arg0: i32) -> (i32, i32) {
    %c0_i32 = arith.constant 0 : i32
    %c0_i32_0 = arith.constant 0 : i32
    return %arg0, %c0_i32 : i32, i32
  }
  func.func @transform_1(%arg0: i32) -> (i32, i32) {
    %c0_i32 = arith.constant 0 : i32
    %c0_i32_0 = arith.constant 0 : i32
    %c0_i32_1 = arith.constant 0 : i32
    return %c0_i32, %c0_i32_0 : i32, i32
  }
  func.func @transform_2(%arg0: i32) -> (i32, i32) {
    %c0_i32 = arith.constant 0 : i32
    %c0_i32_0 = arith.constant 0 : i32
    %c0_i32_1 = arith.constant 0 : i32
    return %c0_i32, %c0_i32_0 : i32, i32
  }
  func.func @transform_3(%arg0: i32) -> (i32, i32) {
    %c0_i32 = arith.constant 0 : i32
    %c0_i32_0 = arith.constant 0 : i32
    return %arg0, %c0_i32 : i32, i32
  }
}

module attributes {stable_mosaic.version = 11 : i64} {
  func.func @_mm_bias_act_kernel(%arg0: i32, %arg1: memref<128x128xbf16, #tpu.memory_space<vmem>>, %arg2: memref<128x128xbf16, #tpu.memory_space<vmem>>, %arg3: memref<1x128xf32, #tpu.memory_space<vmem>>, %arg4: memref<128x128xf32, #tpu.memory_space<vmem>>) attributes {dimension_semantics = [#tpu.dimension_semantics<parallel>], iteration_bounds = array<i64: 1>, scalar_prefetch = 0 : i64, scratch_operands = 0 : i64, tpu.core_type = #tpu.core_type<tc>, window_params = [{transform_indices = @transform_0, window_bounds = array<i64: 128, 128>}, {pipeline_mode = #tpu.pipeline_mode<synchronous>, transform_indices = @transform_1, window_bounds = array<i64: 128, 128>}, {pipeline_mode = #tpu.pipeline_mode<synchronous>, transform_indices = @transform_2, window_bounds = array<i64: 1, 128>}, {transform_indices = @transform_3, window_bounds = array<i64: 128, 128>}]} {
    %c0 = arith.constant 0 : index
    %c0_0 = arith.constant 0 : index
    %0 = vector.load %arg1[%c0, %c0_0] : memref<128x128xbf16, #tpu.memory_space<vmem>>, vector<128x128xbf16>
    %c0_1 = arith.constant 0 : index
    %c0_2 = arith.constant 0 : index
    %1 = vector.load %arg2[%c0_1, %c0_2] : memref<128x128xbf16, #tpu.memory_space<vmem>>, vector<128x128xbf16>
    %cst = arith.constant dense<0.000000e+00> : vector<128x128xf32>
    %2 = tpu.matmul %0, %1, %cst {dimension_numbers = #tpu.dot_dimension_numbers<[1], [0], [0], [1], [0, 0, 1, 1], [], []>} : vector<128x128xbf16>, vector<128x128xbf16>, vector<128x128xf32> -> vector<128x128xf32>
    %c0_3 = arith.constant 0 : index
    %c0_4 = arith.constant 0 : index
    %3 = vector.load %arg3[%c0_3, %c0_4] : memref<1x128xf32, #tpu.memory_space<vmem>>, vector<1x128xf32>
    %4 = vector.broadcast %3 : vector<1x128xf32> to vector<128x128xf32>
    %5 = arith.addf %2, %4 : vector<128x128xf32>
    %c0_5 = arith.constant 0 : index
    %c0_6 = arith.constant 0 : index
    %6 = vector.load %arg4[%c0_5, %c0_6] : memref<128x128xf32, #tpu.memory_space<vmem>>, vector<128x128xf32>
    tpu.vector_store %arg4[%c0_5, %c0_6], %5 {strides = array<i32>} : memref<128x128xf32, #tpu.memory_space<vmem>>, vector<128x128xf32>,
    return
  }
  func.func @transform_0(%arg0: i32) -> (i32, i32) {
    %c0_i32 = arith.constant 0 : i32
    %c0_i32_0 = arith.constant 0 : i32
    return %arg0, %c0_i32 : i32, i32
  }
  func.func @transform_1(%arg0: i32) -> (i32, i32) {
    %c0_i32 = arith.constant 0 : i32
    %c0_i32_0 = arith.constant 0 : i32
    %c0_i32_1 = arith.constant 0 : i32
    return %c0_i32, %c0_i32_0 : i32, i32
  }
  func.func @transform_2(%arg0: i32) -> (i32, i32) {
    %c0_i32 = arith.constant 0 : i32
    %c0_i32_0 = arith.constant 0 : i32
    %c0_i32_1 = arith.constant 0 : i32
    return %c0_i32, %c0_i32_0 : i32, i32
  }
  func.func @transform_3(%arg0: i32) -> (i32, i32) {
    %c0_i32 = arith.constant 0 : i32
    %c0_i32_0 = arith.constant 0 : i32
    return %arg0, %c0_i32 : i32, i32
  }
}

module attributes {stable_mosaic.version = 11 : i64} {
  func.func @_mm_bias_act_kernel(%arg0: i32, %arg1: memref<32x128xbf16, #tpu.memory_space<vmem>>, %arg2: memref<128x128xbf16, #tpu.memory_space<vmem>>, %arg3: memref<1x128xf32, #tpu.memory_space<vmem>>, %arg4: memref<32x128xbf16, #tpu.memory_space<vmem>>) attributes {dimension_semantics = [#tpu.dimension_semantics<parallel>], iteration_bounds = array<i64: 1>, scalar_prefetch = 0 : i64, scratch_operands = 0 : i64, tpu.core_type = #tpu.core_type<tc>, window_params = [{transform_indices = @transform_0, window_bounds = array<i64: 32, 128>}, {pipeline_mode = #tpu.pipeline_mode<synchronous>, transform_indices = @transform_1, window_bounds = array<i64: 128, 128>}, {pipeline_mode = #tpu.pipeline_mode<synchronous>, transform_indices = @transform_2, window_bounds = array<i64: 1, 128>}, {transform_indices = @transform_3, window_bounds = array<i64: 32, 128>}]} {
    %c0 = arith.constant 0 : index
    %c0_0 = arith.constant 0 : index
    %0 = vector.load %arg1[%c0, %c0_0] : memref<32x128xbf16, #tpu.memory_space<vmem>>, vector<32x128xbf16>
    %c0_1 = arith.constant 0 : index
    %c0_2 = arith.constant 0 : index
    %1 = vector.load %arg2[%c0_1, %c0_2] : memref<128x128xbf16, #tpu.memory_space<vmem>>, vector<128x128xbf16>
    %cst = arith.constant dense<0.000000e+00> : vector<32x128xf32>
    %2 = tpu.matmul %0, %1, %cst {dimension_numbers = #tpu.dot_dimension_numbers<[1], [0], [0], [1], [0, 0, 1, 1], [], []>} : vector<32x128xbf16>, vector<128x128xbf16>, vector<32x128xf32> -> vector<32x128xf32>
    %c0_3 = arith.constant 0 : index
    %c0_4 = arith.constant 0 : index
    %3 = vector.load %arg3[%c0_3, %c0_4] : memref<1x128xf32, #tpu.memory_space<vmem>>, vector<1x128xf32>
    %4 = vector.broadcast %3 : vector<1x128xf32> to vector<32x128xf32>
    %5 = arith.addf %2, %4 : vector<32x128xf32>
    %cst_5 = arith.constant 0.000000e+00 : f32
    %6 = vector.broadcast %cst_5 : f32 to vector<32x128xf32>
    %7 = arith.maximumf %5, %6 : vector<32x128xf32>
    %8 = arith.truncf %7 : vector<32x128xf32> to vector<32x128xbf16>
    %c0_6 = arith.constant 0 : index
    %c0_7 = arith.constant 0 : index
    %9 = vector.load %arg4[%c0_6, %c0_7] : memref<32x128xbf16, #tpu.memory_space<vmem>>, vector<32x128xbf16>
    tpu.vector_store %arg4[%c0_6, %c0_7], %8 {strides = array<i32>} : memref<32x128xbf16, #tpu.memory_space<vmem>>, vector<32x128xbf16>,
    return
  }
  func.func @transform_0(%arg0: i32) -> (i32, i32) {
    %c0_i32 = arith.constant 0 : i32
    %c0_i32_0 = arith.constant 0 : i32
    return %arg0, %c0_i32 : i32, i32
  }
  func.func @transform_1(%arg0: i32) -> (i32, i32) {
    %c0_i32 = arith.constant 0 : i32
    %c0_i32_0 = arith.constant 0 : i32
    %c0_i32_1 = arith.constant 0 : i32
    return %c0_i32, %c0_i32_0 : i32, i32
  }
  func.func @transform_2(%arg0: i32) -> (i32, i32) {
    %c0_i32 = arith.constant 0 : i32
    %c0_i32_0 = arith.constant 0 : i32
    %c0_i32_1 = arith.constant 0 : i32
    return %c0_i32, %c0_i32_0 : i32, i32
  }
  func.func @transform_3(%arg0: i32) -> (i32, i32) {
    %c0_i32 = arith.constant 0 : i32
    %c0_i32_0 = arith.constant 0 : i32
    return %arg0, %c0_i32 : i32, i32
  }
}

module attributes {stable_mosaic.version = 11 : i64} {
  func.func @_mm_bias_act_kernel(%arg0: i32, %arg1: memref<32x256xbf16, #tpu.memory_space<vmem>>, %arg2: memref<256x128xbf16, #tpu.memory_space<vmem>>, %arg3: memref<1x128xf32, #tpu.memory_space<vmem>>, %arg4: memref<32x128xf32, #tpu.memory_space<vmem>>) attributes {dimension_semantics = [#tpu.dimension_semantics<parallel>], iteration_bounds = array<i64: 1>, scalar_prefetch = 0 : i64, scratch_operands = 0 : i64, tpu.core_type = #tpu.core_type<tc>, window_params = [{transform_indices = @transform_0, window_bounds = array<i64: 32, 256>}, {pipeline_mode = #tpu.pipeline_mode<synchronous>, transform_indices = @transform_1, window_bounds = array<i64: 256, 128>}, {pipeline_mode = #tpu.pipeline_mode<synchronous>, transform_indices = @transform_2, window_bounds = array<i64: 1, 128>}, {transform_indices = @transform_3, window_bounds = array<i64: 32, 128>}]} {
    %c0 = arith.constant 0 : index
    %c0_0 = arith.constant 0 : index
    %0 = vector.load %arg1[%c0, %c0_0] : memref<32x256xbf16, #tpu.memory_space<vmem>>, vector<32x256xbf16>
    %c0_1 = arith.constant 0 : index
    %c0_2 = arith.constant 0 : index
    %1 = vector.load %arg2[%c0_1, %c0_2] : memref<256x128xbf16, #tpu.memory_space<vmem>>, vector<256x128xbf16>
    %cst = arith.constant dense<0.000000e+00> : vector<32x128xf32>
    %2 = tpu.matmul %0, %1, %cst {dimension_numbers = #tpu.dot_dimension_numbers<[1], [0], [0], [1], [0, 0, 1, 1], [], []>} : vector<32x256xbf16>, vector<256x128xbf16>, vector<32x128xf32> -> vector<32x128xf32>
    %c0_3 = arith.constant 0 : index
    %c0_4 = arith.constant 0 : index
    %3 = vector.load %arg3[%c0_3, %c0_4] : memref<1x128xf32, #tpu.memory_space<vmem>>, vector<1x128xf32>
    %4 = vector.broadcast %3 : vector<1x128xf32> to vector<32x128xf32>
    %5 = arith.addf %2, %4 : vector<32x128xf32>
    %c0_5 = arith.constant 0 : index
    %c0_6 = arith.constant 0 : index
    %6 = vector.load %arg4[%c0_5, %c0_6] : memref<32x128xf32, #tpu.memory_space<vmem>>, vector<32x128xf32>
    tpu.vector_store %arg4[%c0_5, %c0_6], %5 {strides = array<i32>} : memref<32x128xf32, #tpu.memory_space<vmem>>, vector<32x128xf32>,
    return
  }
  func.func @transform_0(%arg0: i32) -> (i32, i32) {
    %c0_i32 = arith.constant 0 : i32
    %c0_i32_0 = arith.constant 0 : i32
    return %arg0, %c0_i32 : i32, i32
  }
  func.func @transform_1(%arg0: i32) -> (i32, i32) {
    %c0_i32 = arith.constant 0 : i32
    %c0_i32_0 = arith.constant 0 : i32
    %c0_i32_1 = arith.constant 0 : i32
    return %c0_i32, %c0_i32_0 : i32, i32
  }
  func.func @transform_2(%arg0: i32) -> (i32, i32) {
    %c0_i32 = arith.constant 0 : i32
    %c0_i32_0 = arith.constant 0 : i32
    %c0_i32_1 = arith.constant 0 : i32
    return %c0_i32, %c0_i32_0 : i32, i32
  }
  func.func @transform_3(%arg0: i32) -> (i32, i32) {
    %c0_i32 = arith.constant 0 : i32
    %c0_i32_0 = arith.constant 0 : i32
    return %arg0, %c0_i32 : i32, i32
  }
}

module attributes {stable_mosaic.version = 11 : i64} {
  func.func @_mm_bias_act_kernel(%arg0: i32, %arg1: memref<32x128xbf16, #tpu.memory_space<vmem>>, %arg2: memref<128x128xbf16, #tpu.memory_space<vmem>>, %arg3: memref<1x128xf32, #tpu.memory_space<vmem>>, %arg4: memref<32x128xf32, #tpu.memory_space<vmem>>) attributes {dimension_semantics = [#tpu.dimension_semantics<parallel>], iteration_bounds = array<i64: 1>, scalar_prefetch = 0 : i64, scratch_operands = 0 : i64, tpu.core_type = #tpu.core_type<tc>, window_params = [{transform_indices = @transform_0, window_bounds = array<i64: 32, 128>}, {pipeline_mode = #tpu.pipeline_mode<synchronous>, transform_indices = @transform_1, window_bounds = array<i64: 128, 128>}, {pipeline_mode = #tpu.pipeline_mode<synchronous>, transform_indices = @transform_2, window_bounds = array<i64: 1, 128>}, {transform_indices = @transform_3, window_bounds = array<i64: 32, 128>}]} {
    %c0 = arith.constant 0 : index
    %c0_0 = arith.constant 0 : index
    %0 = vector.load %arg1[%c0, %c0_0] : memref<32x128xbf16, #tpu.memory_space<vmem>>, vector<32x128xbf16>
    %c0_1 = arith.constant 0 : index
    %c0_2 = arith.constant 0 : index
    %1 = vector.load %arg2[%c0_1, %c0_2] : memref<128x128xbf16, #tpu.memory_space<vmem>>, vector<128x128xbf16>
    %cst = arith.constant dense<0.000000e+00> : vector<32x128xf32>
    %2 = tpu.matmul %0, %1, %cst {dimension_numbers = #tpu.dot_dimension_numbers<[1], [0], [0], [1], [0, 0, 1, 1], [], []>} : vector<32x128xbf16>, vector<128x128xbf16>, vector<32x128xf32> -> vector<32x128xf32>
    %c0_3 = arith.constant 0 : index
    %c0_4 = arith.constant 0 : index
    %3 = vector.load %arg3[%c0_3, %c0_4] : memref<1x128xf32, #tpu.memory_space<vmem>>, vector<1x128xf32>
    %4 = vector.broadcast %3 : vector<1x128xf32> to vector<32x128xf32>
    %5 = arith.addf %2, %4 : vector<32x128xf32>
    %c0_5 = arith.constant 0 : index
    %c0_6 = arith.constant 0 : index
    %6 = vector.load %arg4[%c0_5, %c0_6] : memref<32x128xf32, #tpu.memory_space<vmem>>, vector<32x128xf32>
    tpu.vector_store %arg4[%c0_5, %c0_6], %5 {strides = array<i32>} : memref<32x128xf32, #tpu.memory_space<vmem>>, vector<32x128xf32>,
    return
  }
  func.func @transform_0(%arg0: i32) -> (i32, i32) {
    %c0_i32 = arith.constant 0 : i32
    %c0_i32_0 = arith.constant 0 : i32
    return %arg0, %c0_i32 : i32, i32
  }
  func.func @transform_1(%arg0: i32) -> (i32, i32) {
    %c0_i32 = arith.constant 0 : i32
    %c0_i32_0 = arith.constant 0 : i32
    %c0_i32_1 = arith.constant 0 : i32
    return %c0_i32, %c0_i32_0 : i32, i32
  }
  func.func @transform_2(%arg0: i32) -> (i32, i32) {
    %c0_i32 = arith.constant 0 : i32
    %c0_i32_0 = arith.constant 0 : i32
    %c0_i32_1 = arith.constant 0 : i32
    return %c0_i32, %c0_i32_0 : i32, i32
  }
  func.func @transform_3(%arg0: i32) -> (i32, i32) {
    %c0_i32 = arith.constant 0 : i32
    %c0_i32_0 = arith.constant 0 : i32
    return %arg0, %c0_i32 : i32, i32
  }
}

module attributes {stable_mosaic.version = 11 : i64} {
  func.func @_mm_bias_act_kernel(%arg0: i32, %arg1: memref<512x256xbf16, #tpu.memory_space<vmem>>, %arg2: memref<256x128xbf16, #tpu.memory_space<vmem>>, %arg3: memref<1x128xf32, #tpu.memory_space<vmem>>, %arg4: memref<512x128xbf16, #tpu.memory_space<vmem>>) attributes {dimension_semantics = [#tpu.dimension_semantics<parallel>], iteration_bounds = array<i64: 1>, scalar_prefetch = 0 : i64, scratch_operands = 0 : i64, tpu.core_type = #tpu.core_type<tc>, window_params = [{transform_indices = @transform_0, window_bounds = array<i64: 512, 256>}, {pipeline_mode = #tpu.pipeline_mode<synchronous>, transform_indices = @transform_1, window_bounds = array<i64: 256, 128>}, {pipeline_mode = #tpu.pipeline_mode<synchronous>, transform_indices = @transform_2, window_bounds = array<i64: 1, 128>}, {transform_indices = @transform_3, window_bounds = array<i64: 512, 128>}]} {
    %c0 = arith.constant 0 : index
    %c0_0 = arith.constant 0 : index
    %0 = vector.load %arg1[%c0, %c0_0] : memref<512x256xbf16, #tpu.memory_space<vmem>>, vector<512x256xbf16>
    %c0_1 = arith.constant 0 : index
    %c0_2 = arith.constant 0 : index
    %1 = vector.load %arg2[%c0_1, %c0_2] : memref<256x128xbf16, #tpu.memory_space<vmem>>, vector<256x128xbf16>
    %cst = arith.constant dense<0.000000e+00> : vector<512x128xf32>
    %2 = tpu.matmul %0, %1, %cst {dimension_numbers = #tpu.dot_dimension_numbers<[1], [0], [0], [1], [0, 0, 1, 1], [], []>} : vector<512x256xbf16>, vector<256x128xbf16>, vector<512x128xf32> -> vector<512x128xf32>
    %c0_3 = arith.constant 0 : index
    %c0_4 = arith.constant 0 : index
    %3 = vector.load %arg3[%c0_3, %c0_4] : memref<1x128xf32, #tpu.memory_space<vmem>>, vector<1x128xf32>
    %4 = vector.broadcast %3 : vector<1x128xf32> to vector<512x128xf32>
    %5 = arith.addf %2, %4 : vector<512x128xf32>
    %cst_5 = arith.constant 0.000000e+00 : f32
    %6 = vector.broadcast %cst_5 : f32 to vector<512x128xf32>
    %7 = arith.maximumf %5, %6 : vector<512x128xf32>
    %8 = arith.truncf %7 : vector<512x128xf32> to vector<512x128xbf16>
    %c0_6 = arith.constant 0 : index
    %c0_7 = arith.constant 0 : index
    %9 = vector.load %arg4[%c0_6, %c0_7] : memref<512x128xbf16, #tpu.memory_space<vmem>>, vector<512x128xbf16>
    tpu.vector_store %arg4[%c0_6, %c0_7], %8 {strides = array<i32>} : memref<512x128xbf16, #tpu.memory_space<vmem>>, vector<512x128xbf16>,
    return
  }
  func.func @transform_0(%arg0: i32) -> (i32, i32) {
    %c0_i32 = arith.constant 0 : i32
    %c0_i32_0 = arith.constant 0 : i32
    return %arg0, %c0_i32 : i32, i32
  }
  func.func @transform_1(%arg0: i32) -> (i32, i32) {
    %c0_i32 = arith.constant 0 : i32
    %c0_i32_0 = arith.constant 0 : i32
    %c0_i32_1 = arith.constant 0 : i32
    return %c0_i32, %c0_i32_0 : i32, i32
  }
  func.func @transform_2(%arg0: i32) -> (i32, i32) {
    %c0_i32 = arith.constant 0 : i32
    %c0_i32_0 = arith.constant 0 : i32
    %c0_i32_1 = arith.constant 0 : i32
    return %c0_i32, %c0_i32_0 : i32, i32
  }
  func.func @transform_3(%arg0: i32) -> (i32, i32) {
    %c0_i32 = arith.constant 0 : i32
    %c0_i32_0 = arith.constant 0 : i32
    return %arg0, %c0_i32 : i32, i32
  }
}

module attributes {stable_mosaic.version = 11 : i64} {
  func.func @_mm_bias_act_kernel(%arg0: i32, %arg1: memref<512x256xbf16, #tpu.memory_space<vmem>>, %arg2: memref<256x128xbf16, #tpu.memory_space<vmem>>, %arg3: memref<1x128xf32, #tpu.memory_space<vmem>>, %arg4: memref<512x128xf32, #tpu.memory_space<vmem>>) attributes {dimension_semantics = [#tpu.dimension_semantics<parallel>], iteration_bounds = array<i64: 1>, scalar_prefetch = 0 : i64, scratch_operands = 0 : i64, tpu.core_type = #tpu.core_type<tc>, window_params = [{transform_indices = @transform_0, window_bounds = array<i64: 512, 256>}, {pipeline_mode = #tpu.pipeline_mode<synchronous>, transform_indices = @transform_1, window_bounds = array<i64: 256, 128>}, {pipeline_mode = #tpu.pipeline_mode<synchronous>, transform_indices = @transform_2, window_bounds = array<i64: 1, 128>}, {transform_indices = @transform_3, window_bounds = array<i64: 512, 128>}]} {
    %c0 = arith.constant 0 : index
    %c0_0 = arith.constant 0 : index
    %0 = vector.load %arg1[%c0, %c0_0] : memref<512x256xbf16, #tpu.memory_space<vmem>>, vector<512x256xbf16>
    %c0_1 = arith.constant 0 : index
    %c0_2 = arith.constant 0 : index
    %1 = vector.load %arg2[%c0_1, %c0_2] : memref<256x128xbf16, #tpu.memory_space<vmem>>, vector<256x128xbf16>
    %cst = arith.constant dense<0.000000e+00> : vector<512x128xf32>
    %2 = tpu.matmul %0, %1, %cst {dimension_numbers = #tpu.dot_dimension_numbers<[1], [0], [0], [1], [0, 0, 1, 1], [], []>} : vector<512x256xbf16>, vector<256x128xbf16>, vector<512x128xf32> -> vector<512x128xf32>
    %c0_3 = arith.constant 0 : index
    %c0_4 = arith.constant 0 : index
    %3 = vector.load %arg3[%c0_3, %c0_4] : memref<1x128xf32, #tpu.memory_space<vmem>>, vector<1x128xf32>
    %4 = vector.broadcast %3 : vector<1x128xf32> to vector<512x128xf32>
    %5 = arith.addf %2, %4 : vector<512x128xf32>
    %cst_5 = arith.constant 0.000000e+00 : f32
    %6 = vector.broadcast %cst_5 : f32 to vector<512x128xf32>
    %7 = arith.maximumf %5, %6 : vector<512x128xf32>
    %c0_6 = arith.constant 0 : index
    %c0_7 = arith.constant 0 : index
    %8 = vector.load %arg4[%c0_6, %c0_7] : memref<512x128xf32, #tpu.memory_space<vmem>>, vector<512x128xf32>
    tpu.vector_store %arg4[%c0_6, %c0_7], %7 {strides = array<i32>} : memref<512x128xf32, #tpu.memory_space<vmem>>, vector<512x128xf32>,
    return
  }
  func.func @transform_0(%arg0: i32) -> (i32, i32) {
    %c0_i32 = arith.constant 0 : i32
    %c0_i32_0 = arith.constant 0 : i32
    return %arg0, %c0_i32 : i32, i32
  }
  func.func @transform_1(%arg0: i32) -> (i32, i32) {
    %c0_i32 = arith.constant 0 : i32
    %c0_i32_0 = arith.constant 0 : i32
    %c0_i32_1 = arith.constant 0 : i32
    return %c0_i32, %c0_i32_0 : i32, i32
  }
  func.func @transform_2(%arg0: i32) -> (i32, i32) {
    %c0_i32 = arith.constant 0 : i32
    %c0_i32_0 = arith.constant 0 : i32
    %c0_i32_1 = arith.constant 0 : i32
    return %c0_i32, %c0_i32_0 : i32, i32
  }
  func.func @transform_3(%arg0: i32) -> (i32, i32) {
    %c0_i32 = arith.constant 0 : i32
    %c0_i32_0 = arith.constant 0 : i32
    return %arg0, %c0_i32 : i32, i32
  }
}

</mosaic_0001>

<bundles_post_ra>
// kernel: model_forward.33
= control target key start
LH: loop header
LB: loop body
LE: loop exit
PB: predicated region body
PF: predicated region fallthrough
CT: control target
= control target key end

     0   :  { %s1860_s1 = inlined_call_operand.vmem [shape: bf16[128,128], index: 1, kind: input, shape index: {}]   ;;  %s1861_s0 = inlined_call_operand.vmem [shape: bf16[512,128], index: 0, kind: input, shape index: {}]   ;;  %s1862_s2 = inlined_call_operand.vmem [shape: f32[1,128], index: 2, kind: input, shape index: {}]   ;;  %s1863_s3 = inlined_call_operand.vmem [shape: bf16[512,128], index: 3, kind: output, shape index: {}]  }
   0x1   :  { %v1515_v0 = vld [vmem:[%s1860_s1] sm:$0xff]   ;;  %v1516_v1 = vld [vmem:[%s1860_s1 + $0x8] sm:$0xff]   ;;  %v1517_v2 = vld [vmem:[%s1860_s1 + $0x10] sm:$0xff]  }
   0x2   :  { %1419 = vmatprep.subr.bf16.mxu0 %v1515_v0  ;;  %1499 = vmatprep.subr.bf16.mxu1 %v1515_v0  ;;  %v1518_v3 = vld [vmem:[%s1860_s1 + $0x18] sm:$0xff]   ;;  %v1523_v4 = vld [vmem:[%s1861_s0] sm:$0xff]   ;;  %v1520_v7 = vld [vmem:[%s1860_s1 + $0x28] sm:$0xff]  }
   0x3   :  { %1420 = vmatpush3.bf16.msra.mxu0 %v1515_v0  ;;  %1507 = vmatpush3.bf16.msra.mxu1 %v1515_v0  ;;  %v1524_v5 = vld [vmem:[%s1861_s0 + $0x80] sm:$0xff]   ;;  %v1521_v8 = vld [vmem:[%s1860_s1 + $0x30] sm:$0xff]   ;;  %v1522_v9 = vld [vmem:[%s1860_s1 + $0x38] sm:$0xff]  }
   0x4   :  { %1421 = vmatprep.subr.bf16.mxu0 %v1516_v1  ;;  %1500 = vmatprep.subr.bf16.mxu1 %v1516_v1  ;;  %v1519_v6 = vld [vmem:[%s1860_s1 + $0x20] sm:$0xff]   ;;  %v1525_v10 = vld [vmem:[%s1861_s0 + $0x8] sm:$0xff]   ;;  %v1527_v12 = vld [vmem:[%s1861_s0 + $0x10] sm:$0xff]  }
   0x5   :  { %1435 = vmatprep.mubr.bf16.mxu0 %v1523_v4  ;;  %1467 = vmatprep.mubr.bf16.mxu1 %v1524_v5  ;;  %v1526_v11 = vld [vmem:[%s1861_s0 + $0x88] sm:$0xff]   ;;  %v1528_v13 = vld [vmem:[%s1861_s0 + $0x90] sm:$0xff]   ;;  %v1529_v14 = vld [vmem:[%s1861_s0 + $0x18] sm:$0xff]  }
   0x6   :  { %v1530_v15 = vld [vmem:[%s1861_s0 + $0x98] sm:$0xff]   ;;  %v1531_v16 = vld [vmem:[%s1861_s0 + $0x20] sm:$0xff]   ;;  %v1533_v18 = vld [vmem:[%s1861_s0 + $0x28] sm:$0xff]  }
   0x7   :  { %1422 = vmatpush3.bf16.msra.mxu0 %v1516_v1  ;;  %1508 = vmatpush3.bf16.msra.mxu1 %v1516_v1  ;;  %v1532_v17 = vld [vmem:[%s1861_s0 + $0xa0] sm:$0xff]   ;;  %v1534_v19 = vld [vmem:[%s1861_s0 + $0xa8] sm:$0xff]   ;;  %v1535_v20 = vld [vmem:[%s1861_s0 + $0x30] sm:$0xff]  }
   0x8   :  { %1423 = vmatprep.subr.bf16.mxu0 %v1517_v2  ;;  %1501 = vmatprep.subr.bf16.mxu1 %v1517_v2  ;;  %v1536_v21 = vld [vmem:[%s1861_s0 + $0xb0] sm:$0xff]   ;;  %v1537_v22 = vld [vmem:[%s1861_s0 + $0x38] sm:$0xff]   ;;  %v1539_v24 = vld [vmem:[%s1861_s0 + $0x40] sm:$0xff]  }
   0x9   :  { %v1538_v23 = vld [vmem:[%s1861_s0 + $0xb8] sm:$0xff]   ;;  %v1540_v25 = vld [vmem:[%s1861_s0 + $0xc0] sm:$0xff]   ;;  %v1541_v26 = vld [vmem:[%s1861_s0 + $0x48] sm:$0xff]  }
   0xa   :  { %v1542_v27 = vld [vmem:[%s1861_s0 + $0xc8] sm:$0xff]   ;;  %v1543_v28 = vld [vmem:[%s1861_s0 + $0x50] sm:$0xff]   ;;  %v1545_v30 = vld [vmem:[%s1861_s0 + $0x58] sm:$0xff]  }
   0xb   :  { %1424 = vmatpush3.bf16.msra.mxu0 %v1517_v2  ;;  %1509 = vmatpush3.bf16.msra.mxu1 %v1517_v2  ;;  %v1544_v29 = vld [vmem:[%s1861_s0 + $0xd0] sm:$0xff]   ;;  %v1546_v31 = vld [vmem:[%s1861_s0 + $0xd8] sm:$0xff]   ;;  %v1547_v32 = vld [vmem:[%s1861_s0 + $0x60] sm:$0xff]  }
   0xc   :  { %1425 = vmatprep.subr.bf16.mxu0 %v1518_v3  ;;  %1502 = vmatprep.subr.bf16.mxu1 %v1518_v3  ;;  %v1548_v33 = vld [vmem:[%s1861_s0 + $0xe0] sm:$0xff]   ;;  %v1549_v34 = vld [vmem:[%s1861_s0 + $0x68] sm:$0xff]   ;;  %v1551_v36 = vld [vmem:[%s1861_s0 + $0x70] sm:$0xff]  }
   0xd   :  { %v1550_v35 = vld [vmem:[%s1861_s0 + $0xe8] sm:$0xff]   ;;  %v1552_v37 = vld [vmem:[%s1861_s0 + $0xf0] sm:$0xff]   ;;  %v1553_v38 = vld [vmem:[%s1861_s0 + $0x78] sm:$0xff]  }
   0xe   :  { %v1554_v39 = vld [vmem:[%s1861_s0 + $0xf8] sm:$0xff]   ;;  %v1698_v40 = vld [vmem:[%s1862_s2] ss:$0 sm:$0xff] }
   0xf   :  { %1426 = vmatpush3.bf16.msra.mxu0 %v1518_v3  ;;  %1510 = vmatpush3.bf16.msra.mxu1 %v1518_v3 }
  0x10   :  { %1427 = vmatprep.subr.bf16.mxu0 %v1519_v6  ;;  %1503 = vmatprep.subr.bf16.mxu1 %v1519_v6 }
  0x13   :  { %1428 = vmatpush3.bf16.msra.mxu0 %v1519_v6  ;;  %1511 = vmatpush3.bf16.msra.mxu1 %v1519_v6 }
  0x14   :  { %1429 = vmatprep.subr.bf16.mxu0 %v1520_v7  ;;  %1504 = vmatprep.subr.bf16.mxu1 %v1520_v7 }
  0x17   :  { %1430 = vmatpush3.bf16.msra.mxu0 %v1520_v7  ;;  %1512 = vmatpush3.bf16.msra.mxu1 %v1520_v7 }
  0x18   :  { %1431 = vmatprep.subr.bf16.mxu0 %v1521_v8  ;;  %1505 = vmatprep.subr.bf16.mxu1 %v1521_v8 }
  0x1b   :  { %1432 = vmatpush3.bf16.msra.mxu0 %v1521_v8  ;;  %1513 = vmatpush3.bf16.msra.mxu1 %v1521_v8 }
  0x1c   :  { %1433 = vmatprep.subr.bf16.mxu0 %v1522_v9  ;;  %1506 = vmatprep.subr.bf16.mxu1 %v1522_v9 }
  0x1f   :  { %1434 = vmatpush3.bf16.msra.mxu0 %v1522_v9  ;;  %1514 = vmatpush3.bf16.msra.mxu1 %v1522_v9 }
  0x22   :  { %1436 = vmatmul.mubr.bf16.vlgmr.msra.gmra.mrb[0].mxu0 %v1525_v10  ;;  %1468 = vmatmul.mubr.bf16.vlgmr.msra.gmra.mrb[0].mxu1 %v1526_v11 }
  0x23   :  { %1439 = vmatprep.mubr.bf16.mxu0 %v1527_v12  ;;  %1471 = vmatprep.mubr.bf16.mxu1 %v1528_v13 }
  0x2a   :  { %1440 = vmatmul.mubr.bf16.gmra.mrb[4].mxu0 %v1529_v14  ;;  %1472 = vmatmul.mubr.bf16.gmra.mrb[4].mxu1 %v1530_v15 }
  0x2b   :  { %1443 = vmatprep.mubr.bf16.mxu0 %v1531_v16  ;;  %1475 = vmatprep.mubr.bf16.mxu1 %v1532_v17 }
  0x32   :  { %1444 = vmatmul.mubr.bf16.gmra.mrb[8].mxu0 %v1533_v18  ;;  %1476 = vmatmul.mubr.bf16.gmra.mrb[8].mxu1 %v1534_v19 }
  0x33   :  { %1447 = vmatprep.mubr.bf16.mxu0 %v1535_v20  ;;  %1479 = vmatprep.mubr.bf16.mxu1 %v1536_v21 }
  0x3a   :  { %1448 = vmatmul.mubr.bf16.gmra.mrb[12].mxu0 %v1537_v22  ;;  %1480 = vmatmul.mubr.bf16.gmra.mrb[12].mxu1 %v1538_v23 }
  0x3b   :  { %1451 = vmatprep.mubr.bf16.mxu0 %v1539_v24  ;;  %1483 = vmatprep.mubr.bf16.mxu1 %v1540_v25 }
  0x42   :  { %1452 = vmatmul.mubr.bf16.gmra.mrb[16].mxu0 %v1541_v26  ;;  %1484 = vmatmul.mubr.bf16.gmra.mrb[16].mxu1 %v1542_v27 }
  0x43   :  { %1455 = vmatprep.mubr.bf16.mxu0 %v1543_v28  ;;  %1487 = vmatprep.mubr.bf16.mxu1 %v1544_v29 }
  0x4a   :  { %1456 = vmatmul.mubr.bf16.gmra.mrb[20].mxu0 %v1545_v30  ;;  %1488 = vmatmul.mubr.bf16.gmra.mrb[20].mxu1 %v1546_v31 }
  0x4b   :  { %1459 = vmatprep.mubr.bf16.mxu0 %v1547_v32  ;;  %1491 = vmatprep.mubr.bf16.mxu1 %v1548_v33 }
  0x52   :  { %1460 = vmatmul.mubr.bf16.gmra.mrb[24].mxu0 %v1549_v34  ;;  %1492 = vmatmul.mubr.bf16.gmra.mrb[24].mxu1 %v1550_v35 }
  0x53   :  { %1463 = vmatprep.mubr.bf16.mxu0 %v1551_v36  ;;  %1495 = vmatprep.mubr.bf16.mxu1 %v1552_v37 }
  0x5a   :  { %1464 = vmatmul.mubr.bf16.gmra.mrb[28].mxu0 %v1553_v38  ;;  %1496 = vmatmul.mubr.bf16.gmra.mrb[28].mxu1 %v1554_v39 }
  0xf5   :  { %v1437_v41 = vpop.f32.mrb[0].mxu0  ;;  %v1469_v42 = vpop.f32.mrb[0].mxu1 }
  0xf6   :  { %v385_v43 = vadd.f32 %v1437_v41, %v1698_v40  ;;  %v513_v44 = vadd.f32 %v1469_v42, %v1698_v40  ;;  %v376_v45 = vpop.f32.mrb[1].mxu0  ;;  %v504_v46 = vpop.f32.mrb[1].mxu1 }
  0xf7   :  { %v377_v47 = vadd.f32 %v1698_v40, %v376_v45  ;;  %v505_v48 = vadd.f32 %v1698_v40, %v504_v46  ;;  %v1438_v49 = vpop.f32.mrb[2].mxu0  ;;  %v1470_v50 = vpop.f32.mrb[2].mxu1 }
  0xf8   :  { %v388_v51 = vadd.f32 %v1438_v49, %v1698_v40  ;;  %v516_v52 = vadd.f32 %v1470_v50, %v1698_v40  ;;  %v379_v53 = vpop.f32.mrb[3].mxu0  ;;  %v507_v54 = vpop.f32.mrb[3].mxu1  ;;  %v633_v57 = vmax.f32 %v385_v43, 0.0  ;;  %v665_v58 = vmax.f32 %v513_v44, 0.0 }
  0xf9   :  { %v380_v55 = vadd.f32 %v1698_v40, %v379_v53  ;;  %v508_v56 = vadd.f32 %v1698_v40, %v507_v54  ;;  %v631_v61 = vmax.f32 %v377_v47, 0.0  ;;  %v663_v62 = vmax.f32 %v505_v48, 0.0 }
  0xfa   :  { %v634_v59 = vmax.f32 %v388_v51, 0.0  ;;  %v666_v60 = vmax.f32 %v516_v52, 0.0 }
  0xfb   :  { %v632_v63 = vmax.f32 %v380_v55, 0.0  ;;  %v664_v0 = vmax.f32 %v508_v56, 0.0 }
  0xfc   :  { %v1196_v1 = vpack.c.bf16 %v634_v59, %v633_v57  ;;  %v1276_v2 = vpack.c.bf16 %v666_v60, %v665_v58 }
  0xfd   :  { %v1191_v3 = vpack.c.bf16 %v632_v63, %v631_v61  ;;  %v1271_v4 = vpack.c.bf16 %v664_v0, %v663_v62  ;;  %v1441_v5 = vpop.f32.mrb[4].mxu0  ;;  %v1473_v6 = vpop.f32.mrb[4].mxu1 }
  0xfe   :  { %1348 = vst [vmem:[%s1863_s3 + $0x8] sm:$0xff] %v1196_v1   ;;  %1364 = vst [vmem:[%s1863_s3 + $0x88] sm:$0xff] %v1276_v2   ;;  %v401_v7 = vadd.f32 %v1441_v5, %v1698_v40  ;;  %v529_v8 = vadd.f32 %v1473_v6, %v1698_v40  ;;  %v392_v9 = vpop.f32.mrb[5].mxu0  ;;  %v520_v10 = vpop.f32.mrb[5].mxu1 }
  0xff   :  { %1192 = vst [vmem:[%s1863_s3] sm:$0xff] %v1191_v3   ;;  %1363 = vst [vmem:[%s1863_s3 + $0x80] sm:$0xff] %v1271_v4   ;;  %v393_v11 = vadd.f32 %v1698_v40, %v392_v9  ;;  %v521_v12 = vadd.f32 %v1698_v40, %v520_v10  ;;  %v1442_v13 = vpop.f32.mrb[6].mxu0  ;;  %v1474_v14 = vpop.f32.mrb[6].mxu1 }
 0x100   :  { %v404_v15 = vadd.f32 %v1442_v13, %v1698_v40  ;;  %v532_v16 = vadd.f32 %v1474_v14, %v1698_v40  ;;  %v395_v17 = vpop.f32.mrb[7].mxu0  ;;  %v523_v18 = vpop.f32.mrb[7].mxu1  ;;  %v637_v21 = vmax.f32 %v401_v7, 0.0  ;;  %v669_v22 = vmax.f32 %v529_v8, 0.0 }
 0x101   :  { %v396_v19 = vadd.f32 %v1698_v40, %v395_v17  ;;  %v524_v20 = vadd.f32 %v1698_v40, %v523_v18  ;;  %v635_v25 = vmax.f32 %v393_v11, 0.0  ;;  %v667_v26 = vmax.f32 %v521_v12, 0.0 }
 0x102   :  { %v638_v23 = vmax.f32 %v404_v15, 0.0  ;;  %v670_v24 = vmax.f32 %v532_v16, 0.0 }
 0x103   :  { %v636_v27 = vmax.f32 %v396_v19, 0.0  ;;  %v668_v28 = vmax.f32 %v524_v20, 0.0 }
 0x104   :  { %v1206_v29 = vpack.c.bf16 %v638_v23, %v637_v21  ;;  %v1286_v30 = vpack.c.bf16 %v670_v24, %v669_v22 }
 0x105   :  { %v1201_v31 = vpack.c.bf16 %v636_v27, %v635_v25  ;;  %v1281_v32 = vpack.c.bf16 %v668_v28, %v667_v26  ;;  %v1445_v33 = vpop.f32.mrb[8].mxu0  ;;  %v1477_v34 = vpop.f32.mrb[8].mxu1 }
 0x106   :  { %1350 = vst [vmem:[%s1863_s3 + $0x18] sm:$0xff] %v1206_v29   ;;  %1366 = vst [vmem:[%s1863_s3 + $0x98] sm:$0xff] %v1286_v30   ;;  %v417_v35 = vadd.f32 %v1445_v33, %v1698_v40  ;;  %v545_v36 = vadd.f32 %v1477_v34, %v1698_v40  ;;  %v408_v37 = vpop.f32.mrb[9].mxu0  ;;  %v536_v38 = vpop.f32.mrb[9].mxu1 }
 0x107   :  { %1349 = vst [vmem:[%s1863_s3 + $0x10] sm:$0xff] %v1201_v31   ;;  %1365 = vst [vmem:[%s1863_s3 + $0x90] sm:$0xff] %v1281_v32   ;;  %v409_v39 = vadd.f32 %v1698_v40, %v408_v37  ;;  %v537_v41 = vadd.f32 %v1698_v40, %v536_v38  ;;  %v1446_v42 = vpop.f32.mrb[10].mxu0  ;;  %v1478_v43 = vpop.f32.mrb[10].mxu1 }
 0x108   :  { %v420_v44 = vadd.f32 %v1446_v42, %v1698_v40  ;;  %v548_v45 = vadd.f32 %v1478_v43, %v1698_v40  ;;  %v411_v46 = vpop.f32.mrb[11].mxu0  ;;  %v539_v47 = vpop.f32.mrb[11].mxu1  ;;  %v641_v50 = vmax.f32 %v417_v35, 0.0  ;;  %v673_v51 = vmax.f32 %v545_v36, 0.0 }
 0x109   :  { %v412_v48 = vadd.f32 %v1698_v40, %v411_v46  ;;  %v540_v49 = vadd.f32 %v1698_v40, %v539_v47  ;;  %v639_v54 = vmax.f32 %v409_v39, 0.0  ;;  %v671_v55 = vmax.f32 %v537_v41, 0.0 }
 0x10a   :  { %v642_v52 = vmax.f32 %v420_v44, 0.0  ;;  %v674_v53 = vmax.f32 %v548_v45, 0.0 }
 0x10b   :  { %v640_v56 = vmax.f32 %v412_v48, 0.0  ;;  %v672_v57 = vmax.f32 %v540_v49, 0.0 }
 0x10c   :  { %v1216_v58 = vpack.c.bf16 %v642_v52, %v641_v50  ;;  %v1296_v59 = vpack.c.bf16 %v674_v53, %v673_v51 }
 0x10d   :  { %v1211_v60 = vpack.c.bf16 %v640_v56, %v639_v54  ;;  %v1291_v61 = vpack.c.bf16 %v672_v57, %v671_v55  ;;  %v1449_v62 = vpop.f32.mrb[12].mxu0  ;;  %v1481_v63 = vpop.f32.mrb[12].mxu1 }
 0x10e   :  { %1352 = vst [vmem:[%s1863_s3 + $0x28] sm:$0xff] %v1216_v58   ;;  %1368 = vst [vmem:[%s1863_s3 + $0xa8] sm:$0xff] %v1296_v59   ;;  %v433_v0 = vadd.f32 %v1449_v62, %v1698_v40  ;;  %v561_v1 = vadd.f32 %v1481_v63, %v1698_v40  ;;  %v424_v2 = vpop.f32.mrb[13].mxu0  ;;  %v552_v3 = vpop.f32.mrb[13].mxu1 }
 0x10f   :  { %1351 = vst [vmem:[%s1863_s3 + $0x20] sm:$0xff] %v1211_v60   ;;  %1367 = vst [vmem:[%s1863_s3 + $0xa0] sm:$0xff] %v1291_v61   ;;  %v425_v4 = vadd.f32 %v1698_v40, %v424_v2  ;;  %v553_v5 = vadd.f32 %v1698_v40, %v552_v3  ;;  %v1450_v6 = vpop.f32.mrb[14].mxu0  ;;  %v1482_v7 = vpop.f32.mrb[14].mxu1 }
 0x110   :  { %v436_v8 = vadd.f32 %v1450_v6, %v1698_v40  ;;  %v564_v9 = vadd.f32 %v1482_v7, %v1698_v40  ;;  %v427_v10 = vpop.f32.mrb[15].mxu0  ;;  %v555_v11 = vpop.f32.mrb[15].mxu1  ;;  %v645_v14 = vmax.f32 %v433_v0, 0.0  ;;  %v677_v15 = vmax.f32 %v561_v1, 0.0 }
 0x111   :  { %v428_v12 = vadd.f32 %v1698_v40, %v427_v10  ;;  %v556_v13 = vadd.f32 %v1698_v40, %v555_v11  ;;  %v643_v18 = vmax.f32 %v425_v4, 0.0  ;;  %v675_v19 = vmax.f32 %v553_v5, 0.0 }
 0x112   :  { %v646_v16 = vmax.f32 %v436_v8, 0.0  ;;  %v678_v17 = vmax.f32 %v564_v9, 0.0 }
 0x113   :  { %v644_v20 = vmax.f32 %v428_v12, 0.0  ;;  %v676_v21 = vmax.f32 %v556_v13, 0.0 }
 0x114   :  { %v1226_v22 = vpack.c.bf16 %v646_v16, %v645_v14  ;;  %v1306_v23 = vpack.c.bf16 %v678_v17, %v677_v15 }
 0x115   :  { %v1221_v24 = vpack.c.bf16 %v644_v20, %v643_v18  ;;  %v1301_v25 = vpack.c.bf16 %v676_v21, %v675_v19  ;;  %v1453_v26 = vpop.f32.mrb[16].mxu0  ;;  %v1485_v27 = vpop.f32.mrb[16].mxu1 }
 0x116   :  { %1354 = vst [vmem:[%s1863_s3 + $0x38] sm:$0xff] %v1226_v22   ;;  %1370 = vst [vmem:[%s1863_s3 + $0xb8] sm:$0xff] %v1306_v23   ;;  %v449_v28 = vadd.f32 %v1453_v26, %v1698_v40  ;;  %v577_v29 = vadd.f32 %v1485_v27, %v1698_v40  ;;  %v440_v30 = vpop.f32.mrb[17].mxu0  ;;  %v568_v31 = vpop.f32.mrb[17].mxu1 }
 0x117   :  { %1353 = vst [vmem:[%s1863_s3 + $0x30] sm:$0xff] %v1221_v24   ;;  %1369 = vst [vmem:[%s1863_s3 + $0xb0] sm:$0xff] %v1301_v25   ;;  %v441_v32 = vadd.f32 %v1698_v40, %v440_v30  ;;  %v569_v33 = vadd.f32 %v1698_v40, %v568_v31  ;;  %v1454_v34 = vpop.f32.mrb[18].mxu0  ;;  %v1486_v35 = vpop.f32.mrb[18].mxu1 }
 0x118   :  { %v452_v36 = vadd.f32 %v1454_v34, %v1698_v40  ;;  %v580_v37 = vadd.f32 %v1486_v35, %v1698_v40  ;;  %v443_v38 = vpop.f32.mrb[19].mxu0  ;;  %v571_v39 = vpop.f32.mrb[19].mxu1  ;;  %v649_v43 = vmax.f32 %v449_v28, 0.0  ;;  %v681_v44 = vmax.f32 %v577_v29, 0.0 }
 0x119   :  { %v444_v41 = vadd.f32 %v1698_v40, %v443_v38  ;;  %v572_v42 = vadd.f32 %v1698_v40, %v571_v39  ;;  %v647_v47 = vmax.f32 %v441_v32, 0.0  ;;  %v679_v48 = vmax.f32 %v569_v33, 0.0 }
 0x11a   :  { %v650_v45 = vmax.f32 %v452_v36, 0.0  ;;  %v682_v46 = vmax.f32 %v580_v37, 0.0 }
 0x11b   :  { %v648_v49 = vmax.f32 %v444_v41, 0.0  ;;  %v680_v50 = vmax.f32 %v572_v42, 0.0 }
 0x11c   :  { %v1236_v51 = vpack.c.bf16 %v650_v45, %v649_v43  ;;  %v1316_v52 = vpack.c.bf16 %v682_v46, %v681_v44 }
 0x11d   :  { %v1231_v53 = vpack.c.bf16 %v648_v49, %v647_v47  ;;  %v1311_v54 = vpack.c.bf16 %v680_v50, %v679_v48  ;;  %v1457_v55 = vpop.f32.mrb[20].mxu0  ;;  %v1489_v56 = vpop.f32.mrb[20].mxu1 }
 0x11e   :  { %1356 = vst [vmem:[%s1863_s3 + $0x48] sm:$0xff] %v1236_v51   ;;  %1372 = vst [vmem:[%s1863_s3 + $0xc8] sm:$0xff] %v1316_v52   ;;  %v465_v57 = vadd.f32 %v1457_v55, %v1698_v40  ;;  %v593_v58 = vadd.f32 %v1489_v56, %v1698_v40  ;;  %v456_v59 = vpop.f32.mrb[21].mxu0  ;;  %v584_v60 = vpop.f32.mrb[21].mxu1 }
 0x11f   :  { %1355 = vst [vmem:[%s1863_s3 + $0x40] sm:$0xff] %v1231_v53   ;;  %1371 = vst [vmem:[%s1863_s3 + $0xc0] sm:$0xff] %v1311_v54   ;;  %v457_v61 = vadd.f32 %v1698_v40, %v456_v59  ;;  %v585_v62 = vadd.f32 %v1698_v40, %v584_v60  ;;  %v1458_v63 = vpop.f32.mrb[22].mxu0  ;;  %v1490_v0 = vpop.f32.mrb[22].mxu1 }
 0x120   :  { %v468_v1 = vadd.f32 %v1458_v63, %v1698_v40  ;;  %v596_v2 = vadd.f32 %v1490_v0, %v1698_v40  ;;  %v459_v3 = vpop.f32.mrb[23].mxu0  ;;  %v587_v4 = vpop.f32.mrb[23].mxu1  ;;  %v653_v7 = vmax.f32 %v465_v57, 0.0  ;;  %v685_v8 = vmax.f32 %v593_v58, 0.0 }
 0x121   :  { %v460_v5 = vadd.f32 %v1698_v40, %v459_v3  ;;  %v588_v6 = vadd.f32 %v1698_v40, %v587_v4  ;;  %v651_v11 = vmax.f32 %v457_v61, 0.0  ;;  %v683_v12 = vmax.f32 %v585_v62, 0.0 }
 0x122   :  { %v654_v9 = vmax.f32 %v468_v1, 0.0  ;;  %v686_v10 = vmax.f32 %v596_v2, 0.0 }
 0x123   :  { %v652_v13 = vmax.f32 %v460_v5, 0.0  ;;  %v684_v14 = vmax.f32 %v588_v6, 0.0 }
 0x124   :  { %v1246_v15 = vpack.c.bf16 %v654_v9, %v653_v7  ;;  %v1326_v16 = vpack.c.bf16 %v686_v10, %v685_v8 }
 0x125   :  { %v1241_v17 = vpack.c.bf16 %v652_v13, %v651_v11  ;;  %v1321_v18 = vpack.c.bf16 %v684_v14, %v683_v12  ;;  %v1461_v19 = vpop.f32.mrb[24].mxu0  ;;  %v1493_v20 = vpop.f32.mrb[24].mxu1 }
 0x126   :  { %1358 = vst [vmem:[%s1863_s3 + $0x58] sm:$0xff] %v1246_v15   ;;  %1374 = vst [vmem:[%s1863_s3 + $0xd8] sm:$0xff] %v1326_v16   ;;  %v481_v21 = vadd.f32 %v1461_v19, %v1698_v40  ;;  %v609_v22 = vadd.f32 %v1493_v20, %v1698_v40  ;;  %v472_v23 = vpop.f32.mrb[25].mxu0  ;;  %v600_v24 = vpop.f32.mrb[25].mxu1 }
 0x127   :  { %1357 = vst [vmem:[%s1863_s3 + $0x50] sm:$0xff] %v1241_v17   ;;  %1373 = vst [vmem:[%s1863_s3 + $0xd0] sm:$0xff] %v1321_v18   ;;  %v473_v25 = vadd.f32 %v1698_v40, %v472_v23  ;;  %v601_v26 = vadd.f32 %v1698_v40, %v600_v24  ;;  %v1462_v27 = vpop.f32.mrb[26].mxu0  ;;  %v1494_v28 = vpop.f32.mrb[26].mxu1 }
 0x128   :  { %v484_v29 = vadd.f32 %v1462_v27, %v1698_v40  ;;  %v612_v30 = vadd.f32 %v1494_v28, %v1698_v40  ;;  %v475_v31 = vpop.f32.mrb[27].mxu0  ;;  %v603_v32 = vpop.f32.mrb[27].mxu1  ;;  %v657_v35 = vmax.f32 %v481_v21, 0.0  ;;  %v689_v36 = vmax.f32 %v609_v22, 0.0 }
 0x129   :  { %v476_v33 = vadd.f32 %v1698_v40, %v475_v31  ;;  %v604_v34 = vadd.f32 %v1698_v40, %v603_v32  ;;  %v655_v39 = vmax.f32 %v473_v25, 0.0  ;;  %v687_v41 = vmax.f32 %v601_v26, 0.0 }
 0x12a   :  { %v658_v37 = vmax.f32 %v484_v29, 0.0  ;;  %v690_v38 = vmax.f32 %v612_v30, 0.0 }
 0x12b   :  { %v656_v42 = vmax.f32 %v476_v33, 0.0  ;;  %v688_v43 = vmax.f32 %v604_v34, 0.0 }
 0x12c   :  { %v1256_v44 = vpack.c.bf16 %v658_v37, %v657_v35  ;;  %v1336_v45 = vpack.c.bf16 %v690_v38, %v689_v36 }
 0x12d   :  { %v1251_v46 = vpack.c.bf16 %v656_v42, %v655_v39  ;;  %v1331_v47 = vpack.c.bf16 %v688_v43, %v687_v41  ;;  %v1465_v48 = vpop.f32.mrb[28].mxu0  ;;  %v1497_v49 = vpop.f32.mrb[28].mxu1 }
 0x12e   :  { %1360 = vst [vmem:[%s1863_s3 + $0x68] sm:$0xff] %v1256_v44   ;;  %1376 = vst [vmem:[%s1863_s3 + $0xe8] sm:$0xff] %v1336_v45   ;;  %v497_v50 = vadd.f32 %v1465_v48, %v1698_v40  ;;  %v625_v51 = vadd.f32 %v1497_v49, %v1698_v40  ;;  %v488_v52 = vpop.f32.mrb[29].mxu0  ;;  %v616_v53 = vpop.f32.mrb[29].mxu1 }
 0x12f   :  { %1359 = vst [vmem:[%s1863_s3 + $0x60] sm:$0xff] %v1251_v46   ;;  %1375 = vst [vmem:[%s1863_s3 + $0xe0] sm:$0xff] %v1331_v47   ;;  %v489_v54 = vadd.f32 %v1698_v40, %v488_v52  ;;  %v617_v55 = vadd.f32 %v1698_v40, %v616_v53  ;;  %v1466_v56 = vpop.f32.mrb[30].mxu0  ;;  %v1498_v57 = vpop.f32.mrb[30].mxu1 }
 0x130   :  { %v500_v58 = vadd.f32 %v1466_v56, %v1698_v40  ;;  %v628_v59 = vadd.f32 %v1498_v57, %v1698_v40  ;;  %v491_v60 = vpop.f32.mrb[31].mxu0  ;;  %v619_v61 = vpop.f32.mrb[31].mxu1  ;;  %v661_v0 = vmax.f32 %v497_v50, 0.0  ;;  %v693_v1 = vmax.f32 %v625_v51, 0.0 }
 0x131   :  { %v492_v62 = vadd.f32 %v1698_v40, %v491_v60  ;;  %v620_v63 = vadd.f32 %v1698_v40, %v619_v61  ;;  %v659_v4 = vmax.f32 %v489_v54, 0.0  ;;  %v691_v5 = vmax.f32 %v617_v55, 0.0 }
 0x132   :  { %v662_v2 = vmax.f32 %v500_v58, 0.0  ;;  %v694_v3 = vmax.f32 %v628_v59, 0.0 }
 0x133   :  { %v660_v6 = vmax.f32 %v492_v62, 0.0  ;;  %v692_v7 = vmax.f32 %v620_v63, 0.0 }
 0x134   :  { %v1266_v8 = vpack.c.bf16 %v662_v2, %v661_v0  ;;  %v1346_v9 = vpack.c.bf16 %v694_v3, %v693_v1 }
 0x135   :  { %v1261_v10 = vpack.c.bf16 %v660_v6, %v659_v4  ;;  %v1341_v11 = vpack.c.bf16 %v692_v7, %v691_v5 }
 0x136   :  { %1362 = vst [vmem:[%s1863_s3 + $0x78] sm:$0xff] %v1266_v8   ;;  %1378 = vst [vmem:[%s1863_s3 + $0xf8] sm:$0xff] %v1346_v9  }
 0x137   :  { %1361 = vst [vmem:[%s1863_s3 + $0x70] sm:$0xff] %v1261_v10   ;;  %1377 = vst [vmem:[%s1863_s3 + $0xf0] sm:$0xff] %v1341_v11  }

// kernel: model_forward.34
= control target key start
LH: loop header
LB: loop body
LE: loop exit
PB: predicated region body
PF: predicated region fallthrough
CT: control target
= control target key end

     0   :  { %s1317_s1 = inlined_call_operand.vmem [shape: bf16[128,128], index: 1, kind: input, shape index: {}]   ;;  %s1318_s0 = inlined_call_operand.vmem [shape: bf16[512,128], index: 0, kind: input, shape index: {}]   ;;  %s1319_s2 = inlined_call_operand.vmem [shape: f32[1,128], index: 2, kind: input, shape index: {}]   ;;  %s1320_s3 = inlined_call_operand.vmem [shape: f32[512,128], index: 3, kind: output, shape index: {}]  }
   0x1   :  { %v876_v0 = vld [vmem:[%s1317_s1] sm:$0xff]   ;;  %v877_v1 = vld [vmem:[%s1317_s1 + $0x8] sm:$0xff]   ;;  %v878_v2 = vld [vmem:[%s1317_s1 + $0x10] sm:$0xff]  }
   0x2   :  { %780 = vmatprep.subr.bf16.mxu0 %v876_v0  ;;  %860 = vmatprep.subr.bf16.mxu1 %v876_v0  ;;  %v879_v3 = vld [vmem:[%s1317_s1 + $0x18] sm:$0xff]   ;;  %v884_v4 = vld [vmem:[%s1318_s0] sm:$0xff]   ;;  %v881_v7 = vld [vmem:[%s1317_s1 + $0x28] sm:$0xff]  }
   0x3   :  { %781 = vmatpush3.bf16.msra.mxu0 %v876_v0  ;;  %868 = vmatpush3.bf16.msra.mxu1 %v876_v0  ;;  %v885_v5 = vld [vmem:[%s1318_s0 + $0x80] sm:$0xff]   ;;  %v882_v8 = vld [vmem:[%s1317_s1 + $0x30] sm:$0xff]   ;;  %v883_v9 = vld [vmem:[%s1317_s1 + $0x38] sm:$0xff]  }
   0x4   :  { %782 = vmatprep.subr.bf16.mxu0 %v877_v1  ;;  %861 = vmatprep.subr.bf16.mxu1 %v877_v1  ;;  %v880_v6 = vld [vmem:[%s1317_s1 + $0x20] sm:$0xff]   ;;  %v886_v10 = vld [vmem:[%s1318_s0 + $0x8] sm:$0xff]   ;;  %v888_v12 = vld [vmem:[%s1318_s0 + $0x10] sm:$0xff]  }
   0x5   :  { %796 = vmatprep.mubr.bf16.mxu0 %v884_v4  ;;  %828 = vmatprep.mubr.bf16.mxu1 %v885_v5  ;;  %v887_v11 = vld [vmem:[%s1318_s0 + $0x88] sm:$0xff]   ;;  %v889_v13 = vld [vmem:[%s1318_s0 + $0x90] sm:$0xff]   ;;  %v890_v14 = vld [vmem:[%s1318_s0 + $0x18] sm:$0xff]  }
   0x6   :  { %v891_v15 = vld [vmem:[%s1318_s0 + $0x98] sm:$0xff]   ;;  %v892_v16 = vld [vmem:[%s1318_s0 + $0x20] sm:$0xff]   ;;  %v894_v18 = vld [vmem:[%s1318_s0 + $0x28] sm:$0xff]  }
   0x7   :  { %783 = vmatpush3.bf16.msra.mxu0 %v877_v1  ;;  %869 = vmatpush3.bf16.msra.mxu1 %v877_v1  ;;  %v893_v17 = vld [vmem:[%s1318_s0 + $0xa0] sm:$0xff]   ;;  %v895_v19 = vld [vmem:[%s1318_s0 + $0xa8] sm:$0xff]   ;;  %v896_v20 = vld [vmem:[%s1318_s0 + $0x30] sm:$0xff]  }
   0x8   :  { %784 = vmatprep.subr.bf16.mxu0 %v878_v2  ;;  %862 = vmatprep.subr.bf16.mxu1 %v878_v2  ;;  %v897_v21 = vld [vmem:[%s1318_s0 + $0xb0] sm:$0xff]   ;;  %v898_v22 = vld [vmem:[%s1318_s0 + $0x38] sm:$0xff]   ;;  %v900_v24 = vld [vmem:[%s1318_s0 + $0x40] sm:$0xff]  }
   0x9   :  { %v899_v23 = vld [vmem:[%s1318_s0 + $0xb8] sm:$0xff]   ;;  %v901_v25 = vld [vmem:[%s1318_s0 + $0xc0] sm:$0xff]   ;;  %v902_v26 = vld [vmem:[%s1318_s0 + $0x48] sm:$0xff]  }
   0xa   :  { %v903_v27 = vld [vmem:[%s1318_s0 + $0xc8] sm:$0xff]   ;;  %v904_v28 = vld [vmem:[%s1318_s0 + $0x50] sm:$0xff]   ;;  %v906_v30 = vld [vmem:[%s1318_s0 + $0x58] sm:$0xff]  }
   0xb   :  { %785 = vmatpush3.bf16.msra.mxu0 %v878_v2  ;;  %870 = vmatpush3.bf16.msra.mxu1 %v878_v2  ;;  %v905_v29 = vld [vmem:[%s1318_s0 + $0xd0] sm:$0xff]   ;;  %v907_v31 = vld [vmem:[%s1318_s0 + $0xd8] sm:$0xff]   ;;  %v908_v32 = vld [vmem:[%s1318_s0 + $0x60] sm:$0xff]  }
   0xc   :  { %786 = vmatprep.subr.bf16.mxu0 %v879_v3  ;;  %863 = vmatprep.subr.bf16.mxu1 %v879_v3  ;;  %v909_v33 = vld [vmem:[%s1318_s0 + $0xe0] sm:$0xff]   ;;  %v910_v34 = vld [vmem:[%s1318_s0 + $0x68] sm:$0xff]   ;;  %v912_v36 = vld [vmem:[%s1318_s0 + $0x70] sm:$0xff]  }
   0xd   :  { %v911_v35 = vld [vmem:[%s1318_s0 + $0xe8] sm:$0xff]   ;;  %v913_v37 = vld [vmem:[%s1318_s0 + $0xf0] sm:$0xff]   ;;  %v914_v38 = vld [vmem:[%s1318_s0 + $0x78] sm:$0xff]  }
   0xe   :  { %v915_v39 = vld [vmem:[%s1318_s0 + $0xf8] sm:$0xff]   ;;  %v1059_v40 = vld [vmem:[%s1319_s2] ss:$0 sm:$0xff] }
   0xf   :  { %787 = vmatpush3.bf16.msra.mxu0 %v879_v3  ;;  %871 = vmatpush3.bf16.msra.mxu1 %v879_v3 }
  0x10   :  { %788 = vmatprep.subr.bf16.mxu0 %v880_v6  ;;  %864 = vmatprep.subr.bf16.mxu1 %v880_v6 }
  0x13   :  { %789 = vmatpush3.bf16.msra.mxu0 %v880_v6  ;;  %872 = vmatpush3.bf16.msra.mxu1 %v880_v6 }
  0x14   :  { %790 = vmatprep.subr.bf16.mxu0 %v881_v7  ;;  %865 = vmatprep.subr.bf16.mxu1 %v881_v7 }
  0x17   :  { %791 = vmatpush3.bf16.msra.mxu0 %v881_v7  ;;  %873 = vmatpush3.bf16.msra.mxu1 %v881_v7 }
  0x18   :  { %792 = vmatprep.subr.bf16.mxu0 %v882_v8  ;;  %866 = vmatprep.subr.bf16.mxu1 %v882_v8 }
  0x1b   :  { %793 = vmatpush3.bf16.msra.mxu0 %v882_v8  ;;  %874 = vmatpush3.bf16.msra.mxu1 %v882_v8 }
  0x1c   :  { %794 = vmatprep.subr.bf16.mxu0 %v883_v9  ;;  %867 = vmatprep.subr.bf16.mxu1 %v883_v9 }
  0x1f   :  { %795 = vmatpush3.bf16.msra.mxu0 %v883_v9  ;;  %875 = vmatpush3.bf16.msra.mxu1 %v883_v9 }
  0x22   :  { %797 = vmatmul.mubr.bf16.vlgmr.msra.gmra.mrb[0].mxu0 %v886_v10  ;;  %829 = vmatmul.mubr.bf16.vlgmr.msra.gmra.mrb[0].mxu1 %v887_v11 }
  0x23   :  { %800 = vmatprep.mubr.bf16.mxu0 %v888_v12  ;;  %832 = vmatprep.mubr.bf16.mxu1 %v889_v13 }
  0x2a   :  { %801 = vmatmul.mubr.bf16.gmra.mrb[4].mxu0 %v890_v14  ;;  %833 = vmatmul.mubr.bf16.gmra.mrb[4].mxu1 %v891_v15 }
  0x2b   :  { %804 = vmatprep.mubr.bf16.mxu0 %v892_v16  ;;  %836 = vmatprep.mubr.bf16.mxu1 %v893_v17 }
  0x32   :  { %805 = vmatmul.mubr.bf16.gmra.mrb[8].mxu0 %v894_v18  ;;  %837 = vmatmul.mubr.bf16.gmra.mrb[8].mxu1 %v895_v19 }
  0x33   :  { %808 = vmatprep.mubr.bf16.mxu0 %v896_v20  ;;  %840 = vmatprep.mubr.bf16.mxu1 %v897_v21 }
  0x3a   :  { %809 = vmatmul.mubr.bf16.gmra.mrb[12].mxu0 %v898_v22  ;;  %841 = vmatmul.mubr.bf16.gmra.mrb[12].mxu1 %v899_v23 }
  0x3b   :  { %812 = vmatprep.mubr.bf16.mxu0 %v900_v24  ;;  %844 = vmatprep.mubr.bf16.mxu1 %v901_v25 }
  0x42   :  { %813 = vmatmul.mubr.bf16.gmra.mrb[16].mxu0 %v902_v26  ;;  %845 = vmatmul.mubr.bf16.gmra.mrb[16].mxu1 %v903_v27 }
  0x43   :  { %816 = vmatprep.mubr.bf16.mxu0 %v904_v28  ;;  %848 = vmatprep.mubr.bf16.mxu1 %v905_v29 }
  0x4a   :  { %817 = vmatmul.mubr.bf16.gmra.mrb[20].mxu0 %v906_v30  ;;  %849 = vmatmul.mubr.bf16.gmra.mrb[20].mxu1 %v907_v31 }
  0x4b   :  { %820 = vmatprep.mubr.bf16.mxu0 %v908_v32  ;;  %852 = vmatprep.mubr.bf16.mxu1 %v909_v33 }
  0x52   :  { %821 = vmatmul.mubr.bf16.gmra.mrb[24].mxu0 %v910_v34  ;;  %853 = vmatmul.mubr.bf16.gmra.mrb[24].mxu1 %v911_v35 }
  0x53   :  { %824 = vmatprep.mubr.bf16.mxu0 %v912_v36  ;;  %856 = vmatprep.mubr.bf16.mxu1 %v913_v37 }
  0x5a   :  { %825 = vmatmul.mubr.bf16.gmra.mrb[28].mxu0 %v914_v38  ;;  %857 = vmatmul.mubr.bf16.gmra.mrb[28].mxu1 %v915_v39 }
  0xf5   :  { %v798_v41 = vpop.f32.mrb[0].mxu0  ;;  %v830_v42 = vpop.f32.mrb[0].mxu1 }
  0xf6   :  { %v385_v43 = vadd.f32 %v798_v41, %v1059_v40  ;;  %v513_v44 = vadd.f32 %v830_v42, %v1059_v40  ;;  %v376_v45 = vpop.f32.mrb[1].mxu0  ;;  %v504_v46 = vpop.f32.mrb[1].mxu1 }
  0xf7   :  { %v377_v47 = vadd.f32 %v1059_v40, %v376_v45  ;;  %v505_v48 = vadd.f32 %v1059_v40, %v504_v46  ;;  %v799_v49 = vpop.f32.mrb[2].mxu0  ;;  %v831_v50 = vpop.f32.mrb[2].mxu1 }
  0xf8   :  { %633 = vst [vmem:[%s1320_s3 + $0x10] sm:$0xff] %v385_v43  ;;  %665 = vst [vmem:[%s1320_s3 + $0x110] sm:$0xff] %v513_v44  ;;  %v388_v51 = vadd.f32 %v799_v49, %v1059_v40  ;;  %v516_v52 = vadd.f32 %v831_v50, %v1059_v40  ;;  %v379_v53 = vpop.f32.mrb[3].mxu0  ;;  %v507_v54 = vpop.f32.mrb[3].mxu1 }
  0xf9   :  { %631 = vst [vmem:[%s1320_s3] sm:$0xff] %v377_v47  ;;  %663 = vst [vmem:[%s1320_s3 + $0x100] sm:$0xff] %v505_v48  ;;  %v380_v55 = vadd.f32 %v1059_v40, %v379_v53  ;;  %v508_v56 = vadd.f32 %v1059_v40, %v507_v54 }
  0xfa   :  { %634 = vst [vmem:[%s1320_s3 + $0x18] sm:$0xff] %v388_v51  ;;  %666 = vst [vmem:[%s1320_s3 + $0x118] sm:$0xff] %v516_v52 }
  0xfb   :  { %632 = vst [vmem:[%s1320_s3 + $0x8] sm:$0xff] %v380_v55  ;;  %664 = vst [vmem:[%s1320_s3 + $0x108] sm:$0xff] %v508_v56 }
  0xfd   :  { %v802_v57 = vpop.f32.mrb[4].mxu0  ;;  %v834_v58 = vpop.f32.mrb[4].mxu1 }
  0xfe   :  { %v401_v59 = vadd.f32 %v802_v57, %v1059_v40  ;;  %v529_v60 = vadd.f32 %v834_v58, %v1059_v40  ;;  %v392_v61 = vpop.f32.mrb[5].mxu0  ;;  %v520_v62 = vpop.f32.mrb[5].mxu1 }
  0xff   :  { %v393_v63 = vadd.f32 %v1059_v40, %v392_v61  ;;  %v521_v0 = vadd.f32 %v1059_v40, %v520_v62  ;;  %v803_v1 = vpop.f32.mrb[6].mxu0  ;;  %v835_v2 = vpop.f32.mrb[6].mxu1 }
 0x100   :  { %637 = vst [vmem:[%s1320_s3 + $0x30] sm:$0xff] %v401_v59  ;;  %669 = vst [vmem:[%s1320_s3 + $0x130] sm:$0xff] %v529_v60  ;;  %v404_v3 = vadd.f32 %v803_v1, %v1059_v40  ;;  %v532_v4 = vadd.f32 %v835_v2, %v1059_v40  ;;  %v395_v5 = vpop.f32.mrb[7].mxu0  ;;  %v523_v6 = vpop.f32.mrb[7].mxu1 }
 0x101   :  { %635 = vst [vmem:[%s1320_s3 + $0x20] sm:$0xff] %v393_v63  ;;  %667 = vst [vmem:[%s1320_s3 + $0x120] sm:$0xff] %v521_v0  ;;  %v396_v7 = vadd.f32 %v1059_v40, %v395_v5  ;;  %v524_v8 = vadd.f32 %v1059_v40, %v523_v6 }
 0x102   :  { %638 = vst [vmem:[%s1320_s3 + $0x38] sm:$0xff] %v404_v3  ;;  %670 = vst [vmem:[%s1320_s3 + $0x138] sm:$0xff] %v532_v4 }
 0x103   :  { %636 = vst [vmem:[%s1320_s3 + $0x28] sm:$0xff] %v396_v7  ;;  %668 = vst [vmem:[%s1320_s3 + $0x128] sm:$0xff] %v524_v8 }
 0x105   :  { %v806_v9 = vpop.f32.mrb[8].mxu0  ;;  %v838_v10 = vpop.f32.mrb[8].mxu1 }
 0x106   :  { %v417_v11 = vadd.f32 %v806_v9, %v1059_v40  ;;  %v545_v12 = vadd.f32 %v838_v10, %v1059_v40  ;;  %v408_v13 = vpop.f32.mrb[9].mxu0  ;;  %v536_v14 = vpop.f32.mrb[9].mxu1 }
 0x107   :  { %v409_v15 = vadd.f32 %v1059_v40, %v408_v13  ;;  %v537_v16 = vadd.f32 %v1059_v40, %v536_v14  ;;  %v807_v17 = vpop.f32.mrb[10].mxu0  ;;  %v839_v18 = vpop.f32.mrb[10].mxu1 }
 0x108   :  { %641 = vst [vmem:[%s1320_s3 + $0x50] sm:$0xff] %v417_v11  ;;  %673 = vst [vmem:[%s1320_s3 + $0x150] sm:$0xff] %v545_v12  ;;  %v420_v19 = vadd.f32 %v807_v17, %v1059_v40  ;;  %v548_v20 = vadd.f32 %v839_v18, %v1059_v40  ;;  %v411_v21 = vpop.f32.mrb[11].mxu0  ;;  %v539_v22 = vpop.f32.mrb[11].mxu1 }
 0x109   :  { %639 = vst [vmem:[%s1320_s3 + $0x40] sm:$0xff] %v409_v15  ;;  %671 = vst [vmem:[%s1320_s3 + $0x140] sm:$0xff] %v537_v16  ;;  %v412_v23 = vadd.f32 %v1059_v40, %v411_v21  ;;  %v540_v24 = vadd.f32 %v1059_v40, %v539_v22 }
 0x10a   :  { %642 = vst [vmem:[%s1320_s3 + $0x58] sm:$0xff] %v420_v19  ;;  %674 = vst [vmem:[%s1320_s3 + $0x158] sm:$0xff] %v548_v20 }
 0x10b   :  { %640 = vst [vmem:[%s1320_s3 + $0x48] sm:$0xff] %v412_v23  ;;  %672 = vst [vmem:[%s1320_s3 + $0x148] sm:$0xff] %v540_v24 }
 0x10d   :  { %v810_v25 = vpop.f32.mrb[12].mxu0  ;;  %v842_v26 = vpop.f32.mrb[12].mxu1 }
 0x10e   :  { %v433_v27 = vadd.f32 %v810_v25, %v1059_v40  ;;  %v561_v28 = vadd.f32 %v842_v26, %v1059_v40  ;;  %v424_v29 = vpop.f32.mrb[13].mxu0  ;;  %v552_v30 = vpop.f32.mrb[13].mxu1 }
 0x10f   :  { %v425_v31 = vadd.f32 %v1059_v40, %v424_v29  ;;  %v553_v32 = vadd.f32 %v1059_v40, %v552_v30  ;;  %v811_v33 = vpop.f32.mrb[14].mxu0  ;;  %v843_v34 = vpop.f32.mrb[14].mxu1 }
 0x110   :  { %645 = vst [vmem:[%s1320_s3 + $0x70] sm:$0xff] %v433_v27  ;;  %677 = vst [vmem:[%s1320_s3 + $0x170] sm:$0xff] %v561_v28  ;;  %v436_v35 = vadd.f32 %v811_v33, %v1059_v40  ;;  %v564_v36 = vadd.f32 %v843_v34, %v1059_v40  ;;  %v427_v37 = vpop.f32.mrb[15].mxu0  ;;  %v555_v38 = vpop.f32.mrb[15].mxu1 }
 0x111   :  { %643 = vst [vmem:[%s1320_s3 + $0x60] sm:$0xff] %v425_v31  ;;  %675 = vst [vmem:[%s1320_s3 + $0x160] sm:$0xff] %v553_v32  ;;  %v428_v39 = vadd.f32 %v1059_v40, %v427_v37  ;;  %v556_v41 = vadd.f32 %v1059_v40, %v555_v38 }
 0x112   :  { %646 = vst [vmem:[%s1320_s3 + $0x78] sm:$0xff] %v436_v35  ;;  %678 = vst [vmem:[%s1320_s3 + $0x178] sm:$0xff] %v564_v36 }
 0x113   :  { %644 = vst [vmem:[%s1320_s3 + $0x68] sm:$0xff] %v428_v39  ;;  %676 = vst [vmem:[%s1320_s3 + $0x168] sm:$0xff] %v556_v41 }
 0x115   :  { %v814_v42 = vpop.f32.mrb[16].mxu0  ;;  %v846_v43 = vpop.f32.mrb[16].mxu1 }
 0x116   :  { %v449_v44 = vadd.f32 %v814_v42, %v1059_v40  ;;  %v577_v45 = vadd.f32 %v846_v43, %v1059_v40  ;;  %v440_v46 = vpop.f32.mrb[17].mxu0  ;;  %v568_v47 = vpop.f32.mrb[17].mxu1 }
 0x117   :  { %v441_v48 = vadd.f32 %v1059_v40, %v440_v46  ;;  %v569_v49 = vadd.f32 %v1059_v40, %v568_v47  ;;  %v815_v50 = vpop.f32.mrb[18].mxu0  ;;  %v847_v51 = vpop.f32.mrb[18].mxu1 }
 0x118   :  { %649 = vst [vmem:[%s1320_s3 + $0x90] sm:$0xff] %v449_v44  ;;  %681 = vst [vmem:[%s1320_s3 + $0x190] sm:$0xff] %v577_v45  ;;  %v452_v52 = vadd.f32 %v815_v50, %v1059_v40  ;;  %v580_v53 = vadd.f32 %v847_v51, %v1059_v40  ;;  %v443_v54 = vpop.f32.mrb[19].mxu0  ;;  %v571_v55 = vpop.f32.mrb[19].mxu1 }
 0x119   :  { %647 = vst [vmem:[%s1320_s3 + $0x80] sm:$0xff] %v441_v48  ;;  %679 = vst [vmem:[%s1320_s3 + $0x180] sm:$0xff] %v569_v49  ;;  %v444_v56 = vadd.f32 %v1059_v40, %v443_v54  ;;  %v572_v57 = vadd.f32 %v1059_v40, %v571_v55 }
 0x11a   :  { %650 = vst [vmem:[%s1320_s3 + $0x98] sm:$0xff] %v452_v52  ;;  %682 = vst [vmem:[%s1320_s3 + $0x198] sm:$0xff] %v580_v53 }
 0x11b   :  { %648 = vst [vmem:[%s1320_s3 + $0x88] sm:$0xff] %v444_v56  ;;  %680 = vst [vmem:[%s1320_s3 + $0x188] sm:$0xff] %v572_v57 }
 0x11d   :  { %v818_v58 = vpop.f32.mrb[20].mxu0  ;;  %v850_v59 = vpop.f32.mrb[20].mxu1 }
 0x11e   :  { %v465_v60 = vadd.f32 %v818_v58, %v1059_v40  ;;  %v593_v61 = vadd.f32 %v850_v59, %v1059_v40  ;;  %v456_v62 = vpop.f32.mrb[21].mxu0  ;;  %v584_v63 = vpop.f32.mrb[21].mxu1 }
 0x11f   :  { %v457_v0 = vadd.f32 %v1059_v40, %v456_v62  ;;  %v585_v1 = vadd.f32 %v1059_v40, %v584_v63  ;;  %v819_v2 = vpop.f32.mrb[22].mxu0  ;;  %v851_v3 = vpop.f32.mrb[22].mxu1 }
 0x120   :  { %653 = vst [vmem:[%s1320_s3 + $0xb0] sm:$0xff] %v465_v60  ;;  %685 = vst [vmem:[%s1320_s3 + $0x1b0] sm:$0xff] %v593_v61  ;;  %v468_v4 = vadd.f32 %v819_v2, %v1059_v40  ;;  %v596_v5 = vadd.f32 %v851_v3, %v1059_v40  ;;  %v459_v6 = vpop.f32.mrb[23].mxu0  ;;  %v587_v7 = vpop.f32.mrb[23].mxu1 }
 0x121   :  { %651 = vst [vmem:[%s1320_s3 + $0xa0] sm:$0xff] %v457_v0  ;;  %683 = vst [vmem:[%s1320_s3 + $0x1a0] sm:$0xff] %v585_v1  ;;  %v460_v8 = vadd.f32 %v1059_v40, %v459_v6  ;;  %v588_v9 = vadd.f32 %v1059_v40, %v587_v7 }
 0x122   :  { %654 = vst [vmem:[%s1320_s3 + $0xb8] sm:$0xff] %v468_v4  ;;  %686 = vst [vmem:[%s1320_s3 + $0x1b8] sm:$0xff] %v596_v5 }
 0x123   :  { %652 = vst [vmem:[%s1320_s3 + $0xa8] sm:$0xff] %v460_v8  ;;  %684 = vst [vmem:[%s1320_s3 + $0x1a8] sm:$0xff] %v588_v9 }
 0x125   :  { %v822_v10 = vpop.f32.mrb[24].mxu0  ;;  %v854_v11 = vpop.f32.mrb[24].mxu1 }
 0x126   :  { %v481_v12 = vadd.f32 %v822_v10, %v1059_v40  ;;  %v609_v13 = vadd.f32 %v854_v11, %v1059_v40  ;;  %v472_v14 = vpop.f32.mrb[25].mxu0  ;;  %v600_v15 = vpop.f32.mrb[25].mxu1 }
 0x127   :  { %v473_v16 = vadd.f32 %v1059_v40, %v472_v14  ;;  %v601_v17 = vadd.f32 %v1059_v40, %v600_v15  ;;  %v823_v18 = vpop.f32.mrb[26].mxu0  ;;  %v855_v19 = vpop.f32.mrb[26].mxu1 }
 0x128   :  { %657 = vst [vmem:[%s1320_s3 + $0xd0] sm:$0xff] %v481_v12  ;;  %689 = vst [vmem:[%s1320_s3 + $0x1d0] sm:$0xff] %v609_v13  ;;  %v484_v20 = vadd.f32 %v823_v18, %v1059_v40  ;;  %v612_v21 = vadd.f32 %v855_v19, %v1059_v40  ;;  %v475_v22 = vpop.f32.mrb[27].mxu0  ;;  %v603_v23 = vpop.f32.mrb[27].mxu1 }
 0x129   :  { %655 = vst [vmem:[%s1320_s3 + $0xc0] sm:$0xff] %v473_v16  ;;  %687 = vst [vmem:[%s1320_s3 + $0x1c0] sm:$0xff] %v601_v17  ;;  %v476_v24 = vadd.f32 %v1059_v40, %v475_v22  ;;  %v604_v25 = vadd.f32 %v1059_v40, %v603_v23 }
 0x12a   :  { %658 = vst [vmem:[%s1320_s3 + $0xd8] sm:$0xff] %v484_v20  ;;  %690 = vst [vmem:[%s1320_s3 + $0x1d8] sm:$0xff] %v612_v21 }
 0x12b   :  { %656 = vst [vmem:[%s1320_s3 + $0xc8] sm:$0xff] %v476_v24  ;;  %688 = vst [vmem:[%s1320_s3 + $0x1c8] sm:$0xff] %v604_v25 }
 0x12d   :  { %v826_v26 = vpop.f32.mrb[28].mxu0  ;;  %v858_v27 = vpop.f32.mrb[28].mxu1 }
 0x12e   :  { %v497_v28 = vadd.f32 %v826_v26, %v1059_v40  ;;  %v625_v29 = vadd.f32 %v858_v27, %v1059_v40  ;;  %v488_v30 = vpop.f32.mrb[29].mxu0  ;;  %v616_v31 = vpop.f32.mrb[29].mxu1 }
 0x12f   :  { %v489_v32 = vadd.f32 %v1059_v40, %v488_v30  ;;  %v617_v33 = vadd.f32 %v1059_v40, %v616_v31  ;;  %v827_v34 = vpop.f32.mrb[30].mxu0  ;;  %v859_v35 = vpop.f32.mrb[30].mxu1 }
 0x130   :  { %661 = vst [vmem:[%s1320_s3 + $0xf0] sm:$0xff] %v497_v28  ;;  %693 = vst [vmem:[%s1320_s3 + $0x1f0] sm:$0xff] %v625_v29  ;;  %v500_v36 = vadd.f32 %v827_v34, %v1059_v40  ;;  %v628_v37 = vadd.f32 %v859_v35, %v1059_v40  ;;  %v491_v38 = vpop.f32.mrb[31].mxu0  ;;  %v619_v39 = vpop.f32.mrb[31].mxu1 }
 0x131   :  { %659 = vst [vmem:[%s1320_s3 + $0xe0] sm:$0xff] %v489_v32  ;;  %691 = vst [vmem:[%s1320_s3 + $0x1e0] sm:$0xff] %v617_v33  ;;  %v492_v41 = vadd.f32 %v1059_v40, %v491_v38  ;;  %v620_v42 = vadd.f32 %v1059_v40, %v619_v39 }
 0x132   :  { %662 = vst [vmem:[%s1320_s3 + $0xf8] sm:$0xff] %v500_v36  ;;  %694 = vst [vmem:[%s1320_s3 + $0x1f8] sm:$0xff] %v628_v37 }
 0x133   :  { %660 = vst [vmem:[%s1320_s3 + $0xe8] sm:$0xff] %v492_v41  ;;  %692 = vst [vmem:[%s1320_s3 + $0x1e8] sm:$0xff] %v620_v42 }

// kernel: model_forward.36
= control target key start
LH: loop header
LB: loop body
LE: loop exit
PB: predicated region body
PF: predicated region fallthrough
CT: control target
= control target key end

     0   :  { %s618_s1 = inlined_call_operand.vmem [shape: bf16[128,128], index: 1, kind: input, shape index: {}]   ;;  %s619_s0 = inlined_call_operand.vmem [shape: bf16[128,128], index: 0, kind: input, shape index: {}]   ;;  %s620_s2 = inlined_call_operand.vmem [shape: f32[1,128], index: 2, kind: input, shape index: {}]   ;;  %s621_s3 = inlined_call_operand.vmem [shape: bf16[128,128], index: 3, kind: output, shape index: {}]  }
   0x1   :  { %v507_v0 = vld [vmem:[%s618_s1] sm:$0xff]   ;;  %v508_v1 = vld [vmem:[%s618_s1 + $0x8] sm:$0xff]   ;;  %v509_v2 = vld [vmem:[%s618_s1 + $0x10] sm:$0xff]  }
   0x2   :  { %459 = vmatprep.subr.bf16.mxu0 %v507_v0  ;;  %491 = vmatprep.subr.bf16.mxu1 %v507_v0  ;;  %v510_v3 = vld [vmem:[%s618_s1 + $0x18] sm:$0xff]   ;;  %v515_v4 = vld [vmem:[%s619_s0] sm:$0xff]   ;;  %v512_v7 = vld [vmem:[%s618_s1 + $0x28] sm:$0xff]  }
   0x3   :  { %460 = vmatpush3.bf16.msra.mxu0 %v507_v0  ;;  %499 = vmatpush3.bf16.msra.mxu1 %v507_v0  ;;  %v516_v5 = vld [vmem:[%s619_s0 + $0x20] sm:$0xff]   ;;  %v513_v8 = vld [vmem:[%s618_s1 + $0x30] sm:$0xff]   ;;  %v514_v9 = vld [vmem:[%s618_s1 + $0x38] sm:$0xff]  }
   0x4   :  { %461 = vmatprep.subr.bf16.mxu0 %v508_v1  ;;  %492 = vmatprep.subr.bf16.mxu1 %v508_v1  ;;  %v511_v6 = vld [vmem:[%s618_s1 + $0x20] sm:$0xff]   ;;  %v517_v10 = vld [vmem:[%s619_s0 + $0x8] sm:$0xff]   ;;  %v519_v12 = vld [vmem:[%s619_s0 + $0x10] sm:$0xff]  }
   0x5   :  { %475 = vmatprep.mubr.bf16.mxu0 %v515_v4  ;;  %483 = vmatprep.mubr.bf16.mxu1 %v516_v5  ;;  %v518_v11 = vld [vmem:[%s619_s0 + $0x28] sm:$0xff]   ;;  %v520_v13 = vld [vmem:[%s619_s0 + $0x30] sm:$0xff]   ;;  %v521_v14 = vld [vmem:[%s619_s0 + $0x18] sm:$0xff]  }
   0x6   :  { %v522_v15 = vld [vmem:[%s619_s0 + $0x38] sm:$0xff]   ;;  %v347_v16 = vld [vmem:[%s620_s2] ss:$0 sm:$0xff] }
   0x7   :  { %462 = vmatpush3.bf16.msra.mxu0 %v508_v1  ;;  %500 = vmatpush3.bf16.msra.mxu1 %v508_v1 }
   0x8   :  { %463 = vmatprep.subr.bf16.mxu0 %v509_v2  ;;  %493 = vmatprep.subr.bf16.mxu1 %v509_v2 }
   0xb   :  { %464 = vmatpush3.bf16.msra.mxu0 %v509_v2  ;;  %501 = vmatpush3.bf16.msra.mxu1 %v509_v2 }
   0xc   :  { %465 = vmatprep.subr.bf16.mxu0 %v510_v3  ;;  %494 = vmatprep.subr.bf16.mxu1 %v510_v3 }
   0xf   :  { %466 = vmatpush3.bf16.msra.mxu0 %v510_v3  ;;  %502 = vmatpush3.bf16.msra.mxu1 %v510_v3 }
  0x10   :  { %467 = vmatprep.subr.bf16.mxu0 %v511_v6  ;;  %495 = vmatprep.subr.bf16.mxu1 %v511_v6 }
  0x13   :  { %468 = vmatpush3.bf16.msra.mxu0 %v511_v6  ;;  %503 = vmatpush3.bf16.msra.mxu1 %v511_v6 }
  0x14   :  { %469 = vmatprep.subr.bf16.mxu0 %v512_v7  ;;  %496 = vmatprep.subr.bf16.mxu1 %v512_v7 }
  0x17   :  { %470 = vmatpush3.bf16.msra.mxu0 %v512_v7  ;;  %504 = vmatpush3.bf16.msra.mxu1 %v512_v7 }
  0x18   :  { %471 = vmatprep.subr.bf16.mxu0 %v513_v8  ;;  %497 = vmatprep.subr.bf16.mxu1 %v513_v8 }
  0x1b   :  { %472 = vmatpush3.bf16.msra.mxu0 %v513_v8  ;;  %505 = vmatpush3.bf16.msra.mxu1 %v513_v8 }
  0x1c   :  { %473 = vmatprep.subr.bf16.mxu0 %v514_v9  ;;  %498 = vmatprep.subr.bf16.mxu1 %v514_v9 }
  0x1f   :  { %474 = vmatpush3.bf16.msra.mxu0 %v514_v9  ;;  %506 = vmatpush3.bf16.msra.mxu1 %v514_v9 }
  0x22   :  { %476 = vmatmul.mubr.bf16.vlgmr.msra.gmra.mrb[0].mxu0 %v517_v10  ;;  %484 = vmatmul.mubr.bf16.vlgmr.msra.gmra.mrb[0].mxu1 %v518_v11 }
  0x23   :  { %479 = vmatprep.mubr.bf16.mxu0 %v519_v12  ;;  %487 = vmatprep.mubr.bf16.mxu1 %v520_v13 }
  0x2a   :  { %480 = vmatmul.mubr.bf16.gmra.mrb[4].mxu0 %v521_v14  ;;  %488 = vmatmul.mubr.bf16.gmra.mrb[4].mxu1 %v522_v15 }
  0xf5   :  { %v477_v17 = vpop.f32.mrb[0].mxu0  ;;  %v485_v18 = vpop.f32.mrb[0].mxu1 }
  0xf6   :  { %v193_v19 = vadd.f32 %v477_v17, %v347_v16  ;;  %v225_v20 = vadd.f32 %v485_v18, %v347_v16  ;;  %v184_v21 = vpop.f32.mrb[1].mxu0  ;;  %v216_v22 = vpop.f32.mrb[1].mxu1 }
  0xf7   :  { %v185_v23 = vadd.f32 %v347_v16, %v184_v21  ;;  %v217_v24 = vadd.f32 %v347_v16, %v216_v22  ;;  %v478_v25 = vpop.f32.mrb[2].mxu0  ;;  %v486_v26 = vpop.f32.mrb[2].mxu1 }
  0xf8   :  { %v196_v27 = vadd.f32 %v478_v25, %v347_v16  ;;  %v228_v28 = vadd.f32 %v486_v26, %v347_v16  ;;  %v187_v29 = vpop.f32.mrb[3].mxu0  ;;  %v219_v30 = vpop.f32.mrb[3].mxu1  ;;  %v249_v33 = vmax.f32 %v193_v19, 0.0  ;;  %v257_v34 = vmax.f32 %v225_v20, 0.0 }
  0xf9   :  { %v188_v31 = vadd.f32 %v347_v16, %v187_v29  ;;  %v220_v32 = vadd.f32 %v347_v16, %v219_v30  ;;  %v247_v37 = vmax.f32 %v185_v23, 0.0  ;;  %v255_v38 = vmax.f32 %v217_v24, 0.0 }
  0xfa   :  { %v250_v35 = vmax.f32 %v196_v27, 0.0  ;;  %v258_v36 = vmax.f32 %v228_v28, 0.0 }
  0xfb   :  { %v248_v39 = vmax.f32 %v188_v31, 0.0  ;;  %v256_v40 = vmax.f32 %v220_v32, 0.0 }
  0xfc   :  { %v404_v41 = vpack.c.bf16 %v250_v35, %v249_v33  ;;  %v424_v42 = vpack.c.bf16 %v258_v36, %v257_v34 }
  0xfd   :  { %v399_v43 = vpack.c.bf16 %v248_v39, %v247_v37  ;;  %v419_v44 = vpack.c.bf16 %v256_v40, %v255_v38  ;;  %v481_v45 = vpop.f32.mrb[4].mxu0  ;;  %v489_v46 = vpop.f32.mrb[4].mxu1 }
  0xfe   :  { %436 = vst [vmem:[%s621_s3 + $0x8] sm:$0xff] %v404_v41   ;;  %440 = vst [vmem:[%s621_s3 + $0x28] sm:$0xff] %v424_v42   ;;  %v209_v47 = vadd.f32 %v481_v45, %v347_v16  ;;  %v241_v48 = vadd.f32 %v489_v46, %v347_v16  ;;  %v200_v49 = vpop.f32.mrb[5].mxu0  ;;  %v232_v50 = vpop.f32.mrb[5].mxu1 }
  0xff   :  { %400 = vst [vmem:[%s621_s3] sm:$0xff] %v399_v43   ;;  %439 = vst [vmem:[%s621_s3 + $0x20] sm:$0xff] %v419_v44   ;;  %v201_v51 = vadd.f32 %v347_v16, %v200_v49  ;;  %v233_v52 = vadd.f32 %v347_v16, %v232_v50  ;;  %v482_v53 = vpop.f32.mrb[6].mxu0  ;;  %v490_v54 = vpop.f32.mrb[6].mxu1 }
 0x100   :  { %v212_v55 = vadd.f32 %v482_v53, %v347_v16  ;;  %v244_v56 = vadd.f32 %v490_v54, %v347_v16  ;;  %v203_v57 = vpop.f32.mrb[7].mxu0  ;;  %v235_v58 = vpop.f32.mrb[7].mxu1  ;;  %v253_v61 = vmax.f32 %v209_v47, 0.0  ;;  %v261_v62 = vmax.f32 %v241_v48, 0.0 }
 0x101   :  { %v204_v59 = vadd.f32 %v347_v16, %v203_v57  ;;  %v236_v60 = vadd.f32 %v347_v16, %v235_v58  ;;  %v251_v1 = vmax.f32 %v201_v51, 0.0  ;;  %v259_v2 = vmax.f32 %v233_v52, 0.0 }
 0x102   :  { %v254_v63 = vmax.f32 %v212_v55, 0.0  ;;  %v262_v0 = vmax.f32 %v244_v56, 0.0 }
 0x103   :  { %v252_v3 = vmax.f32 %v204_v59, 0.0  ;;  %v260_v4 = vmax.f32 %v236_v60, 0.0 }
 0x104   :  { %v414_v5 = vpack.c.bf16 %v254_v63, %v253_v61  ;;  %v434_v6 = vpack.c.bf16 %v262_v0, %v261_v62 }
 0x105   :  { %v409_v7 = vpack.c.bf16 %v252_v3, %v251_v1  ;;  %v429_v8 = vpack.c.bf16 %v260_v4, %v259_v2 }
 0x106   :  { %438 = vst [vmem:[%s621_s3 + $0x18] sm:$0xff] %v414_v5   ;;  %442 = vst [vmem:[%s621_s3 + $0x38] sm:$0xff] %v434_v6  }
 0x107   :  { %437 = vst [vmem:[%s621_s3 + $0x10] sm:$0xff] %v409_v7   ;;  %441 = vst [vmem:[%s621_s3 + $0x30] sm:$0xff] %v429_v8  }

// kernel: model_forward.37
= control target key start
LH: loop header
LB: loop body
LE: loop exit
PB: predicated region body
PF: predicated region fallthrough
CT: control target
= control target key end

     0   :  { %s701_s1 = inlined_call_operand.vmem [shape: bf16[256,128], index: 1, kind: input, shape index: {}]   ;;  %s702_s0 = inlined_call_operand.vmem [shape: bf16[128,256], index: 0, kind: input, shape index: {}]   ;;  %s703_s2 = inlined_call_operand.vmem [shape: f32[1,128], index: 2, kind: input, shape index: {}]   ;;  %s704_s3 = inlined_call_operand.vmem [shape: f32[128,128], index: 3, kind: output, shape index: {}]  }
   0x1   :  { %v476_v0 = vld [vmem:[%s701_s1 + $0x40] sm:$0xff]   ;;  %v478_v2 = vld [vmem:[%s701_s1 + $0x48] sm:$0xff]   ;;  %v480_v4 = vld [vmem:[%s701_s1 + $0x50] sm:$0xff]  }
   0x2   :  { %v477_v1 = vld [vmem:[%s701_s1] sm:$0xff]   ;;  %396 = vmatprep.subr.bf16.mxu0 %v476_v0  ;;  %460 = vmatprep.subr.bf16.mxu1 %v476_v0  ;;  %v479_v3 = vld [vmem:[%s701_s1 + $0x8] sm:$0xff]   ;;  %v481_v5 = vld [vmem:[%s701_s1 + $0x10] sm:$0xff]  }
   0x3   :  { %397 = vmatpush3.bf16.msra.mxu0 %v477_v1  ;;  %468 = vmatpush3.bf16.msra.mxu1 %v477_v1  ;;  %v482_v6 = vld [vmem:[%s701_s1 + $0x58] sm:$0xff]   ;;  %v484_v8 = vld [vmem:[%s701_s1 + $0x60] sm:$0xff]   ;;  %v486_v10 = vld [vmem:[%s701_s1 + $0x68] sm:$0xff]  }
   0x4   :  { %398 = vmatprep.subr.bf16.mxu0 %v478_v2  ;;  %461 = vmatprep.subr.bf16.mxu1 %v478_v2  ;;  %v483_v7 = vld [vmem:[%s701_s1 + $0x18] sm:$0xff]   ;;  %v485_v9 = vld [vmem:[%s701_s1 + $0x20] sm:$0xff]   ;;  %v487_v13 = vld [vmem:[%s701_s1 + $0x28] sm:$0xff]  }
   0x5   :  { %v494_v11 = vld [vmem:[%s702_s0 + $0x4] ss:$8 sps:$4 sm:$0xff]   ;;  %v488_v14 = vld [vmem:[%s701_s1 + $0x70] sm:$0xff]   ;;  %v490_v16 = vld [vmem:[%s701_s1 + $0x78] sm:$0xff]  }
   0x6   :  { %v497_v12 = vld [vmem:[%s702_s0 + $0x44] ss:$8 sps:$4 sm:$0xff]   ;;  %278 = vmatprep.mubr.bf16.mxu0 %v494_v11  ;;  %v489_v15 = vld [vmem:[%s701_s1 + $0x30] sm:$0xff]   ;;  %v491_v17 = vld [vmem:[%s701_s1 + $0x38] sm:$0xff]  }
   0x7   :  { %399 = vmatpush3.bf16.msra.mxu0 %v479_v3  ;;  %469 = vmatpush3.bf16.msra.mxu1 %v479_v3  ;;  %v492_v18 = vld [vmem:[%s702_s0] ss:$8 sps:$4 sm:$0xff]   ;;  %v498_v20 = vld [vmem:[%s702_s0 + $0x14] ss:$8 sps:$4 sm:$0xff]   ;;  %v502_v22 = vld [vmem:[%s702_s0 + $0x10] ss:$8 sps:$4 sm:$0xff]  }
   0x8   :  { %400 = vmatprep.subr.bf16.mxu0 %v480_v4  ;;  %462 = vmatprep.subr.bf16.mxu1 %v480_v4  ;;  %v495_v19 = vld [vmem:[%s702_s0 + $0x40] ss:$8 sps:$4 sm:$0xff]   ;;  %v500_v21 = vld [vmem:[%s702_s0 + $0x54] ss:$8 sps:$4 sm:$0xff]   ;;  %v503_v23 = vld [vmem:[%s702_s0 + $0x50] ss:$8 sps:$4 sm:$0xff]  }
   0x9   :  { %310 = vmatprep.mubr.bf16.mxu1 %v497_v12  ;;  %v504_v24 = vld [vmem:[%s702_s0 + $0x24] ss:$8 sps:$4 sm:$0xff]   ;;  %v508_v26 = vld [vmem:[%s702_s0 + $0x20] ss:$8 sps:$4 sm:$0xff]   ;;  %v510_v28 = vld [vmem:[%s702_s0 + $0x34] ss:$8 sps:$4 sm:$0xff]  }
   0xa   :  { %v506_v25 = vld [vmem:[%s702_s0 + $0x64] ss:$8 sps:$4 sm:$0xff]   ;;  %v509_v27 = vld [vmem:[%s702_s0 + $0x60] ss:$8 sps:$4 sm:$0xff]   ;;  %v512_v29 = vld [vmem:[%s702_s0 + $0x74] ss:$8 sps:$4 sm:$0xff]  }
   0xb   :  { %401 = vmatpush3.bf16.msra.mxu0 %v481_v5  ;;  %470 = vmatpush3.bf16.msra.mxu1 %v481_v5  ;;  %v514_v30 = vld [vmem:[%s702_s0 + $0x30] ss:$8 sps:$4 sm:$0xff]   ;;  %v635_v34 = vld [vmem:[%s703_s2] ss:$0 sm:$0xff] }
   0xc   :  { %402 = vmatprep.subr.bf16.mxu0 %v482_v6  ;;  %463 = vmatprep.subr.bf16.mxu1 %v482_v6  ;;  %v515_v31 = vld [vmem:[%s702_s0 + $0x70] ss:$8 sps:$4 sm:$0xff]  }
   0xf   :  { %403 = vmatpush3.bf16.msra.mxu0 %v483_v7  ;;  %471 = vmatpush3.bf16.msra.mxu1 %v483_v7 }
  0x10   :  { %404 = vmatprep.subr.bf16.mxu0 %v484_v8  ;;  %464 = vmatprep.subr.bf16.mxu1 %v484_v8 }
  0x13   :  { %405 = vmatpush3.bf16.msra.mxu0 %v485_v9  ;;  %472 = vmatpush3.bf16.msra.mxu1 %v485_v9 }
  0x14   :  { %406 = vmatprep.subr.bf16.mxu0 %v486_v10  ;;  %465 = vmatprep.subr.bf16.mxu1 %v486_v10 }
  0x17   :  { %407 = vmatpush3.bf16.msra.mxu0 %v487_v13  ;;  %473 = vmatpush3.bf16.msra.mxu1 %v487_v13 }
  0x18   :  { %408 = vmatprep.subr.bf16.mxu0 %v488_v14  ;;  %466 = vmatprep.subr.bf16.mxu1 %v488_v14 }
  0x1b   :  { %409 = vmatpush3.bf16.msra.mxu0 %v489_v15  ;;  %474 = vmatpush3.bf16.msra.mxu1 %v489_v15 }
  0x1c   :  { %410 = vmatprep.subr.bf16.mxu0 %v490_v16  ;;  %467 = vmatprep.subr.bf16.mxu1 %v490_v16 }
  0x1f   :  { %411 = vmatpush3.bf16.msra.mxu0 %v491_v17  ;;  %475 = vmatpush3.bf16.msra.mxu1 %v491_v17 }
  0x22   :  { %279 = vmatmul.mubr.bf16.vlgmr.msra.gmra.mrb[0].mxu0 %v492_v18  ;;  %311 = vmatmul.mubr.bf16.vlgmr.msra.gmra.mrb[0].mxu1 %v495_v19 }
  0x23   :  { %286 = vmatprep.mubr.bf16.mxu0 %v498_v20  ;;  %318 = vmatprep.mubr.bf16.mxu1 %v500_v21 }
  0x2a   :  { %287 = vmatmul.mubr.bf16.gmra.mrb[4].mxu0 %v502_v22  ;;  %319 = vmatmul.mubr.bf16.gmra.mrb[4].mxu1 %v503_v23 }
  0x2b   :  { %294 = vmatprep.mubr.bf16.mxu0 %v504_v24  ;;  %326 = vmatprep.mubr.bf16.mxu1 %v506_v25 }
  0x32   :  { %295 = vmatmul.mubr.bf16.gmra.mrb[8].mxu0 %v508_v26  ;;  %327 = vmatmul.mubr.bf16.gmra.mrb[8].mxu1 %v509_v27 }
  0x33   :  { %302 = vmatprep.mubr.bf16.mxu0 %v510_v28  ;;  %334 = vmatprep.mubr.bf16.mxu1 %v512_v29 }
  0x3a   :  { %303 = vmatmul.mubr.bf16.gmra.mrb[12].mxu0 %v514_v30  ;;  %335 = vmatmul.mubr.bf16.gmra.mrb[12].mxu1 %v515_v31 }
  0xf5   :  { %v412_v32 = vpop.f32.mrb[0].mxu0  ;;  %v436_v33 = vpop.f32.mrb[0].mxu1 }
  0xf6   :  { %v413_v35 = vpop.f32.mrb[1].mxu0  ;;  %v437_v36 = vpop.f32.mrb[1].mxu1 }
  0xf7   :  { %v414_v37 = vadd.f32 %v413_v35, %v412_v32  ;;  %v438_v38 = vadd.f32 %v437_v36, %v436_v33  ;;  %v415_v39 = vpop.f32.mrb[2].mxu0  ;;  %v439_v40 = vpop.f32.mrb[2].mxu1 }
  0xf8   :  { %v416_v41 = vpop.f32.mrb[3].mxu0  ;;  %v440_v42 = vpop.f32.mrb[3].mxu1 }
  0xf9   :  { %v281_v43 = vadd.f32 %v414_v37, %v635_v34  ;;  %v313_v44 = vadd.f32 %v438_v38, %v635_v34  ;;  %v417_v45 = vadd.f32 %v416_v41, %v415_v39  ;;  %v441_v46 = vadd.f32 %v440_v42, %v439_v40 }
  0xfb   :  { %343 = vst [vmem:[%s704_s3] sm:$0xff] %v281_v43  ;;  %351 = vst [vmem:[%s704_s3 + $0x40] sm:$0xff] %v313_v44  ;;  %v284_v47 = vadd.f32 %v417_v45, %v635_v34  ;;  %v316_v48 = vadd.f32 %v441_v46, %v635_v34 }
  0xfd   :  { %344 = vst [vmem:[%s704_s3 + $0x8] sm:$0xff] %v284_v47  ;;  %352 = vst [vmem:[%s704_s3 + $0x48] sm:$0xff] %v316_v48  ;;  %v418_v49 = vpop.f32.mrb[4].mxu0  ;;  %v442_v50 = vpop.f32.mrb[4].mxu1 }
  0xfe   :  { %v419_v51 = vpop.f32.mrb[5].mxu0  ;;  %v443_v52 = vpop.f32.mrb[5].mxu1 }
  0xff   :  { %v420_v53 = vadd.f32 %v419_v51, %v418_v49  ;;  %v444_v54 = vadd.f32 %v443_v52, %v442_v50  ;;  %v421_v55 = vpop.f32.mrb[6].mxu0  ;;  %v445_v56 = vpop.f32.mrb[6].mxu1 }
 0x100   :  { %v422_v57 = vpop.f32.mrb[7].mxu0  ;;  %v446_v58 = vpop.f32.mrb[7].mxu1 }
 0x101   :  { %v289_v59 = vadd.f32 %v420_v53, %v635_v34  ;;  %v321_v60 = vadd.f32 %v444_v54, %v635_v34  ;;  %v423_v61 = vadd.f32 %v422_v57, %v421_v55  ;;  %v447_v62 = vadd.f32 %v446_v58, %v445_v56 }
 0x103   :  { %345 = vst [vmem:[%s704_s3 + $0x10] sm:$0xff] %v289_v59  ;;  %353 = vst [vmem:[%s704_s3 + $0x50] sm:$0xff] %v321_v60  ;;  %v292_v63 = vadd.f32 %v423_v61, %v635_v34  ;;  %v324_v0 = vadd.f32 %v447_v62, %v635_v34 }
 0x105   :  { %346 = vst [vmem:[%s704_s3 + $0x18] sm:$0xff] %v292_v63  ;;  %354 = vst [vmem:[%s704_s3 + $0x58] sm:$0xff] %v324_v0  ;;  %v424_v1 = vpop.f32.mrb[8].mxu0  ;;  %v448_v2 = vpop.f32.mrb[8].mxu1 }
 0x106   :  { %v425_v3 = vpop.f32.mrb[9].mxu0  ;;  %v449_v4 = vpop.f32.mrb[9].mxu1 }
 0x107   :  { %v426_v5 = vadd.f32 %v425_v3, %v424_v1  ;;  %v450_v6 = vadd.f32 %v449_v4, %v448_v2  ;;  %v427_v7 = vpop.f32.mrb[10].mxu0  ;;  %v451_v8 = vpop.f32.mrb[10].mxu1 }
 0x108   :  { %v428_v9 = vpop.f32.mrb[11].mxu0  ;;  %v452_v10 = vpop.f32.mrb[11].mxu1 }
 0x109   :  { %v297_v11 = vadd.f32 %v426_v5, %v635_v34  ;;  %v329_v12 = vadd.f32 %v450_v6, %v635_v34  ;;  %v429_v13 = vadd.f32 %v428_v9, %v427_v7  ;;  %v453_v14 = vadd.f32 %v452_v10, %v451_v8 }
 0x10b   :  { %347 = vst [vmem:[%s704_s3 + $0x20] sm:$0xff] %v297_v11  ;;  %355 = vst [vmem:[%s704_s3 + $0x60] sm:$0xff] %v329_v12  ;;  %v300_v15 = vadd.f32 %v429_v13, %v635_v34  ;;  %v332_v16 = vadd.f32 %v453_v14, %v635_v34 }
 0x10d   :  { %348 = vst [vmem:[%s704_s3 + $0x28] sm:$0xff] %v300_v15  ;;  %356 = vst [vmem:[%s704_s3 + $0x68] sm:$0xff] %v332_v16  ;;  %v430_v17 = vpop.f32.mrb[12].mxu0  ;;  %v454_v18 = vpop.f32.mrb[12].mxu1 }
 0x10e   :  { %v431_v19 = vpop.f32.mrb[13].mxu0  ;;  %v455_v20 = vpop.f32.mrb[13].mxu1 }
 0x10f   :  { %v432_v21 = vadd.f32 %v431_v19, %v430_v17  ;;  %v456_v22 = vadd.f32 %v455_v20, %v454_v18  ;;  %v433_v23 = vpop.f32.mrb[14].mxu0  ;;  %v457_v24 = vpop.f32.mrb[14].mxu1 }
 0x110   :  { %v434_v25 = vpop.f32.mrb[15].mxu0  ;;  %v458_v26 = vpop.f32.mrb[15].mxu1 }
 0x111   :  { %v305_v27 = vadd.f32 %v432_v21, %v635_v34  ;;  %v337_v28 = vadd.f32 %v456_v22, %v635_v34  ;;  %v435_v29 = vadd.f32 %v434_v25, %v433_v23  ;;  %v459_v30 = vadd.f32 %v458_v26, %v457_v24 }
 0x113   :  { %349 = vst [vmem:[%s704_s3 + $0x30] sm:$0xff] %v305_v27  ;;  %357 = vst [vmem:[%s704_s3 + $0x70] sm:$0xff] %v337_v28  ;;  %v308_v31 = vadd.f32 %v435_v29, %v635_v34  ;;  %v340_v32 = vadd.f32 %v459_v30, %v635_v34 }
 0x115   :  { %350 = vst [vmem:[%s704_s3 + $0x38] sm:$0xff] %v308_v31  ;;  %358 = vst [vmem:[%s704_s3 + $0x78] sm:$0xff] %v340_v32 }

// kernel: model_forward.38
= control target key start
LH: loop header
LB: loop body
LE: loop exit
PB: predicated region body
PF: predicated region fallthrough
CT: control target
= control target key end

     0   :  { %s483_s1 = inlined_call_operand.vmem [shape: bf16[128,128], index: 1, kind: input, shape index: {}]   ;;  %s484_s0 = inlined_call_operand.vmem [shape: bf16[128,128], index: 0, kind: input, shape index: {}]   ;;  %s485_s2 = inlined_call_operand.vmem [shape: f32[1,128], index: 2, kind: input, shape index: {}]   ;;  %s486_s3 = inlined_call_operand.vmem [shape: f32[128,128], index: 3, kind: output, shape index: {}]  }
   0x1   :  { %v348_v0 = vld [vmem:[%s483_s1] sm:$0xff]   ;;  %v349_v1 = vld [vmem:[%s483_s1 + $0x8] sm:$0xff]   ;;  %v350_v2 = vld [vmem:[%s483_s1 + $0x10] sm:$0xff]  }
   0x2   :  { %300 = vmatprep.subr.bf16.mxu0 %v348_v0  ;;  %332 = vmatprep.subr.bf16.mxu1 %v348_v0  ;;  %v351_v3 = vld [vmem:[%s483_s1 + $0x18] sm:$0xff]   ;;  %v356_v4 = vld [vmem:[%s484_s0] sm:$0xff]   ;;  %v353_v7 = vld [vmem:[%s483_s1 + $0x28] sm:$0xff]  }
   0x3   :  { %301 = vmatpush3.bf16.msra.mxu0 %v348_v0  ;;  %340 = vmatpush3.bf16.msra.mxu1 %v348_v0  ;;  %v357_v5 = vld [vmem:[%s484_s0 + $0x20] sm:$0xff]   ;;  %v354_v8 = vld [vmem:[%s483_s1 + $0x30] sm:$0xff]   ;;  %v355_v9 = vld [vmem:[%s483_s1 + $0x38] sm:$0xff]  }
   0x4   :  { %302 = vmatprep.subr.bf16.mxu0 %v349_v1  ;;  %333 = vmatprep.subr.bf16.mxu1 %v349_v1  ;;  %v352_v6 = vld [vmem:[%s483_s1 + $0x20] sm:$0xff]   ;;  %v358_v10 = vld [vmem:[%s484_s0 + $0x8] sm:$0xff]   ;;  %v360_v12 = vld [vmem:[%s484_s0 + $0x10] sm:$0xff]  }
   0x5   :  { %316 = vmatprep.mubr.bf16.mxu0 %v356_v4  ;;  %324 = vmatprep.mubr.bf16.mxu1 %v357_v5  ;;  %v359_v11 = vld [vmem:[%s484_s0 + $0x28] sm:$0xff]   ;;  %v361_v13 = vld [vmem:[%s484_s0 + $0x30] sm:$0xff]   ;;  %v362_v14 = vld [vmem:[%s484_s0 + $0x18] sm:$0xff]  }
   0x6   :  { %v363_v15 = vld [vmem:[%s484_s0 + $0x38] sm:$0xff]   ;;  %v267_v16 = vld [vmem:[%s485_s2] ss:$0 sm:$0xff] }
   0x7   :  { %303 = vmatpush3.bf16.msra.mxu0 %v349_v1  ;;  %341 = vmatpush3.bf16.msra.mxu1 %v349_v1 }
   0x8   :  { %304 = vmatprep.subr.bf16.mxu0 %v350_v2  ;;  %334 = vmatprep.subr.bf16.mxu1 %v350_v2 }
   0xb   :  { %305 = vmatpush3.bf16.msra.mxu0 %v350_v2  ;;  %342 = vmatpush3.bf16.msra.mxu1 %v350_v2 }
   0xc   :  { %306 = vmatprep.subr.bf16.mxu0 %v351_v3  ;;  %335 = vmatprep.subr.bf16.mxu1 %v351_v3 }
   0xf   :  { %307 = vmatpush3.bf16.msra.mxu0 %v351_v3  ;;  %343 = vmatpush3.bf16.msra.mxu1 %v351_v3 }
  0x10   :  { %308 = vmatprep.subr.bf16.mxu0 %v352_v6  ;;  %336 = vmatprep.subr.bf16.mxu1 %v352_v6 }
  0x13   :  { %309 = vmatpush3.bf16.msra.mxu0 %v352_v6  ;;  %344 = vmatpush3.bf16.msra.mxu1 %v352_v6 }
  0x14   :  { %310 = vmatprep.subr.bf16.mxu0 %v353_v7  ;;  %337 = vmatprep.subr.bf16.mxu1 %v353_v7 }
  0x17   :  { %311 = vmatpush3.bf16.msra.mxu0 %v353_v7  ;;  %345 = vmatpush3.bf16.msra.mxu1 %v353_v7 }
  0x18   :  { %312 = vmatprep.subr.bf16.mxu0 %v354_v8  ;;  %338 = vmatprep.subr.bf16.mxu1 %v354_v8 }
  0x1b   :  { %313 = vmatpush3.bf16.msra.mxu0 %v354_v8  ;;  %346 = vmatpush3.bf16.msra.mxu1 %v354_v8 }
  0x1c   :  { %314 = vmatprep.subr.bf16.mxu0 %v355_v9  ;;  %339 = vmatprep.subr.bf16.mxu1 %v355_v9 }
  0x1f   :  { %315 = vmatpush3.bf16.msra.mxu0 %v355_v9  ;;  %347 = vmatpush3.bf16.msra.mxu1 %v355_v9 }
  0x22   :  { %317 = vmatmul.mubr.bf16.vlgmr.msra.gmra.mrb[0].mxu0 %v358_v10  ;;  %325 = vmatmul.mubr.bf16.vlgmr.msra.gmra.mrb[0].mxu1 %v359_v11 }
  0x23   :  { %320 = vmatprep.mubr.bf16.mxu0 %v360_v12  ;;  %328 = vmatprep.mubr.bf16.mxu1 %v361_v13 }
  0x2a   :  { %321 = vmatmul.mubr.bf16.gmra.mrb[4].mxu0 %v362_v14  ;;  %329 = vmatmul.mubr.bf16.gmra.mrb[4].mxu1 %v363_v15 }
  0xf5   :  { %v318_v17 = vpop.f32.mrb[0].mxu0  ;;  %v326_v18 = vpop.f32.mrb[0].mxu1 }
  0xf6   :  { %v193_v19 = vadd.f32 %v318_v17, %v267_v16  ;;  %v225_v20 = vadd.f32 %v326_v18, %v267_v16  ;;  %v184_v21 = vpop.f32.mrb[1].mxu0  ;;  %v216_v22 = vpop.f32.mrb[1].mxu1 }
  0xf7   :  { %v185_v23 = vadd.f32 %v267_v16, %v184_v21  ;;  %v217_v24 = vadd.f32 %v267_v16, %v216_v22  ;;  %v319_v25 = vpop.f32.mrb[2].mxu0  ;;  %v327_v26 = vpop.f32.mrb[2].mxu1 }
  0xf8   :  { %249 = vst [vmem:[%s486_s3 + $0x10] sm:$0xff] %v193_v19  ;;  %257 = vst [vmem:[%s486_s3 + $0x50] sm:$0xff] %v225_v20  ;;  %v196_v27 = vadd.f32 %v319_v25, %v267_v16  ;;  %v228_v28 = vadd.f32 %v327_v26, %v267_v16  ;;  %v187_v29 = vpop.f32.mrb[3].mxu0  ;;  %v219_v30 = vpop.f32.mrb[3].mxu1 }
  0xf9   :  { %247 = vst [vmem:[%s486_s3] sm:$0xff] %v185_v23  ;;  %255 = vst [vmem:[%s486_s3 + $0x40] sm:$0xff] %v217_v24  ;;  %v188_v31 = vadd.f32 %v267_v16, %v187_v29  ;;  %v220_v32 = vadd.f32 %v267_v16, %v219_v30 }
  0xfa   :  { %250 = vst [vmem:[%s486_s3 + $0x18] sm:$0xff] %v196_v27  ;;  %258 = vst [vmem:[%s486_s3 + $0x58] sm:$0xff] %v228_v28 }
  0xfb   :  { %248 = vst [vmem:[%s486_s3 + $0x8] sm:$0xff] %v188_v31  ;;  %256 = vst [vmem:[%s486_s3 + $0x48] sm:$0xff] %v220_v32 }
  0xfd   :  { %v322_v33 = vpop.f32.mrb[4].mxu0  ;;  %v330_v34 = vpop.f32.mrb[4].mxu1 }
  0xfe   :  { %v209_v35 = vadd.f32 %v322_v33, %v267_v16  ;;  %v241_v36 = vadd.f32 %v330_v34, %v267_v16  ;;  %v200_v37 = vpop.f32.mrb[5].mxu0  ;;  %v232_v38 = vpop.f32.mrb[5].mxu1 }
  0xff   :  { %v201_v39 = vadd.f32 %v267_v16, %v200_v37  ;;  %v233_v40 = vadd.f32 %v267_v16, %v232_v38  ;;  %v323_v41 = vpop.f32.mrb[6].mxu0  ;;  %v331_v42 = vpop.f32.mrb[6].mxu1 }
 0x100   :  { %253 = vst [vmem:[%s486_s3 + $0x30] sm:$0xff] %v209_v35  ;;  %261 = vst [vmem:[%s486_s3 + $0x70] sm:$0xff] %v241_v36  ;;  %v212_v43 = vadd.f32 %v323_v41, %v267_v16  ;;  %v244_v44 = vadd.f32 %v331_v42, %v267_v16  ;;  %v203_v45 = vpop.f32.mrb[7].mxu0  ;;  %v235_v46 = vpop.f32.mrb[7].mxu1 }
 0x101   :  { %251 = vst [vmem:[%s486_s3 + $0x20] sm:$0xff] %v201_v39  ;;  %259 = vst [vmem:[%s486_s3 + $0x60] sm:$0xff] %v233_v40  ;;  %v204_v47 = vadd.f32 %v267_v16, %v203_v45  ;;  %v236_v48 = vadd.f32 %v267_v16, %v235_v46 }
 0x102   :  { %254 = vst [vmem:[%s486_s3 + $0x38] sm:$0xff] %v212_v43  ;;  %262 = vst [vmem:[%s486_s3 + $0x78] sm:$0xff] %v244_v44 }
 0x103   :  { %252 = vst [vmem:[%s486_s3 + $0x28] sm:$0xff] %v204_v47  ;;  %260 = vst [vmem:[%s486_s3 + $0x68] sm:$0xff] %v236_v48 }

// kernel: model_forward.39
= control target key start
LH: loop header
LB: loop body
LE: loop exit
PB: predicated region body
PF: predicated region fallthrough
CT: control target
= control target key end

     0   :  { %s308_s1 = inlined_call_operand.vmem [shape: bf16[128,128], index: 1, kind: input, shape index: {}]   ;;  %s309_s0 = inlined_call_operand.vmem [shape: bf16[32,128], index: 0, kind: input, shape index: {}]   ;;  %s310_s2 = inlined_call_operand.vmem [shape: f32[1,128], index: 2, kind: input, shape index: {}]   ;;  %s311_s3 = inlined_call_operand.vmem [shape: bf16[32,128], index: 3, kind: output, shape index: {}]  }
   0x1   :  { %v239_v0 = vld [vmem:[%s308_s1] sm:$0xff]   ;;  %v240_v1 = vld [vmem:[%s308_s1 + $0x8] sm:$0xff]   ;;  %v241_v2 = vld [vmem:[%s308_s1 + $0x10] sm:$0xff]  }
   0x2   :  { %219 = vmatprep.subr.bf16.mxu0 %v239_v0  ;;  %v242_v3 = vld [vmem:[%s308_s1 + $0x18] sm:$0xff]   ;;  %v247_v4 = vld [vmem:[%s309_s0] sm:$0xff]   ;;  %v244_v6 = vld [vmem:[%s308_s1 + $0x28] sm:$0xff]  }
   0x3   :  { %220 = vmatpush3.bf16.msra.mxu0 %v239_v0  ;;  %235 = vmatprep.mubr.bf16.mxu0 %v247_v4  ;;  %v243_v5 = vld [vmem:[%s308_s1 + $0x20] sm:$0xff]   ;;  %v245_v7 = vld [vmem:[%s308_s1 + $0x30] sm:$0xff]   ;;  %v246_v8 = vld [vmem:[%s308_s1 + $0x38] sm:$0xff]  }
   0x4   :  { %221 = vmatprep.subr.bf16.mxu0 %v240_v1  ;;  %v248_v9 = vld [vmem:[%s309_s0 + $0x8] sm:$0xff]   ;;  %v179_v10 = vld [vmem:[%s310_s2] ss:$0 sm:$0xff] }
   0x7   :  { %222 = vmatpush3.bf16.msra.mxu0 %v240_v1 }
   0x8   :  { %223 = vmatprep.subr.bf16.mxu0 %v241_v2 }
   0xb   :  { %224 = vmatpush3.bf16.msra.mxu0 %v241_v2 }
   0xc   :  { %225 = vmatprep.subr.bf16.mxu0 %v242_v3 }
   0xf   :  { %226 = vmatpush3.bf16.msra.mxu0 %v242_v3 }
  0x10   :  { %227 = vmatprep.subr.bf16.mxu0 %v243_v5 }
  0x13   :  { %228 = vmatpush3.bf16.msra.mxu0 %v243_v5 }
  0x14   :  { %229 = vmatprep.subr.bf16.mxu0 %v244_v6 }
  0x17   :  { %230 = vmatpush3.bf16.msra.mxu0 %v244_v6 }
  0x18   :  { %231 = vmatprep.subr.bf16.mxu0 %v245_v7 }
  0x1b   :  { %232 = vmatpush3.bf16.msra.mxu0 %v245_v7 }
  0x1c   :  { %233 = vmatprep.subr.bf16.mxu0 %v246_v8 }
  0x1f   :  { %234 = vmatpush3.bf16.msra.mxu0 %v246_v8 }
  0x22   :  { %236 = vmatmul.mubr.bf16.vlgmr.msra.gmra.mrb[0].mxu0 %v248_v9 }
  0xf5   :  { %v237_v11 = vpop.f32.mrb[0].mxu0 }
  0xf6   :  { %v145_v12 = vadd.f32 %v237_v11, %v179_v10  ;;  %v136_v13 = vpop.f32.mrb[1].mxu0 }
  0xf7   :  { %v137_v14 = vadd.f32 %v179_v10, %v136_v13  ;;  %v238_v15 = vpop.f32.mrb[2].mxu0 }
  0xf8   :  { %v148_v16 = vadd.f32 %v238_v15, %v179_v10  ;;  %v139_v17 = vpop.f32.mrb[3].mxu0  ;;  %v153_v19 = vmax.f32 %v145_v12, 0.0 }
  0xf9   :  { %v140_v18 = vadd.f32 %v179_v10, %v139_v17  ;;  %v151_v21 = vmax.f32 %v137_v14, 0.0 }
  0xfa   :  { %v154_v20 = vmax.f32 %v148_v16, 0.0 }
  0xfb   :  { %v152_v22 = vmax.f32 %v140_v18, 0.0 }
  0xfc   :  { %v206_v23 = vpack.c.bf16 %v154_v20, %v153_v19 }
  0xfd   :  { %v201_v24 = vpack.c.bf16 %v152_v22, %v151_v21 }
  0xfe   :  { %208 = vst [vmem:[%s311_s3 + $0x8] sm:$0xff] %v206_v23  }
  0xff   :  { %202 = vst [vmem:[%s311_s3] sm:$0xff] %v201_v24  }

// kernel: model_forward.40
= control target key start
LH: loop header
LB: loop body
LE: loop exit
PB: predicated region body
PF: predicated region fallthrough
CT: control target
= control target key end

     0   :  { %s413_s1 = inlined_call_operand.vmem [shape: bf16[256,128], index: 1, kind: input, shape index: {}]   ;;  %s414_s0 = inlined_call_operand.vmem [shape: bf16[32,256], index: 0, kind: input, shape index: {}]   ;;  %s415_s2 = inlined_call_operand.vmem [shape: f32[1,128], index: 2, kind: input, shape index: {}]   ;;  %s416_s3 = inlined_call_operand.vmem [shape: f32[32,128], index: 3, kind: output, shape index: {}]  }
   0x1   :  { %v296_v0 = vld [vmem:[%s413_s1 + $0x40] sm:$0xff]   ;;  %v298_v2 = vld [vmem:[%s413_s1 + $0x48] sm:$0xff]   ;;  %v300_v4 = vld [vmem:[%s413_s1 + $0x50] sm:$0xff]  }
   0x2   :  { %v297_v1 = vld [vmem:[%s413_s1] sm:$0xff]   ;;  %252 = vmatprep.subr.bf16.mxu0 %v296_v0  ;;  %280 = vmatprep.subr.bf16.mxu1 %v296_v0  ;;  %v299_v3 = vld [vmem:[%s413_s1 + $0x8] sm:$0xff]   ;;  %v301_v5 = vld [vmem:[%s413_s1 + $0x10] sm:$0xff]  }
   0x3   :  { %253 = vmatpush3.bf16.msra.mxu0 %v297_v1  ;;  %288 = vmatpush3.bf16.msra.mxu1 %v297_v1  ;;  %v302_v6 = vld [vmem:[%s413_s1 + $0x58] sm:$0xff]   ;;  %v304_v8 = vld [vmem:[%s413_s1 + $0x60] sm:$0xff]   ;;  %v306_v10 = vld [vmem:[%s413_s1 + $0x68] sm:$0xff]  }
   0x4   :  { %254 = vmatprep.subr.bf16.mxu0 %v298_v2  ;;  %281 = vmatprep.subr.bf16.mxu1 %v298_v2  ;;  %v303_v7 = vld [vmem:[%s413_s1 + $0x18] sm:$0xff]   ;;  %v305_v9 = vld [vmem:[%s413_s1 + $0x20] sm:$0xff]   ;;  %v307_v13 = vld [vmem:[%s413_s1 + $0x28] sm:$0xff]  }
   0x5   :  { %v314_v11 = vld [vmem:[%s414_s0 + $0x4] ss:$8 sps:$4 sm:$0xff]   ;;  %v317_v12 = vld [vmem:[%s414_s0 + $0x14] ss:$8 sps:$4 sm:$0xff]   ;;  %v312_v18 = vld [vmem:[%s414_s0] ss:$8 sps:$4 sm:$0xff]  }
   0x6   :  { %v308_v14 = vld [vmem:[%s413_s1 + $0x70] sm:$0xff]   ;;  %206 = vmatprep.mubr.bf16.mxu0 %v314_v11  ;;  %214 = vmatprep.mubr.bf16.mxu1 %v317_v12  ;;  %v310_v16 = vld [vmem:[%s413_s1 + $0x78] sm:$0xff]   ;;  %v231_v22 = vld [vmem:[%s415_s2] ss:$0 sm:$0xff] }
   0x7   :  { %255 = vmatpush3.bf16.msra.mxu0 %v299_v3  ;;  %289 = vmatpush3.bf16.msra.mxu1 %v299_v3  ;;  %v309_v15 = vld [vmem:[%s413_s1 + $0x30] sm:$0xff]   ;;  %v311_v17 = vld [vmem:[%s413_s1 + $0x38] sm:$0xff]  }
   0x8   :  { %256 = vmatprep.subr.bf16.mxu0 %v300_v4  ;;  %282 = vmatprep.subr.bf16.mxu1 %v300_v4  ;;  %v315_v19 = vld [vmem:[%s414_s0 + $0x10] ss:$8 sps:$4 sm:$0xff]  }
   0xb   :  { %257 = vmatpush3.bf16.msra.mxu0 %v301_v5  ;;  %290 = vmatpush3.bf16.msra.mxu1 %v301_v5 }
   0xc   :  { %258 = vmatprep.subr.bf16.mxu0 %v302_v6  ;;  %283 = vmatprep.subr.bf16.mxu1 %v302_v6 }
   0xf   :  { %259 = vmatpush3.bf16.msra.mxu0 %v303_v7  ;;  %291 = vmatpush3.bf16.msra.mxu1 %v303_v7 }
  0x10   :  { %260 = vmatprep.subr.bf16.mxu0 %v304_v8  ;;  %284 = vmatprep.subr.bf16.mxu1 %v304_v8 }
  0x13   :  { %261 = vmatpush3.bf16.msra.mxu0 %v305_v9  ;;  %292 = vmatpush3.bf16.msra.mxu1 %v305_v9 }
  0x14   :  { %262 = vmatprep.subr.bf16.mxu0 %v306_v10  ;;  %285 = vmatprep.subr.bf16.mxu1 %v306_v10 }
  0x17   :  { %263 = vmatpush3.bf16.msra.mxu0 %v307_v13  ;;  %293 = vmatpush3.bf16.msra.mxu1 %v307_v13 }
  0x18   :  { %264 = vmatprep.subr.bf16.mxu0 %v308_v14  ;;  %286 = vmatprep.subr.bf16.mxu1 %v308_v14 }
  0x1b   :  { %265 = vmatpush3.bf16.msra.mxu0 %v309_v15  ;;  %294 = vmatpush3.bf16.msra.mxu1 %v309_v15 }
  0x1c   :  { %266 = vmatprep.subr.bf16.mxu0 %v310_v16  ;;  %287 = vmatprep.subr.bf16.mxu1 %v310_v16 }
  0x1f   :  { %267 = vmatpush3.bf16.msra.mxu0 %v311_v17  ;;  %295 = vmatpush3.bf16.msra.mxu1 %v311_v17 }
  0x22   :  { %207 = vmatmul.mubr.bf16.vlgmr.msra.gmra.mrb[0].mxu0 %v312_v18  ;;  %215 = vmatmul.mubr.bf16.vlgmr.msra.gmra.mrb[0].mxu1 %v315_v19 }
  0xf5   :  { %v268_v20 = vpop.f32.mrb[0].mxu0  ;;  %v274_v21 = vpop.f32.mrb[0].mxu1 }
  0xf6   :  { %v269_v23 = vpop.f32.mrb[1].mxu0  ;;  %v275_v24 = vpop.f32.mrb[1].mxu1 }
  0xf7   :  { %v270_v25 = vadd.f32 %v269_v23, %v268_v20  ;;  %v276_v26 = vadd.f32 %v275_v24, %v274_v21  ;;  %v271_v27 = vpop.f32.mrb[2].mxu0  ;;  %v277_v28 = vpop.f32.mrb[2].mxu1 }
  0xf8   :  { %v272_v29 = vpop.f32.mrb[3].mxu0  ;;  %v278_v30 = vpop.f32.mrb[3].mxu1 }
  0xf9   :  { %v209_v31 = vadd.f32 %v270_v25, %v231_v22  ;;  %v217_v32 = vadd.f32 %v276_v26, %v231_v22  ;;  %v273_v33 = vadd.f32 %v272_v29, %v271_v27  ;;  %v279_v34 = vadd.f32 %v278_v30, %v277_v28 }
  0xfb   :  { %223 = vst [vmem:[%s416_s3] sm:$0xff] %v209_v31  ;;  %225 = vst [vmem:[%s416_s3 + $0x10] sm:$0xff] %v217_v32  ;;  %v212_v35 = vadd.f32 %v273_v33, %v231_v22  ;;  %v220_v36 = vadd.f32 %v279_v34, %v231_v22 }
  0xfd   :  { %224 = vst [vmem:[%s416_s3 + $0x8] sm:$0xff] %v212_v35  ;;  %226 = vst [vmem:[%s416_s3 + $0x18] sm:$0xff] %v220_v36 }

// kernel: model_forward.41
= control target key start
LH: loop header
LB: loop body
LE: loop exit
PB: predicated region body
PF: predicated region fallthrough
CT: control target
= control target key end

     0   :  { %s275_s1 = inlined_call_operand.vmem [shape: bf16[128,128], index: 1, kind: input, shape index: {}]   ;;  %s276_s0 = inlined_call_operand.vmem [shape: bf16[32,128], index: 0, kind: input, shape index: {}]   ;;  %s277_s2 = inlined_call_operand.vmem [shape: f32[1,128], index: 2, kind: input, shape index: {}]   ;;  %s278_s3 = inlined_call_operand.vmem [shape: f32[32,128], index: 3, kind: output, shape index: {}]  }
   0x1   :  { %v200_v0 = vld [vmem:[%s275_s1] sm:$0xff]   ;;  %v201_v1 = vld [vmem:[%s275_s1 + $0x8] sm:$0xff]   ;;  %v202_v2 = vld [vmem:[%s275_s1 + $0x10] sm:$0xff]  }
   0x2   :  { %180 = vmatprep.subr.bf16.mxu0 %v200_v0  ;;  %v203_v3 = vld [vmem:[%s275_s1 + $0x18] sm:$0xff]   ;;  %v208_v4 = vld [vmem:[%s276_s0] sm:$0xff]   ;;  %v205_v6 = vld [vmem:[%s275_s1 + $0x28] sm:$0xff]  }
   0x3   :  { %181 = vmatpush3.bf16.msra.mxu0 %v200_v0  ;;  %196 = vmatprep.mubr.bf16.mxu0 %v208_v4  ;;  %v204_v5 = vld [vmem:[%s275_s1 + $0x20] sm:$0xff]   ;;  %v206_v7 = vld [vmem:[%s275_s1 + $0x30] sm:$0xff]   ;;  %v207_v8 = vld [vmem:[%s275_s1 + $0x38] sm:$0xff]  }
   0x4   :  { %182 = vmatprep.subr.bf16.mxu0 %v201_v1  ;;  %v209_v9 = vld [vmem:[%s276_s0 + $0x8] sm:$0xff]   ;;  %v159_v10 = vld [vmem:[%s277_s2] ss:$0 sm:$0xff] }
   0x7   :  { %183 = vmatpush3.bf16.msra.mxu0 %v201_v1 }
   0x8   :  { %184 = vmatprep.subr.bf16.mxu0 %v202_v2 }
   0xb   :  { %185 = vmatpush3.bf16.msra.mxu0 %v202_v2 }
   0xc   :  { %186 = vmatprep.subr.bf16.mxu0 %v203_v3 }
   0xf   :  { %187 = vmatpush3.bf16.msra.mxu0 %v203_v3 }
  0x10   :  { %188 = vmatprep.subr.bf16.mxu0 %v204_v5 }
  0x13   :  { %189 = vmatpush3.bf16.msra.mxu0 %v204_v5 }
  0x14   :  { %190 = vmatprep.subr.bf16.mxu0 %v205_v6 }
  0x17   :  { %191 = vmatpush3.bf16.msra.mxu0 %v205_v6 }
  0x18   :  { %192 = vmatprep.subr.bf16.mxu0 %v206_v7 }
  0x1b   :  { %193 = vmatpush3.bf16.msra.mxu0 %v206_v7 }
  0x1c   :  { %194 = vmatprep.subr.bf16.mxu0 %v207_v8 }
  0x1f   :  { %195 = vmatpush3.bf16.msra.mxu0 %v207_v8 }
  0x22   :  { %197 = vmatmul.mubr.bf16.vlgmr.msra.gmra.mrb[0].mxu0 %v209_v9 }
  0xf5   :  { %v198_v11 = vpop.f32.mrb[0].mxu0 }
  0xf6   :  { %v145_v12 = vadd.f32 %v198_v11, %v159_v10  ;;  %v136_v13 = vpop.f32.mrb[1].mxu0 }
  0xf7   :  { %v137_v14 = vadd.f32 %v159_v10, %v136_v13  ;;  %v199_v15 = vpop.f32.mrb[2].mxu0 }
  0xf8   :  { %153 = vst [vmem:[%s278_s3 + $0x10] sm:$0xff] %v145_v12  ;;  %v148_v16 = vadd.f32 %v199_v15, %v159_v10  ;;  %v139_v17 = vpop.f32.mrb[3].mxu0 }
  0xf9   :  { %151 = vst [vmem:[%s278_s3] sm:$0xff] %v137_v14  ;;  %v140_v18 = vadd.f32 %v159_v10, %v139_v17 }
  0xfa   :  { %154 = vst [vmem:[%s278_s3 + $0x18] sm:$0xff] %v148_v16 }
  0xfb   :  { %152 = vst [vmem:[%s278_s3 + $0x8] sm:$0xff] %v140_v18 }

// kernel: model_forward.52
= control target key start
LH: loop header
LB: loop body
LE: loop exit
PB: predicated region body
PF: predicated region fallthrough
CT: control target
= control target key end

     0   :  { %v1756_v0 = vmov 0   ;;  %s2214_s1 = inlined_call_operand.vmem [shape: bf16[256,128], index: 1, kind: input, shape index: {}]   ;;  %s2215_s0 = inlined_call_operand.vmem [shape: bf16[512,256], index: 0, kind: input, shape index: {}]   ;;  %s2216_s2 = inlined_call_operand.vmem [shape: f32[1,128], index: 2, kind: input, shape index: {}]   ;;  %s2217_s3 = inlined_call_operand.vmem [shape: bf16[512,128], index: 3, kind: output, shape index: {}]  }
   0x1   :  { %534 = vmatprep.subr.bf16.mxu0 %v1756_v0  ;;  %1611 = vmatprep.subr.bf16.mxu1 %v1756_v0  ;;  %v1644_v1 = vld [vmem:[%s2214_s1] sm:$0xff]   ;;  %v1645_v2 = vld [vmem:[%s2214_s1 + $0x8] sm:$0xff]   ;;  %v1646_v3 = vld [vmem:[%s2214_s1 + $0x10] sm:$0xff]  }
   0x2   :  { %535 = vmatpush1.bf16.msra.mxu0 %v1644_v1  ;;  %1627 = vmatpush1.bf16.msra.mxu1 %v1644_v1  ;;  %v1647_v4 = vld [vmem:[%s2214_s1 + $0x18] sm:$0xff]   ;;  %v1648_v5 = vld [vmem:[%s2214_s1 + $0x20] sm:$0xff]   ;;  %v1649_v7 = vld [vmem:[%s2214_s1 + $0x28] sm:$0xff]  }
   0x3   :  { %536 = vmatprep.subr.bf16.mxu0 %v1756_v0  ;;  %1612 = vmatprep.subr.bf16.mxu1 %v1756_v0  ;;  %v1662_v6 = vld [vmem:[%s2215_s0 + $0x4] ss:$8 sps:$4 sm:$0xff]   ;;  %v1650_v9 = vld [vmem:[%s2214_s1 + $0x30] sm:$0xff]   ;;  %v1651_v10 = vld [vmem:[%s2214_s1 + $0x38] sm:$0xff]  }
   0x4   :  { %v1665_v8 = vld [vmem:[%s2215_s0 + $0x104] ss:$8 sps:$4 sm:$0xff]   ;;  %566 = vmatprep.mubr.bf16.mxu0 %v1662_v6  ;;  %v1654_v13 = vld [vmem:[%s2214_s1 + $0x50] sm:$0xff]   ;;  %v1655_v14 = vld [vmem:[%s2214_s1 + $0x58] sm:$0xff]  }
   0x5   :  { %694 = vmatprep.mubr.bf16.mxu1 %v1665_v8  ;;  %v1652_v11 = vld [vmem:[%s2214_s1 + $0x40] sm:$0xff]   ;;  %v1653_v12 = vld [vmem:[%s2214_s1 + $0x48] sm:$0xff]   ;;  %v1658_v17 = vld [vmem:[%s2214_s1 + $0x70] sm:$0xff]  }
   0x6   :  { %537 = vmatpush1.bf16.msra.mxu0 %v1645_v2  ;;  %1628 = vmatpush1.bf16.msra.mxu1 %v1645_v2  ;;  %v1656_v15 = vld [vmem:[%s2214_s1 + $0x60] sm:$0xff]   ;;  %v1657_v16 = vld [vmem:[%s2214_s1 + $0x68] sm:$0xff]   ;;  %v1659_v18 = vld [vmem:[%s2214_s1 + $0x78] sm:$0xff]  }
   0x7   :  { %538 = vmatprep.subr.bf16.mxu0 %v1756_v0  ;;  %1613 = vmatprep.subr.bf16.mxu1 %v1756_v0  ;;  %v1660_v19 = vld [vmem:[%s2215_s0] ss:$8 sps:$4 sm:$0xff]   ;;  %v1666_v21 = vld [vmem:[%s2215_s0 + $0x14] ss:$8 sps:$4 sm:$0xff]   ;;  %v1670_v23 = vld [vmem:[%s2215_s0 + $0x10] ss:$8 sps:$4 sm:$0xff]  }
   0x8   :  { %v1663_v20 = vld [vmem:[%s2215_s0 + $0x100] ss:$8 sps:$4 sm:$0xff]   ;;  %v1668_v22 = vld [vmem:[%s2215_s0 + $0x114] ss:$8 sps:$4 sm:$0xff]   ;;  %v1671_v24 = vld [vmem:[%s2215_s0 + $0x110] ss:$8 sps:$4 sm:$0xff]  }
   0x9   :  { %v1672_v25 = vld [vmem:[%s2215_s0 + $0x24] ss:$8 sps:$4 sm:$0xff]   ;;  %v1676_v27 = vld [vmem:[%s2215_s0 + $0x20] ss:$8 sps:$4 sm:$0xff]   ;;  %v1678_v29 = vld [vmem:[%s2215_s0 + $0x34] ss:$8 sps:$4 sm:$0xff]  }
   0xa   :  { %539 = vmatpush1.bf16.msra.mxu0 %v1646_v3  ;;  %1629 = vmatpush1.bf16.msra.mxu1 %v1646_v3  ;;  %v1674_v26 = vld [vmem:[%s2215_s0 + $0x124] ss:$8 sps:$4 sm:$0xff]   ;;  %v1677_v28 = vld [vmem:[%s2215_s0 + $0x120] ss:$8 sps:$4 sm:$0xff]   ;;  %v1680_v30 = vld [vmem:[%s2215_s0 + $0x134] ss:$8 sps:$4 sm:$0xff]  }
   0xb   :  { %540 = vmatprep.subr.bf16.mxu0 %v1756_v0  ;;  %1614 = vmatprep.subr.bf16.mxu1 %v1756_v0  ;;  %v1682_v31 = vld [vmem:[%s2215_s0 + $0x30] ss:$8 sps:$4 sm:$0xff]   ;;  %v1684_v33 = vld [vmem:[%s2215_s0 + $0x44] ss:$8 sps:$4 sm:$0xff]   ;;  %v1688_v35 = vld [vmem:[%s2215_s0 + $0x40] ss:$8 sps:$4 sm:$0xff]  }
   0xc   :  { %v1683_v32 = vld [vmem:[%s2215_s0 + $0x130] ss:$8 sps:$4 sm:$0xff]   ;;  %v1686_v34 = vld [vmem:[%s2215_s0 + $0x144] ss:$8 sps:$4 sm:$0xff]   ;;  %v1689_v36 = vld [vmem:[%s2215_s0 + $0x140] ss:$8 sps:$4 sm:$0xff]  }
   0xd   :  { %v1690_v37 = vld [vmem:[%s2215_s0 + $0x54] ss:$8 sps:$4 sm:$0xff]   ;;  %v1694_v39 = vld [vmem:[%s2215_s0 + $0x50] ss:$8 sps:$4 sm:$0xff]   ;;  %v1696_v41 = vld [vmem:[%s2215_s0 + $0x64] ss:$8 sps:$4 sm:$0xff]  }
   0xe   :  { %541 = vmatpush1.bf16.msra.mxu0 %v1647_v4  ;;  %1630 = vmatpush1.bf16.msra.mxu1 %v1647_v4  ;;  %v1692_v38 = vld [vmem:[%s2215_s0 + $0x154] ss:$8 sps:$4 sm:$0xff]   ;;  %v1695_v40 = vld [vmem:[%s2215_s0 + $0x150] ss:$8 sps:$4 sm:$0xff]   ;;  %v1698_v42 = vld [vmem:[%s2215_s0 + $0x164] ss:$8 sps:$4 sm:$0xff]  }
   0xf   :  { %542 = vmatprep.subr.bf16.mxu0 %v1756_v0  ;;  %1615 = vmatprep.subr.bf16.mxu1 %v1756_v0  ;;  %v1700_v43 = vld [vmem:[%s2215_s0 + $0x60] ss:$8 sps:$4 sm:$0xff]   ;;  %v1702_v45 = vld [vmem:[%s2215_s0 + $0x74] ss:$8 sps:$4 sm:$0xff]   ;;  %v1706_v47 = vld [vmem:[%s2215_s0 + $0x70] ss:$8 sps:$4 sm:$0xff]  }
  0x10   :  { %v1701_v44 = vld [vmem:[%s2215_s0 + $0x160] ss:$8 sps:$4 sm:$0xff]   ;;  %v1704_v46 = vld [vmem:[%s2215_s0 + $0x174] ss:$8 sps:$4 sm:$0xff]   ;;  %v1707_v48 = vld [vmem:[%s2215_s0 + $0x170] ss:$8 sps:$4 sm:$0xff]  }
  0x11   :  { %v1708_v49 = vld [vmem:[%s2215_s0 + $0x84] ss:$8 sps:$4 sm:$0xff]   ;;  %v1712_v51 = vld [vmem:[%s2215_s0 + $0x80] ss:$8 sps:$4 sm:$0xff]   ;;  %v1714_v53 = vld [vmem:[%s2215_s0 + $0x94] ss:$8 sps:$4 sm:$0xff]  }
  0x12   :  { %543 = vmatpush1.bf16.msra.mxu0 %v1648_v5  ;;  %1631 = vmatpush1.bf16.msra.mxu1 %v1648_v5  ;;  %v1710_v50 = vld [vmem:[%s2215_s0 + $0x184] ss:$8 sps:$4 sm:$0xff]   ;;  %v1713_v52 = vld [vmem:[%s2215_s0 + $0x180] ss:$8 sps:$4 sm:$0xff]   ;;  %v1716_v54 = vld [vmem:[%s2215_s0 + $0x194] ss:$8 sps:$4 sm:$0xff]  }
  0x13   :  { %544 = vmatprep.subr.bf16.mxu0 %v1756_v0  ;;  %1616 = vmatprep.subr.bf16.mxu1 %v1756_v0  ;;  %v1718_v55 = vld [vmem:[%s2215_s0 + $0x90] ss:$8 sps:$4 sm:$0xff]   ;;  %v1720_v57 = vld [vmem:[%s2215_s0 + $0xa4] ss:$8 sps:$4 sm:$0xff]   ;;  %v1724_v59 = vld [vmem:[%s2215_s0 + $0xa0] ss:$8 sps:$4 sm:$0xff]  }
  0x14   :  { %v1719_v56 = vld [vmem:[%s2215_s0 + $0x190] ss:$8 sps:$4 sm:$0xff]   ;;  %v1722_v58 = vld [vmem:[%s2215_s0 + $0x1a4] ss:$8 sps:$4 sm:$0xff]   ;;  %v1725_v60 = vld [vmem:[%s2215_s0 + $0x1a0] ss:$8 sps:$4 sm:$0xff]  }
  0x15   :  { %v1726_v61 = vld [vmem:[%s2215_s0 + $0xb4] ss:$8 sps:$4 sm:$0xff]   ;;  %v1730_v63 = vld [vmem:[%s2215_s0 + $0xb0] ss:$8 sps:$4 sm:$0xff]   ;;  %v1732_v1 = vld [vmem:[%s2215_s0 + $0xc4] ss:$8 sps:$4 sm:$0xff]  }
  0x16   :  { %545 = vmatpush1.bf16.msra.mxu0 %v1649_v7  ;;  %1632 = vmatpush1.bf16.msra.mxu1 %v1649_v7  ;;  %v1728_v62 = vld [vmem:[%s2215_s0 + $0x1b4] ss:$8 sps:$4 sm:$0xff]   ;;  %v1734_v2 = vld [vmem:[%s2215_s0 + $0x1c4] ss:$8 sps:$4 sm:$0xff]   ;;  %v1736_v3 = vld [vmem:[%s2215_s0 + $0xc0] ss:$8 sps:$4 sm:$0xff]  }
  0x17   :  { %546 = vmatprep.subr.bf16.mxu0 %v1756_v0  ;;  %1617 = vmatprep.subr.bf16.mxu1 %v1756_v0  ;;  %v1737_v4 = vld [vmem:[%s2215_s0 + $0x1c0] ss:$8 sps:$4 sm:$0xff]   ;;  %v1738_v5 = vld [vmem:[%s2215_s0 + $0xd4] ss:$8 sps:$4 sm:$0xff]   ;;  %v1742_v7 = vld [vmem:[%s2215_s0 + $0xd0] ss:$8 sps:$4 sm:$0xff]  }
  0x18   :  { %v1740_v6 = vld [vmem:[%s2215_s0 + $0x1d4] ss:$8 sps:$4 sm:$0xff]   ;;  %v1743_v8 = vld [vmem:[%s2215_s0 + $0x1d0] ss:$8 sps:$4 sm:$0xff]  }
  0x1a   :  { %547 = vmatpush1.bf16.msra.mxu0 %v1650_v9  ;;  %1633 = vmatpush1.bf16.msra.mxu1 %v1650_v9  ;;  %v1744_v9 = vld [vmem:[%s2215_s0 + $0xe4] ss:$8 sps:$4 sm:$0xff]  }
  0x1b   :  { %548 = vmatprep.subr.bf16.mxu0 %v1756_v0  ;;  %1618 = vmatprep.subr.bf16.mxu1 %v1756_v0 }
  0x1e   :  { %549 = vmatpush1.bf16.msra.mxu0 %v1651_v10  ;;  %1634 = vmatpush1.bf16.msra.mxu1 %v1651_v10  ;;  %v1746_v10 = vld [vmem:[%s2215_s0 + $0x1e4] ss:$8 sps:$4 sm:$0xff]  }
  0x1f   :  { %550 = vmatprep.subr.bf16.mxu0 %v1756_v0  ;;  %1619 = vmatprep.subr.bf16.mxu1 %v1756_v0 }
  0x22   :  { %551 = vmatpush1.bf16.msra.mxu0 %v1652_v11  ;;  %1635 = vmatpush1.bf16.msra.mxu1 %v1652_v11  ;;  %v1748_v11 = vld [vmem:[%s2215_s0 + $0xe0] ss:$8 sps:$4 sm:$0xff]  }
  0x23   :  { %552 = vmatprep.subr.bf16.mxu0 %v1756_v0  ;;  %1620 = vmatprep.subr.bf16.mxu1 %v1756_v0 }
  0x26   :  { %553 = vmatpush1.bf16.msra.mxu0 %v1653_v12  ;;  %1636 = vmatpush1.bf16.msra.mxu1 %v1653_v12  ;;  %v1749_v12 = vld [vmem:[%s2215_s0 + $0x1e0] ss:$8 sps:$4 sm:$0xff]  }
  0x27   :  { %554 = vmatprep.subr.bf16.mxu0 %v1756_v0  ;;  %1621 = vmatprep.subr.bf16.mxu1 %v1756_v0 }
  0x2a   :  { %555 = vmatpush1.bf16.msra.mxu0 %v1654_v13  ;;  %1637 = vmatpush1.bf16.msra.mxu1 %v1654_v13  ;;  %v1750_v13 = vld [vmem:[%s2215_s0 + $0xf4] ss:$8 sps:$4 sm:$0xff]  }
  0x2b   :  { %556 = vmatprep.subr.bf16.mxu0 %v1756_v0  ;;  %1622 = vmatprep.subr.bf16.mxu1 %v1756_v0 }
  0x2e   :  { %557 = vmatpush1.bf16.msra.mxu0 %v1655_v14  ;;  %1638 = vmatpush1.bf16.msra.mxu1 %v1655_v14  ;;  %v1752_v14 = vld [vmem:[%s2215_s0 + $0x1f4] ss:$8 sps:$4 sm:$0xff]  }
  0x2f   :  { %558 = vmatprep.subr.bf16.mxu0 %v1756_v0  ;;  %1623 = vmatprep.subr.bf16.mxu1 %v1756_v0 }
  0x32   :  { %559 = vmatpush1.bf16.msra.mxu0 %v1656_v15  ;;  %1639 = vmatpush1.bf16.msra.mxu1 %v1656_v15  ;;  %v1754_v15 = vld [vmem:[%s2215_s0 + $0xf0] ss:$8 sps:$4 sm:$0xff]  }
  0x33   :  { %560 = vmatprep.subr.bf16.mxu0 %v1756_v0  ;;  %1624 = vmatprep.subr.bf16.mxu1 %v1756_v0 }
  0x36   :  { %561 = vmatpush1.bf16.msra.mxu0 %v1657_v16  ;;  %1640 = vmatpush1.bf16.msra.mxu1 %v1657_v16  ;;  %v1755_v16 = vld [vmem:[%s2215_s0 + $0x1f0] ss:$8 sps:$4 sm:$0xff]  }
  0x37   :  { %562 = vmatprep.subr.bf16.mxu0 %v1756_v0  ;;  %1625 = vmatprep.subr.bf16.mxu1 %v1756_v0 }
  0x3a   :  { %563 = vmatpush1.bf16.msra.mxu0 %v1658_v17  ;;  %1641 = vmatpush1.bf16.msra.mxu1 %v1658_v17  ;;  %v2052_v17 = vld [vmem:[%s2216_s2] ss:$0 sm:$0xff] }
  0x3b   :  { %564 = vmatprep.subr.bf16.mxu0 %v1756_v0  ;;  %1626 = vmatprep.subr.bf16.mxu1 %v1756_v0  ;;  %v1731_v0 = vld [vmem:[%s2215_s0 + $0x1b0] ss:$8 sps:$4 sm:$0xff]  }
  0x3e   :  { %565 = vmatpush1.bf16.msra.mxu0 %v1659_v18  ;;  %1642 = vmatpush1.bf16.msra.mxu1 %v1659_v18 }
  0x41   :  { %567 = vmatmul.mubr.bf16.vlgmr.msra.gmra.mrb[0].mxu0 %v1660_v19  ;;  %695 = vmatmul.mubr.bf16.vlgmr.msra.gmra.mrb[0].mxu1 %v1663_v20 }
  0x42   :  { %574 = vmatprep.mubr.bf16.mxu0 %v1666_v21  ;;  %702 = vmatprep.mubr.bf16.mxu1 %v1668_v22 }
  0x49   :  { %575 = vmatmul.mubr.bf16.gmra.mrb[4].mxu0 %v1670_v23  ;;  %703 = vmatmul.mubr.bf16.gmra.mrb[4].mxu1 %v1671_v24 }
  0x4a   :  { %582 = vmatprep.mubr.bf16.mxu0 %v1672_v25  ;;  %710 = vmatprep.mubr.bf16.mxu1 %v1674_v26 }
  0x51   :  { %583 = vmatmul.mubr.bf16.gmra.mrb[8].mxu0 %v1676_v27  ;;  %711 = vmatmul.mubr.bf16.gmra.mrb[8].mxu1 %v1677_v28 }
  0x52   :  { %590 = vmatprep.mubr.bf16.mxu0 %v1678_v29  ;;  %718 = vmatprep.mubr.bf16.mxu1 %v1680_v30 }
  0x59   :  { %591 = vmatmul.mubr.bf16.gmra.mrb[12].mxu0 %v1682_v31  ;;  %719 = vmatmul.mubr.bf16.gmra.mrb[12].mxu1 %v1683_v32 }
  0x5a   :  { %598 = vmatprep.mubr.bf16.mxu0 %v1684_v33  ;;  %726 = vmatprep.mubr.bf16.mxu1 %v1686_v34 }
  0x61   :  { %599 = vmatmul.mubr.bf16.gmra.mrb[16].mxu0 %v1688_v35  ;;  %727 = vmatmul.mubr.bf16.gmra.mrb[16].mxu1 %v1689_v36 }
  0x62   :  { %606 = vmatprep.mubr.bf16.mxu0 %v1690_v37  ;;  %734 = vmatprep.mubr.bf16.mxu1 %v1692_v38 }
  0x69   :  { %607 = vmatmul.mubr.bf16.gmra.mrb[20].mxu0 %v1694_v39  ;;  %735 = vmatmul.mubr.bf16.gmra.mrb[20].mxu1 %v1695_v40 }
  0x6a   :  { %614 = vmatprep.mubr.bf16.mxu0 %v1696_v41  ;;  %742 = vmatprep.mubr.bf16.mxu1 %v1698_v42 }
  0x71   :  { %615 = vmatmul.mubr.bf16.gmra.mrb[24].mxu0 %v1700_v43  ;;  %743 = vmatmul.mubr.bf16.gmra.mrb[24].mxu1 %v1701_v44 }
  0x72   :  { %622 = vmatprep.mubr.bf16.mxu0 %v1702_v45  ;;  %750 = vmatprep.mubr.bf16.mxu1 %v1704_v46 }
  0x79   :  { %623 = vmatmul.mubr.bf16.gmra.mrb[28].mxu0 %v1706_v47  ;;  %751 = vmatmul.mubr.bf16.gmra.mrb[28].mxu1 %v1707_v48 }
  0x7a   :  { %630 = vmatprep.mubr.bf16.mxu0 %v1708_v49  ;;  %758 = vmatprep.mubr.bf16.mxu1 %v1710_v50 }
  0x81   :  { %631 = vmatmul.mubr.bf16.gmra.mrb[32].mxu0 %v1712_v51  ;;  %759 = vmatmul.mubr.bf16.gmra.mrb[32].mxu1 %v1713_v52 }
  0x82   :  { %638 = vmatprep.mubr.bf16.mxu0 %v1714_v53  ;;  %766 = vmatprep.mubr.bf16.mxu1 %v1716_v54 }
  0x89   :  { %639 = vmatmul.mubr.bf16.gmra.mrb[36].mxu0 %v1718_v55  ;;  %767 = vmatmul.mubr.bf16.gmra.mrb[36].mxu1 %v1719_v56 }
  0x8a   :  { %646 = vmatprep.mubr.bf16.mxu0 %v1720_v57  ;;  %774 = vmatprep.mubr.bf16.mxu1 %v1722_v58 }
  0x91   :  { %647 = vmatmul.mubr.bf16.gmra.mrb[40].mxu0 %v1724_v59  ;;  %775 = vmatmul.mubr.bf16.gmra.mrb[40].mxu1 %v1725_v60 }
  0x92   :  { %654 = vmatprep.mubr.bf16.mxu0 %v1726_v61  ;;  %782 = vmatprep.mubr.bf16.mxu1 %v1728_v62 }
  0x99   :  { %655 = vmatmul.mubr.bf16.gmra.mrb[44].mxu0 %v1730_v63  ;;  %783 = vmatmul.mubr.bf16.gmra.mrb[44].mxu1 %v1731_v0 }
  0x9a   :  { %662 = vmatprep.mubr.bf16.mxu0 %v1732_v1  ;;  %790 = vmatprep.mubr.bf16.mxu1 %v1734_v2 }
  0xa1   :  { %663 = vmatmul.mubr.bf16.gmra.mrb[48].mxu0 %v1736_v3  ;;  %791 = vmatmul.mubr.bf16.gmra.mrb[48].mxu1 %v1737_v4 }
  0xa2   :  { %670 = vmatprep.mubr.bf16.mxu0 %v1738_v5  ;;  %798 = vmatprep.mubr.bf16.mxu1 %v1740_v6 }
  0xa9   :  { %671 = vmatmul.mubr.bf16.gmra.mrb[52].mxu0 %v1742_v7  ;;  %799 = vmatmul.mubr.bf16.gmra.mrb[52].mxu1 %v1743_v8 }
  0xaa   :  { %678 = vmatprep.mubr.bf16.mxu0 %v1744_v9  ;;  %806 = vmatprep.mubr.bf16.mxu1 %v1746_v10 }
  0xb1   :  { %679 = vmatmul.mubr.bf16.gmra.mrb[56].mxu0 %v1748_v11  ;;  %807 = vmatmul.mubr.bf16.gmra.mrb[56].mxu1 %v1749_v12 }
  0xb2   :  { %686 = vmatprep.mubr.bf16.mxu0 %v1750_v13  ;;  %814 = vmatprep.mubr.bf16.mxu1 %v1752_v14 }
  0xb9   :  { %687 = vmatmul.mubr.bf16.gmra.mrb[60].mxu0 %v1754_v15  ;;  %815 = vmatmul.mubr.bf16.gmra.mrb[60].mxu1 %v1755_v16 }
 0x114   :  { %v568_v18 = vpop.f32.mrb[0].mxu0  ;;  %v696_v19 = vpop.f32.mrb[0].mxu1 }
 0x115   :  { %v569_v20 = vadd.f32 %v2052_v17, %v568_v18  ;;  %v697_v21 = vadd.f32 %v2052_v17, %v696_v19  ;;  %v570_v22 = vpop.f32.mrb[1].mxu0  ;;  %v698_v23 = vpop.f32.mrb[1].mxu1 }
 0x116   :  { %v571_v24 = vpop.f32.mrb[2].mxu0  ;;  %v699_v25 = vpop.f32.mrb[2].mxu1 }
 0x117   :  { %v572_v26 = vadd.f32 %v2052_v17, %v571_v24  ;;  %v700_v27 = vadd.f32 %v2052_v17, %v699_v25  ;;  %v573_v28 = vpop.f32.mrb[3].mxu0  ;;  %v701_v29 = vpop.f32.mrb[3].mxu1  ;;  %v823_v30 = vmax.f32 %v569_v20, 0.0  ;;  %v855_v31 = vmax.f32 %v697_v21, 0.0 }
 0x119   :  { %v824_v32 = vmax.f32 %v572_v26, 0.0  ;;  %v856_v33 = vmax.f32 %v700_v27, 0.0 }
 0x11b   :  { %v1423_v34 = vpack.c.bf16 %v824_v32, %v823_v30  ;;  %v1503_v35 = vpack.c.bf16 %v856_v33, %v855_v31 }
 0x11c   :  { %v576_v36 = vpop.f32.mrb[4].mxu0  ;;  %v704_v37 = vpop.f32.mrb[4].mxu1 }
 0x11d   :  { %1424 = vst [vmem:[%s2217_s3] sm:$0xff] %v1423_v34   ;;  %1595 = vst [vmem:[%s2217_s3 + $0x80] sm:$0xff] %v1503_v35   ;;  %v577_v38 = vadd.f32 %v2052_v17, %v576_v36  ;;  %v705_v39 = vadd.f32 %v2052_v17, %v704_v37  ;;  %v578_v40 = vpop.f32.mrb[5].mxu0  ;;  %v706_v41 = vpop.f32.mrb[5].mxu1 }
 0x11e   :  { %v579_v42 = vpop.f32.mrb[6].mxu0  ;;  %v707_v43 = vpop.f32.mrb[6].mxu1 }
 0x11f   :  { %v580_v44 = vadd.f32 %v2052_v17, %v579_v42  ;;  %v708_v45 = vadd.f32 %v2052_v17, %v707_v43  ;;  %v581_v46 = vpop.f32.mrb[7].mxu0  ;;  %v709_v47 = vpop.f32.mrb[7].mxu1  ;;  %v825_v48 = vmax.f32 %v577_v38, 0.0  ;;  %v857_v49 = vmax.f32 %v705_v39, 0.0 }
 0x121   :  { %v826_v50 = vmax.f32 %v580_v44, 0.0  ;;  %v858_v51 = vmax.f32 %v708_v45, 0.0 }
 0x123   :  { %v1428_v52 = vpack.c.bf16 %v826_v50, %v825_v48  ;;  %v1508_v53 = vpack.c.bf16 %v858_v51, %v857_v49 }
 0x124   :  { %v584_v54 = vpop.f32.mrb[8].mxu0  ;;  %v712_v55 = vpop.f32.mrb[8].mxu1 }
 0x125   :  { %1580 = vst [vmem:[%s2217_s3 + $0x8] sm:$0xff] %v1428_v52   ;;  %1596 = vst [vmem:[%s2217_s3 + $0x88] sm:$0xff] %v1508_v53   ;;  %v585_v56 = vadd.f32 %v2052_v17, %v584_v54  ;;  %v713_v57 = vadd.f32 %v2052_v17, %v712_v55  ;;  %v586_v58 = vpop.f32.mrb[9].mxu0  ;;  %v714_v59 = vpop.f32.mrb[9].mxu1 }
 0x126   :  { %v587_v60 = vpop.f32.mrb[10].mxu0  ;;  %v715_v61 = vpop.f32.mrb[10].mxu1 }
 0x127   :  { %v588_v62 = vadd.f32 %v2052_v17, %v587_v60  ;;  %v716_v63 = vadd.f32 %v2052_v17, %v715_v61  ;;  %v589_v0 = vpop.f32.mrb[11].mxu0  ;;  %v717_v1 = vpop.f32.mrb[11].mxu1  ;;  %v827_v2 = vmax.f32 %v585_v56, 0.0  ;;  %v859_v3 = vmax.f32 %v713_v57, 0.0 }
 0x129   :  { %v828_v4 = vmax.f32 %v588_v62, 0.0  ;;  %v860_v5 = vmax.f32 %v716_v63, 0.0 }
 0x12b   :  { %v1433_v6 = vpack.c.bf16 %v828_v4, %v827_v2  ;;  %v1513_v7 = vpack.c.bf16 %v860_v5, %v859_v3 }
 0x12c   :  { %v592_v8 = vpop.f32.mrb[12].mxu0  ;;  %v720_v9 = vpop.f32.mrb[12].mxu1 }
 0x12d   :  { %1581 = vst [vmem:[%s2217_s3 + $0x10] sm:$0xff] %v1433_v6   ;;  %1597 = vst [vmem:[%s2217_s3 + $0x90] sm:$0xff] %v1513_v7   ;;  %v593_v10 = vadd.f32 %v2052_v17, %v592_v8  ;;  %v721_v11 = vadd.f32 %v2052_v17, %v720_v9  ;;  %v594_v12 = vpop.f32.mrb[13].mxu0  ;;  %v722_v13 = vpop.f32.mrb[13].mxu1 }
 0x12e   :  { %v595_v14 = vpop.f32.mrb[14].mxu0  ;;  %v723_v15 = vpop.f32.mrb[14].mxu1 }
 0x12f   :  { %v596_v16 = vadd.f32 %v2052_v17, %v595_v14  ;;  %v724_v18 = vadd.f32 %v2052_v17, %v723_v15  ;;  %v597_v19 = vpop.f32.mrb[15].mxu0  ;;  %v725_v20 = vpop.f32.mrb[15].mxu1  ;;  %v829_v21 = vmax.f32 %v593_v10, 0.0  ;;  %v861_v22 = vmax.f32 %v721_v11, 0.0 }
 0x131   :  { %v830_v23 = vmax.f32 %v596_v16, 0.0  ;;  %v862_v24 = vmax.f32 %v724_v18, 0.0 }
 0x133   :  { %v1438_v25 = vpack.c.bf16 %v830_v23, %v829_v21  ;;  %v1518_v26 = vpack.c.bf16 %v862_v24, %v861_v22 }
 0x134   :  { %v600_v27 = vpop.f32.mrb[16].mxu0  ;;  %v728_v28 = vpop.f32.mrb[16].mxu1 }
 0x135   :  { %1582 = vst [vmem:[%s2217_s3 + $0x18] sm:$0xff] %v1438_v25   ;;  %1598 = vst [vmem:[%s2217_s3 + $0x98] sm:$0xff] %v1518_v26   ;;  %v601_v29 = vadd.f32 %v2052_v17, %v600_v27  ;;  %v729_v30 = vadd.f32 %v2052_v17, %v728_v28  ;;  %v602_v31 = vpop.f32.mrb[17].mxu0  ;;  %v730_v32 = vpop.f32.mrb[17].mxu1 }
 0x136   :  { %v603_v33 = vpop.f32.mrb[18].mxu0  ;;  %v731_v34 = vpop.f32.mrb[18].mxu1 }
 0x137   :  { %v604_v35 = vadd.f32 %v2052_v17, %v603_v33  ;;  %v732_v36 = vadd.f32 %v2052_v17, %v731_v34  ;;  %v605_v37 = vpop.f32.mrb[19].mxu0  ;;  %v733_v38 = vpop.f32.mrb[19].mxu1  ;;  %v831_v39 = vmax.f32 %v601_v29, 0.0  ;;  %v863_v40 = vmax.f32 %v729_v30, 0.0 }
 0x139   :  { %v832_v41 = vmax.f32 %v604_v35, 0.0  ;;  %v864_v42 = vmax.f32 %v732_v36, 0.0 }
 0x13b   :  { %v1443_v43 = vpack.c.bf16 %v832_v41, %v831_v39  ;;  %v1523_v44 = vpack.c.bf16 %v864_v42, %v863_v40 }
 0x13c   :  { %v608_v45 = vpop.f32.mrb[20].mxu0  ;;  %v736_v46 = vpop.f32.mrb[20].mxu1 }
 0x13d   :  { %1583 = vst [vmem:[%s2217_s3 + $0x20] sm:$0xff] %v1443_v43   ;;  %1599 = vst [vmem:[%s2217_s3 + $0xa0] sm:$0xff] %v1523_v44   ;;  %v609_v47 = vadd.f32 %v2052_v17, %v608_v45  ;;  %v737_v48 = vadd.f32 %v2052_v17, %v736_v46  ;;  %v610_v49 = vpop.f32.mrb[21].mxu0  ;;  %v738_v50 = vpop.f32.mrb[21].mxu1 }
 0x13e   :  { %v611_v51 = vpop.f32.mrb[22].mxu0  ;;  %v739_v52 = vpop.f32.mrb[22].mxu1 }
 0x13f   :  { %v612_v53 = vadd.f32 %v2052_v17, %v611_v51  ;;  %v740_v54 = vadd.f32 %v2052_v17, %v739_v52  ;;  %v613_v55 = vpop.f32.mrb[23].mxu0  ;;  %v741_v56 = vpop.f32.mrb[23].mxu1  ;;  %v833_v57 = vmax.f32 %v609_v47, 0.0  ;;  %v865_v58 = vmax.f32 %v737_v48, 0.0 }
 0x141   :  { %v834_v59 = vmax.f32 %v612_v53, 0.0  ;;  %v866_v60 = vmax.f32 %v740_v54, 0.0 }
 0x143   :  { %v1448_v61 = vpack.c.bf16 %v834_v59, %v833_v57  ;;  %v1528_v62 = vpack.c.bf16 %v866_v60, %v865_v58 }
 0x144   :  { %v616_v63 = vpop.f32.mrb[24].mxu0  ;;  %v744_v0 = vpop.f32.mrb[24].mxu1 }
 0x145   :  { %1584 = vst [vmem:[%s2217_s3 + $0x28] sm:$0xff] %v1448_v61   ;;  %1600 = vst [vmem:[%s2217_s3 + $0xa8] sm:$0xff] %v1528_v62   ;;  %v617_v1 = vadd.f32 %v2052_v17, %v616_v63  ;;  %v745_v2 = vadd.f32 %v2052_v17, %v744_v0  ;;  %v618_v3 = vpop.f32.mrb[25].mxu0  ;;  %v746_v4 = vpop.f32.mrb[25].mxu1 }
 0x146   :  { %v619_v5 = vpop.f32.mrb[26].mxu0  ;;  %v747_v6 = vpop.f32.mrb[26].mxu1 }
 0x147   :  { %v620_v7 = vadd.f32 %v2052_v17, %v619_v5  ;;  %v748_v8 = vadd.f32 %v2052_v17, %v747_v6  ;;  %v621_v9 = vpop.f32.mrb[27].mxu0  ;;  %v749_v10 = vpop.f32.mrb[27].mxu1  ;;  %v835_v11 = vmax.f32 %v617_v1, 0.0  ;;  %v867_v12 = vmax.f32 %v745_v2, 0.0 }
 0x149   :  { %v836_v13 = vmax.f32 %v620_v7, 0.0  ;;  %v868_v14 = vmax.f32 %v748_v8, 0.0 }
 0x14b   :  { %v1453_v15 = vpack.c.bf16 %v836_v13, %v835_v11  ;;  %v1533_v16 = vpack.c.bf16 %v868_v14, %v867_v12 }
 0x14c   :  { %v624_v18 = vpop.f32.mrb[28].mxu0  ;;  %v752_v19 = vpop.f32.mrb[28].mxu1 }
 0x14d   :  { %1585 = vst [vmem:[%s2217_s3 + $0x30] sm:$0xff] %v1453_v15   ;;  %1601 = vst [vmem:[%s2217_s3 + $0xb0] sm:$0xff] %v1533_v16   ;;  %v625_v20 = vadd.f32 %v2052_v17, %v624_v18  ;;  %v753_v21 = vadd.f32 %v2052_v17, %v752_v19  ;;  %v626_v22 = vpop.f32.mrb[29].mxu0  ;;  %v754_v23 = vpop.f32.mrb[29].mxu1 }
 0x14e   :  { %v627_v24 = vpop.f32.mrb[30].mxu0  ;;  %v755_v25 = vpop.f32.mrb[30].mxu1 }
 0x14f   :  { %v628_v26 = vadd.f32 %v2052_v17, %v627_v24  ;;  %v756_v27 = vadd.f32 %v2052_v17, %v755_v25  ;;  %v629_v28 = vpop.f32.mrb[31].mxu0  ;;  %v757_v29 = vpop.f32.mrb[31].mxu1  ;;  %v837_v30 = vmax.f32 %v625_v20, 0.0  ;;  %v869_v31 = vmax.f32 %v753_v21, 0.0 }
 0x151   :  { %v838_v32 = vmax.f32 %v628_v26, 0.0  ;;  %v870_v33 = vmax.f32 %v756_v27, 0.0 }
 0x153   :  { %v1458_v34 = vpack.c.bf16 %v838_v32, %v837_v30  ;;  %v1538_v35 = vpack.c.bf16 %v870_v33, %v869_v31 }
 0x154   :  { %v632_v36 = vpop.f32.mrb[32].mxu0  ;;  %v760_v37 = vpop.f32.mrb[32].mxu1 }
 0x155   :  { %1586 = vst [vmem:[%s2217_s3 + $0x38] sm:$0xff] %v1458_v34   ;;  %1602 = vst [vmem:[%s2217_s3 + $0xb8] sm:$0xff] %v1538_v35   ;;  %v633_v38 = vadd.f32 %v2052_v17, %v632_v36  ;;  %v761_v39 = vadd.f32 %v2052_v17, %v760_v37  ;;  %v634_v40 = vpop.f32.mrb[33].mxu0  ;;  %v762_v41 = vpop.f32.mrb[33].mxu1 }
 0x156   :  { %v635_v42 = vpop.f32.mrb[34].mxu0  ;;  %v763_v43 = vpop.f32.mrb[34].mxu1 }
 0x157   :  { %v636_v44 = vadd.f32 %v2052_v17, %v635_v42  ;;  %v764_v45 = vadd.f32 %v2052_v17, %v763_v43  ;;  %v637_v46 = vpop.f32.mrb[35].mxu0  ;;  %v765_v47 = vpop.f32.mrb[35].mxu1  ;;  %v839_v48 = vmax.f32 %v633_v38, 0.0  ;;  %v871_v49 = vmax.f32 %v761_v39, 0.0 }
 0x159   :  { %v840_v50 = vmax.f32 %v636_v44, 0.0  ;;  %v872_v51 = vmax.f32 %v764_v45, 0.0 }
 0x15b   :  { %v1463_v52 = vpack.c.bf16 %v840_v50, %v839_v48  ;;  %v1543_v53 = vpack.c.bf16 %v872_v51, %v871_v49 }
 0x15c   :  { %v640_v54 = vpop.f32.mrb[36].mxu0  ;;  %v768_v55 = vpop.f32.mrb[36].mxu1 }
 0x15d   :  { %1587 = vst [vmem:[%s2217_s3 + $0x40] sm:$0xff] %v1463_v52   ;;  %1603 = vst [vmem:[%s2217_s3 + $0xc0] sm:$0xff] %v1543_v53   ;;  %v641_v56 = vadd.f32 %v2052_v17, %v640_v54  ;;  %v769_v57 = vadd.f32 %v2052_v17, %v768_v55  ;;  %v642_v58 = vpop.f32.mrb[37].mxu0  ;;  %v770_v59 = vpop.f32.mrb[37].mxu1 }
 0x15e   :  { %v643_v60 = vpop.f32.mrb[38].mxu0  ;;  %v771_v61 = vpop.f32.mrb[38].mxu1 }
 0x15f   :  { %v644_v62 = vadd.f32 %v2052_v17, %v643_v60  ;;  %v772_v63 = vadd.f32 %v2052_v17, %v771_v61  ;;  %v645_v0 = vpop.f32.mrb[39].mxu0  ;;  %v773_v1 = vpop.f32.mrb[39].mxu1  ;;  %v841_v2 = vmax.f32 %v641_v56, 0.0  ;;  %v873_v3 = vmax.f32 %v769_v57, 0.0 }
 0x161   :  { %v842_v4 = vmax.f32 %v644_v62, 0.0  ;;  %v874_v5 = vmax.f32 %v772_v63, 0.0 }
 0x163   :  { %v1468_v6 = vpack.c.bf16 %v842_v4, %v841_v2  ;;  %v1548_v7 = vpack.c.bf16 %v874_v5, %v873_v3 }
 0x164   :  { %v648_v8 = vpop.f32.mrb[40].mxu0  ;;  %v776_v9 = vpop.f32.mrb[40].mxu1 }
 0x165   :  { %1588 = vst [vmem:[%s2217_s3 + $0x48] sm:$0xff] %v1468_v6   ;;  %1604 = vst [vmem:[%s2217_s3 + $0xc8] sm:$0xff] %v1548_v7   ;;  %v649_v10 = vadd.f32 %v2052_v17, %v648_v8  ;;  %v777_v11 = vadd.f32 %v2052_v17, %v776_v9  ;;  %v650_v12 = vpop.f32.mrb[41].mxu0  ;;  %v778_v13 = vpop.f32.mrb[41].mxu1 }
 0x166   :  { %v651_v14 = vpop.f32.mrb[42].mxu0  ;;  %v779_v15 = vpop.f32.mrb[42].mxu1 }
 0x167   :  { %v652_v16 = vadd.f32 %v2052_v17, %v651_v14  ;;  %v780_v18 = vadd.f32 %v2052_v17, %v779_v15  ;;  %v653_v19 = vpop.f32.mrb[43].mxu0  ;;  %v781_v20 = vpop.f32.mrb[43].mxu1  ;;  %v843_v21 = vmax.f32 %v649_v10, 0.0  ;;  %v875_v22 = vmax.f32 %v777_v11, 0.0 }
 0x169   :  { %v844_v23 = vmax.f32 %v652_v16, 0.0  ;;  %v876_v24 = vmax.f32 %v780_v18, 0.0 }
 0x16b   :  { %v1473_v25 = vpack.c.bf16 %v844_v23, %v843_v21  ;;  %v1553_v26 = vpack.c.bf16 %v876_v24, %v875_v22 }
 0x16c   :  { %v656_v27 = vpop.f32.mrb[44].mxu0  ;;  %v784_v28 = vpop.f32.mrb[44].mxu1 }
 0x16d   :  { %1589 = vst [vmem:[%s2217_s3 + $0x50] sm:$0xff] %v1473_v25   ;;  %1605 = vst [vmem:[%s2217_s3 + $0xd0] sm:$0xff] %v1553_v26   ;;  %v657_v29 = vadd.f32 %v2052_v17, %v656_v27  ;;  %v785_v30 = vadd.f32 %v2052_v17, %v784_v28  ;;  %v658_v31 = vpop.f32.mrb[45].mxu0  ;;  %v786_v32 = vpop.f32.mrb[45].mxu1 }
 0x16e   :  { %v659_v33 = vpop.f32.mrb[46].mxu0  ;;  %v787_v34 = vpop.f32.mrb[46].mxu1 }
 0x16f   :  { %v660_v35 = vadd.f32 %v2052_v17, %v659_v33  ;;  %v788_v36 = vadd.f32 %v2052_v17, %v787_v34  ;;  %v661_v37 = vpop.f32.mrb[47].mxu0  ;;  %v789_v38 = vpop.f32.mrb[47].mxu1  ;;  %v845_v39 = vmax.f32 %v657_v29, 0.0  ;;  %v877_v40 = vmax.f32 %v785_v30, 0.0 }
 0x171   :  { %v846_v41 = vmax.f32 %v660_v35, 0.0  ;;  %v878_v42 = vmax.f32 %v788_v36, 0.0 }
 0x173   :  { %v1478_v43 = vpack.c.bf16 %v846_v41, %v845_v39  ;;  %v1558_v44 = vpack.c.bf16 %v878_v42, %v877_v40 }
 0x174   :  { %v664_v45 = vpop.f32.mrb[48].mxu0  ;;  %v792_v46 = vpop.f32.mrb[48].mxu1 }
 0x175   :  { %1590 = vst [vmem:[%s2217_s3 + $0x58] sm:$0xff] %v1478_v43   ;;  %1606 = vst [vmem:[%s2217_s3 + $0xd8] sm:$0xff] %v1558_v44   ;;  %v665_v47 = vadd.f32 %v2052_v17, %v664_v45  ;;  %v793_v48 = vadd.f32 %v2052_v17, %v792_v46  ;;  %v666_v49 = vpop.f32.mrb[49].mxu0  ;;  %v794_v50 = vpop.f32.mrb[49].mxu1 }
 0x176   :  { %v667_v51 = vpop.f32.mrb[50].mxu0  ;;  %v795_v52 = vpop.f32.mrb[50].mxu1 }
 0x177   :  { %v668_v53 = vadd.f32 %v2052_v17, %v667_v51  ;;  %v796_v54 = vadd.f32 %v2052_v17, %v795_v52  ;;  %v669_v55 = vpop.f32.mrb[51].mxu0  ;;  %v797_v56 = vpop.f32.mrb[51].mxu1  ;;  %v847_v57 = vmax.f32 %v665_v47, 0.0  ;;  %v879_v58 = vmax.f32 %v793_v48, 0.0 }
 0x179   :  { %v848_v59 = vmax.f32 %v668_v53, 0.0  ;;  %v880_v60 = vmax.f32 %v796_v54, 0.0 }
 0x17b   :  { %v1483_v61 = vpack.c.bf16 %v848_v59, %v847_v57  ;;  %v1563_v62 = vpack.c.bf16 %v880_v60, %v879_v58 }
 0x17c   :  { %v672_v63 = vpop.f32.mrb[52].mxu0  ;;  %v800_v0 = vpop.f32.mrb[52].mxu1 }
 0x17d   :  { %1591 = vst [vmem:[%s2217_s3 + $0x60] sm:$0xff] %v1483_v61   ;;  %1607 = vst [vmem:[%s2217_s3 + $0xe0] sm:$0xff] %v1563_v62   ;;  %v673_v1 = vadd.f32 %v2052_v17, %v672_v63  ;;  %v801_v2 = vadd.f32 %v2052_v17, %v800_v0  ;;  %v674_v3 = vpop.f32.mrb[53].mxu0  ;;  %v802_v4 = vpop.f32.mrb[53].mxu1 }
 0x17e   :  { %v675_v5 = vpop.f32.mrb[54].mxu0  ;;  %v803_v6 = vpop.f32.mrb[54].mxu1 }
 0x17f   :  { %v676_v7 = vadd.f32 %v2052_v17, %v675_v5  ;;  %v804_v8 = vadd.f32 %v2052_v17, %v803_v6  ;;  %v677_v9 = vpop.f32.mrb[55].mxu0  ;;  %v805_v10 = vpop.f32.mrb[55].mxu1  ;;  %v849_v11 = vmax.f32 %v673_v1, 0.0  ;;  %v881_v12 = vmax.f32 %v801_v2, 0.0 }
 0x181   :  { %v850_v13 = vmax.f32 %v676_v7, 0.0  ;;  %v882_v14 = vmax.f32 %v804_v8, 0.0 }
 0x183   :  { %v1488_v15 = vpack.c.bf16 %v850_v13, %v849_v11  ;;  %v1568_v16 = vpack.c.bf16 %v882_v14, %v881_v12 }
 0x184   :  { %v680_v18 = vpop.f32.mrb[56].mxu0  ;;  %v808_v19 = vpop.f32.mrb[56].mxu1 }
 0x185   :  { %1592 = vst [vmem:[%s2217_s3 + $0x68] sm:$0xff] %v1488_v15   ;;  %1608 = vst [vmem:[%s2217_s3 + $0xe8] sm:$0xff] %v1568_v16   ;;  %v681_v20 = vadd.f32 %v2052_v17, %v680_v18  ;;  %v809_v21 = vadd.f32 %v2052_v17, %v808_v19  ;;  %v682_v22 = vpop.f32.mrb[57].mxu0  ;;  %v810_v23 = vpop.f32.mrb[57].mxu1 }
 0x186   :  { %v683_v24 = vpop.f32.mrb[58].mxu0  ;;  %v811_v25 = vpop.f32.mrb[58].mxu1 }
 0x187   :  { %v684_v26 = vadd.f32 %v2052_v17, %v683_v24  ;;  %v812_v27 = vadd.f32 %v2052_v17, %v811_v25  ;;  %v685_v28 = vpop.f32.mrb[59].mxu0  ;;  %v813_v29 = vpop.f32.mrb[59].mxu1  ;;  %v851_v30 = vmax.f32 %v681_v20, 0.0  ;;  %v883_v31 = vmax.f32 %v809_v21, 0.0 }
 0x189   :  { %v852_v32 = vmax.f32 %v684_v26, 0.0  ;;  %v884_v33 = vmax.f32 %v812_v27, 0.0 }
 0x18b   :  { %v1493_v34 = vpack.c.bf16 %v852_v32, %v851_v30  ;;  %v1573_v35 = vpack.c.bf16 %v884_v33, %v883_v31 }
 0x18c   :  { %v688_v36 = vpop.f32.mrb[60].mxu0  ;;  %v816_v37 = vpop.f32.mrb[60].mxu1 }
 0x18d   :  { %1593 = vst [vmem:[%s2217_s3 + $0x70] sm:$0xff] %v1493_v34   ;;  %1609 = vst [vmem:[%s2217_s3 + $0xf0] sm:$0xff] %v1573_v35   ;;  %v689_v38 = vadd.f32 %v2052_v17, %v688_v36  ;;  %v817_v39 = vadd.f32 %v2052_v17, %v816_v37  ;;  %v690_v40 = vpop.f32.mrb[61].mxu0  ;;  %v818_v41 = vpop.f32.mrb[61].mxu1 }
 0x18e   :  { %v691_v42 = vpop.f32.mrb[62].mxu0  ;;  %v819_v43 = vpop.f32.mrb[62].mxu1 }
 0x18f   :  { %v692_v44 = vadd.f32 %v2052_v17, %v691_v42  ;;  %v820_v45 = vadd.f32 %v2052_v17, %v819_v43  ;;  %v693_v46 = vpop.f32.mrb[63].mxu0  ;;  %v821_v47 = vpop.f32.mrb[63].mxu1  ;;  %v853_v48 = vmax.f32 %v689_v38, 0.0  ;;  %v885_v49 = vmax.f32 %v817_v39, 0.0 }
 0x191   :  { %v854_v50 = vmax.f32 %v692_v44, 0.0  ;;  %v886_v51 = vmax.f32 %v820_v45, 0.0 }
 0x193   :  { %v1498_v52 = vpack.c.bf16 %v854_v50, %v853_v48  ;;  %v1578_v53 = vpack.c.bf16 %v886_v51, %v885_v49 }
 0x195   :  { %1594 = vst [vmem:[%s2217_s3 + $0x78] sm:$0xff] %v1498_v52   ;;  %1610 = vst [vmem:[%s2217_s3 + $0xf8] sm:$0xff] %v1578_v53  }

// kernel: model_forward.53
= control target key start
LH: loop header
LB: loop body
LE: loop exit
PB: predicated region body
PF: predicated region fallthrough
CT: control target
= control target key end

     0   :  { %v1181_v0 = vmov 0   ;;  %s1735_s1 = inlined_call_operand.vmem [shape: bf16[256,128], index: 1, kind: input, shape index: {}]   ;;  %s1736_s0 = inlined_call_operand.vmem [shape: bf16[512,256], index: 0, kind: input, shape index: {}]   ;;  %s1737_s2 = inlined_call_operand.vmem [shape: f32[1,128], index: 2, kind: input, shape index: {}]   ;;  %s1738_s3 = inlined_call_operand.vmem [shape: f32[512,128], index: 3, kind: output, shape index: {}]  }
   0x1   :  { %534 = vmatprep.subr.bf16.mxu0 %v1181_v0  ;;  %1036 = vmatprep.subr.bf16.mxu1 %v1181_v0  ;;  %v1069_v1 = vld [vmem:[%s1735_s1] sm:$0xff]   ;;  %v1070_v2 = vld [vmem:[%s1735_s1 + $0x8] sm:$0xff]   ;;  %v1071_v3 = vld [vmem:[%s1735_s1 + $0x10] sm:$0xff]  }
   0x2   :  { %535 = vmatpush1.bf16.msra.mxu0 %v1069_v1  ;;  %1052 = vmatpush1.bf16.msra.mxu1 %v1069_v1  ;;  %v1072_v4 = vld [vmem:[%s1735_s1 + $0x18] sm:$0xff]   ;;  %v1073_v5 = vld [vmem:[%s1735_s1 + $0x20] sm:$0xff]   ;;  %v1074_v7 = vld [vmem:[%s1735_s1 + $0x28] sm:$0xff]  }
   0x3   :  { %536 = vmatprep.subr.bf16.mxu0 %v1181_v0  ;;  %1037 = vmatprep.subr.bf16.mxu1 %v1181_v0  ;;  %v1087_v6 = vld [vmem:[%s1736_s0 + $0x4] ss:$8 sps:$4 sm:$0xff]   ;;  %v1075_v9 = vld [vmem:[%s1735_s1 + $0x30] sm:$0xff]   ;;  %v1076_v10 = vld [vmem:[%s1735_s1 + $0x38] sm:$0xff]  }
   0x4   :  { %v1090_v8 = vld [vmem:[%s1736_s0 + $0x104] ss:$8 sps:$4 sm:$0xff]   ;;  %566 = vmatprep.mubr.bf16.mxu0 %v1087_v6  ;;  %v1079_v13 = vld [vmem:[%s1735_s1 + $0x50] sm:$0xff]   ;;  %v1080_v14 = vld [vmem:[%s1735_s1 + $0x58] sm:$0xff]  }
   0x5   :  { %694 = vmatprep.mubr.bf16.mxu1 %v1090_v8  ;;  %v1077_v11 = vld [vmem:[%s1735_s1 + $0x40] sm:$0xff]   ;;  %v1078_v12 = vld [vmem:[%s1735_s1 + $0x48] sm:$0xff]   ;;  %v1083_v17 = vld [vmem:[%s1735_s1 + $0x70] sm:$0xff]  }
   0x6   :  { %537 = vmatpush1.bf16.msra.mxu0 %v1070_v2  ;;  %1053 = vmatpush1.bf16.msra.mxu1 %v1070_v2  ;;  %v1081_v15 = vld [vmem:[%s1735_s1 + $0x60] sm:$0xff]   ;;  %v1082_v16 = vld [vmem:[%s1735_s1 + $0x68] sm:$0xff]   ;;  %v1084_v18 = vld [vmem:[%s1735_s1 + $0x78] sm:$0xff]  }
   0x7   :  { %538 = vmatprep.subr.bf16.mxu0 %v1181_v0  ;;  %1038 = vmatprep.subr.bf16.mxu1 %v1181_v0  ;;  %v1085_v19 = vld [vmem:[%s1736_s0] ss:$8 sps:$4 sm:$0xff]   ;;  %v1091_v21 = vld [vmem:[%s1736_s0 + $0x14] ss:$8 sps:$4 sm:$0xff]   ;;  %v1095_v23 = vld [vmem:[%s1736_s0 + $0x10] ss:$8 sps:$4 sm:$0xff]  }
   0x8   :  { %v1088_v20 = vld [vmem:[%s1736_s0 + $0x100] ss:$8 sps:$4 sm:$0xff]   ;;  %v1093_v22 = vld [vmem:[%s1736_s0 + $0x114] ss:$8 sps:$4 sm:$0xff]   ;;  %v1096_v24 = vld [vmem:[%s1736_s0 + $0x110] ss:$8 sps:$4 sm:$0xff]  }
   0x9   :  { %v1097_v25 = vld [vmem:[%s1736_s0 + $0x24] ss:$8 sps:$4 sm:$0xff]   ;;  %v1101_v27 = vld [vmem:[%s1736_s0 + $0x20] ss:$8 sps:$4 sm:$0xff]   ;;  %v1103_v29 = vld [vmem:[%s1736_s0 + $0x34] ss:$8 sps:$4 sm:$0xff]  }
   0xa   :  { %539 = vmatpush1.bf16.msra.mxu0 %v1071_v3  ;;  %1054 = vmatpush1.bf16.msra.mxu1 %v1071_v3  ;;  %v1099_v26 = vld [vmem:[%s1736_s0 + $0x124] ss:$8 sps:$4 sm:$0xff]   ;;  %v1102_v28 = vld [vmem:[%s1736_s0 + $0x120] ss:$8 sps:$4 sm:$0xff]   ;;  %v1105_v30 = vld [vmem:[%s1736_s0 + $0x134] ss:$8 sps:$4 sm:$0xff]  }
   0xb   :  { %540 = vmatprep.subr.bf16.mxu0 %v1181_v0  ;;  %1039 = vmatprep.subr.bf16.mxu1 %v1181_v0  ;;  %v1107_v31 = vld [vmem:[%s1736_s0 + $0x30] ss:$8 sps:$4 sm:$0xff]   ;;  %v1109_v33 = vld [vmem:[%s1736_s0 + $0x44] ss:$8 sps:$4 sm:$0xff]   ;;  %v1113_v35 = vld [vmem:[%s1736_s0 + $0x40] ss:$8 sps:$4 sm:$0xff]  }
   0xc   :  { %v1108_v32 = vld [vmem:[%s1736_s0 + $0x130] ss:$8 sps:$4 sm:$0xff]   ;;  %v1111_v34 = vld [vmem:[%s1736_s0 + $0x144] ss:$8 sps:$4 sm:$0xff]   ;;  %v1114_v36 = vld [vmem:[%s1736_s0 + $0x140] ss:$8 sps:$4 sm:$0xff]  }
   0xd   :  { %v1115_v37 = vld [vmem:[%s1736_s0 + $0x54] ss:$8 sps:$4 sm:$0xff]   ;;  %v1119_v39 = vld [vmem:[%s1736_s0 + $0x50] ss:$8 sps:$4 sm:$0xff]   ;;  %v1121_v41 = vld [vmem:[%s1736_s0 + $0x64] ss:$8 sps:$4 sm:$0xff]  }
   0xe   :  { %541 = vmatpush1.bf16.msra.mxu0 %v1072_v4  ;;  %1055 = vmatpush1.bf16.msra.mxu1 %v1072_v4  ;;  %v1117_v38 = vld [vmem:[%s1736_s0 + $0x154] ss:$8 sps:$4 sm:$0xff]   ;;  %v1120_v40 = vld [vmem:[%s1736_s0 + $0x150] ss:$8 sps:$4 sm:$0xff]   ;;  %v1123_v42 = vld [vmem:[%s1736_s0 + $0x164] ss:$8 sps:$4 sm:$0xff]  }
   0xf   :  { %542 = vmatprep.subr.bf16.mxu0 %v1181_v0  ;;  %1040 = vmatprep.subr.bf16.mxu1 %v1181_v0  ;;  %v1125_v43 = vld [vmem:[%s1736_s0 + $0x60] ss:$8 sps:$4 sm:$0xff]   ;;  %v1127_v45 = vld [vmem:[%s1736_s0 + $0x74] ss:$8 sps:$4 sm:$0xff]   ;;  %v1131_v47 = vld [vmem:[%s1736_s0 + $0x70] ss:$8 sps:$4 sm:$0xff]  }
  0x10   :  { %v1126_v44 = vld [vmem:[%s1736_s0 + $0x160] ss:$8 sps:$4 sm:$0xff]   ;;  %v1129_v46 = vld [vmem:[%s1736_s0 + $0x174] ss:$8 sps:$4 sm:$0xff]   ;;  %v1132_v48 = vld [vmem:[%s1736_s0 + $0x170] ss:$8 sps:$4 sm:$0xff]  }
  0x11   :  { %v1133_v49 = vld [vmem:[%s1736_s0 + $0x84] ss:$8 sps:$4 sm:$0xff]   ;;  %v1137_v51 = vld [vmem:[%s1736_s0 + $0x80] ss:$8 sps:$4 sm:$0xff]   ;;  %v1139_v53 = vld [vmem:[%s1736_s0 + $0x94] ss:$8 sps:$4 sm:$0xff]  }
  0x12   :  { %543 = vmatpush1.bf16.msra.mxu0 %v1073_v5  ;;  %1056 = vmatpush1.bf16.msra.mxu1 %v1073_v5  ;;  %v1135_v50 = vld [vmem:[%s1736_s0 + $0x184] ss:$8 sps:$4 sm:$0xff]   ;;  %v1138_v52 = vld [vmem:[%s1736_s0 + $0x180] ss:$8 sps:$4 sm:$0xff]   ;;  %v1141_v54 = vld [vmem:[%s1736_s0 + $0x194] ss:$8 sps:$4 sm:$0xff]  }
  0x13   :  { %544 = vmatprep.subr.bf16.mxu0 %v1181_v0  ;;  %1041 = vmatprep.subr.bf16.mxu1 %v1181_v0  ;;  %v1143_v55 = vld [vmem:[%s1736_s0 + $0x90] ss:$8 sps:$4 sm:$0xff]   ;;  %v1145_v57 = vld [vmem:[%s1736_s0 + $0xa4] ss:$8 sps:$4 sm:$0xff]   ;;  %v1149_v59 = vld [vmem:[%s1736_s0 + $0xa0] ss:$8 sps:$4 sm:$0xff]  }
  0x14   :  { %v1144_v56 = vld [vmem:[%s1736_s0 + $0x190] ss:$8 sps:$4 sm:$0xff]   ;;  %v1147_v58 = vld [vmem:[%s1736_s0 + $0x1a4] ss:$8 sps:$4 sm:$0xff]   ;;  %v1150_v60 = vld [vmem:[%s1736_s0 + $0x1a0] ss:$8 sps:$4 sm:$0xff]  }
  0x15   :  { %v1151_v61 = vld [vmem:[%s1736_s0 + $0xb4] ss:$8 sps:$4 sm:$0xff]   ;;  %v1155_v63 = vld [vmem:[%s1736_s0 + $0xb0] ss:$8 sps:$4 sm:$0xff]   ;;  %v1157_v1 = vld [vmem:[%s1736_s0 + $0xc4] ss:$8 sps:$4 sm:$0xff]  }
  0x16   :  { %545 = vmatpush1.bf16.msra.mxu0 %v1074_v7  ;;  %1057 = vmatpush1.bf16.msra.mxu1 %v1074_v7  ;;  %v1153_v62 = vld [vmem:[%s1736_s0 + $0x1b4] ss:$8 sps:$4 sm:$0xff]   ;;  %v1159_v2 = vld [vmem:[%s1736_s0 + $0x1c4] ss:$8 sps:$4 sm:$0xff]   ;;  %v1161_v3 = vld [vmem:[%s1736_s0 + $0xc0] ss:$8 sps:$4 sm:$0xff]  }
  0x17   :  { %546 = vmatprep.subr.bf16.mxu0 %v1181_v0  ;;  %1042 = vmatprep.subr.bf16.mxu1 %v1181_v0  ;;  %v1162_v4 = vld [vmem:[%s1736_s0 + $0x1c0] ss:$8 sps:$4 sm:$0xff]   ;;  %v1163_v5 = vld [vmem:[%s1736_s0 + $0xd4] ss:$8 sps:$4 sm:$0xff]   ;;  %v1167_v7 = vld [vmem:[%s1736_s0 + $0xd0] ss:$8 sps:$4 sm:$0xff]  }
  0x18   :  { %v1165_v6 = vld [vmem:[%s1736_s0 + $0x1d4] ss:$8 sps:$4 sm:$0xff]   ;;  %v1168_v8 = vld [vmem:[%s1736_s0 + $0x1d0] ss:$8 sps:$4 sm:$0xff]  }
  0x1a   :  { %547 = vmatpush1.bf16.msra.mxu0 %v1075_v9  ;;  %1058 = vmatpush1.bf16.msra.mxu1 %v1075_v9  ;;  %v1169_v9 = vld [vmem:[%s1736_s0 + $0xe4] ss:$8 sps:$4 sm:$0xff]  }
  0x1b   :  { %548 = vmatprep.subr.bf16.mxu0 %v1181_v0  ;;  %1043 = vmatprep.subr.bf16.mxu1 %v1181_v0 }
  0x1e   :  { %549 = vmatpush1.bf16.msra.mxu0 %v1076_v10  ;;  %1059 = vmatpush1.bf16.msra.mxu1 %v1076_v10  ;;  %v1171_v10 = vld [vmem:[%s1736_s0 + $0x1e4] ss:$8 sps:$4 sm:$0xff]  }
  0x1f   :  { %550 = vmatprep.subr.bf16.mxu0 %v1181_v0  ;;  %1044 = vmatprep.subr.bf16.mxu1 %v1181_v0 }
  0x22   :  { %551 = vmatpush1.bf16.msra.mxu0 %v1077_v11  ;;  %1060 = vmatpush1.bf16.msra.mxu1 %v1077_v11  ;;  %v1173_v11 = vld [vmem:[%s1736_s0 + $0xe0] ss:$8 sps:$4 sm:$0xff]  }
  0x23   :  { %552 = vmatprep.subr.bf16.mxu0 %v1181_v0  ;;  %1045 = vmatprep.subr.bf16.mxu1 %v1181_v0 }
  0x26   :  { %553 = vmatpush1.bf16.msra.mxu0 %v1078_v12  ;;  %1061 = vmatpush1.bf16.msra.mxu1 %v1078_v12  ;;  %v1174_v12 = vld [vmem:[%s1736_s0 + $0x1e0] ss:$8 sps:$4 sm:$0xff]  }
  0x27   :  { %554 = vmatprep.subr.bf16.mxu0 %v1181_v0  ;;  %1046 = vmatprep.subr.bf16.mxu1 %v1181_v0 }
  0x2a   :  { %555 = vmatpush1.bf16.msra.mxu0 %v1079_v13  ;;  %1062 = vmatpush1.bf16.msra.mxu1 %v1079_v13  ;;  %v1175_v13 = vld [vmem:[%s1736_s0 + $0xf4] ss:$8 sps:$4 sm:$0xff]  }
  0x2b   :  { %556 = vmatprep.subr.bf16.mxu0 %v1181_v0  ;;  %1047 = vmatprep.subr.bf16.mxu1 %v1181_v0 }
  0x2e   :  { %557 = vmatpush1.bf16.msra.mxu0 %v1080_v14  ;;  %1063 = vmatpush1.bf16.msra.mxu1 %v1080_v14  ;;  %v1177_v14 = vld [vmem:[%s1736_s0 + $0x1f4] ss:$8 sps:$4 sm:$0xff]  }
  0x2f   :  { %558 = vmatprep.subr.bf16.mxu0 %v1181_v0  ;;  %1048 = vmatprep.subr.bf16.mxu1 %v1181_v0 }
  0x32   :  { %559 = vmatpush1.bf16.msra.mxu0 %v1081_v15  ;;  %1064 = vmatpush1.bf16.msra.mxu1 %v1081_v15  ;;  %v1179_v15 = vld [vmem:[%s1736_s0 + $0xf0] ss:$8 sps:$4 sm:$0xff]  }
  0x33   :  { %560 = vmatprep.subr.bf16.mxu0 %v1181_v0  ;;  %1049 = vmatprep.subr.bf16.mxu1 %v1181_v0 }
  0x36   :  { %561 = vmatpush1.bf16.msra.mxu0 %v1082_v16  ;;  %1065 = vmatpush1.bf16.msra.mxu1 %v1082_v16  ;;  %v1180_v16 = vld [vmem:[%s1736_s0 + $0x1f0] ss:$8 sps:$4 sm:$0xff]  }
  0x37   :  { %562 = vmatprep.subr.bf16.mxu0 %v1181_v0  ;;  %1050 = vmatprep.subr.bf16.mxu1 %v1181_v0 }
  0x3a   :  { %563 = vmatpush1.bf16.msra.mxu0 %v1083_v17  ;;  %1066 = vmatpush1.bf16.msra.mxu1 %v1083_v17  ;;  %v1477_v17 = vld [vmem:[%s1737_s2] ss:$0 sm:$0xff] }
  0x3b   :  { %564 = vmatprep.subr.bf16.mxu0 %v1181_v0  ;;  %1051 = vmatprep.subr.bf16.mxu1 %v1181_v0  ;;  %v1156_v0 = vld [vmem:[%s1736_s0 + $0x1b0] ss:$8 sps:$4 sm:$0xff]  }
  0x3e   :  { %565 = vmatpush1.bf16.msra.mxu0 %v1084_v18  ;;  %1067 = vmatpush1.bf16.msra.mxu1 %v1084_v18 }
  0x41   :  { %567 = vmatmul.mubr.bf16.vlgmr.msra.gmra.mrb[0].mxu0 %v1085_v19  ;;  %695 = vmatmul.mubr.bf16.vlgmr.msra.gmra.mrb[0].mxu1 %v1088_v20 }
  0x42   :  { %574 = vmatprep.mubr.bf16.mxu0 %v1091_v21  ;;  %702 = vmatprep.mubr.bf16.mxu1 %v1093_v22 }
  0x49   :  { %575 = vmatmul.mubr.bf16.gmra.mrb[4].mxu0 %v1095_v23  ;;  %703 = vmatmul.mubr.bf16.gmra.mrb[4].mxu1 %v1096_v24 }
  0x4a   :  { %582 = vmatprep.mubr.bf16.mxu0 %v1097_v25  ;;  %710 = vmatprep.mubr.bf16.mxu1 %v1099_v26 }
  0x51   :  { %583 = vmatmul.mubr.bf16.gmra.mrb[8].mxu0 %v1101_v27  ;;  %711 = vmatmul.mubr.bf16.gmra.mrb[8].mxu1 %v1102_v28 }
  0x52   :  { %590 = vmatprep.mubr.bf16.mxu0 %v1103_v29  ;;  %718 = vmatprep.mubr.bf16.mxu1 %v1105_v30 }
  0x59   :  { %591 = vmatmul.mubr.bf16.gmra.mrb[12].mxu0 %v1107_v31  ;;  %719 = vmatmul.mubr.bf16.gmra.mrb[12].mxu1 %v1108_v32 }
  0x5a   :  { %598 = vmatprep.mubr.bf16.mxu0 %v1109_v33  ;;  %726 = vmatprep.mubr.bf16.mxu1 %v1111_v34 }
  0x61   :  { %599 = vmatmul.mubr.bf16.gmra.mrb[16].mxu0 %v1113_v35  ;;  %727 = vmatmul.mubr.bf16.gmra.mrb[16].mxu1 %v1114_v36 }
  0x62   :  { %606 = vmatprep.mubr.bf16.mxu0 %v1115_v37  ;;  %734 = vmatprep.mubr.bf16.mxu1 %v1117_v38 }
  0x69   :  { %607 = vmatmul.mubr.bf16.gmra.mrb[20].mxu0 %v1119_v39  ;;  %735 = vmatmul.mubr.bf16.gmra.mrb[20].mxu1 %v1120_v40 }
  0x6a   :  { %614 = vmatprep.mubr.bf16.mxu0 %v1121_v41  ;;  %742 = vmatprep.mubr.bf16.mxu1 %v1123_v42 }
  0x71   :  { %615 = vmatmul.mubr.bf16.gmra.mrb[24].mxu0 %v1125_v43  ;;  %743 = vmatmul.mubr.bf16.gmra.mrb[24].mxu1 %v1126_v44 }
  0x72   :  { %622 = vmatprep.mubr.bf16.mxu0 %v1127_v45  ;;  %750 = vmatprep.mubr.bf16.mxu1 %v1129_v46 }
  0x79   :  { %623 = vmatmul.mubr.bf16.gmra.mrb[28].mxu0 %v1131_v47  ;;  %751 = vmatmul.mubr.bf16.gmra.mrb[28].mxu1 %v1132_v48 }
  0x7a   :  { %630 = vmatprep.mubr.bf16.mxu0 %v1133_v49  ;;  %758 = vmatprep.mubr.bf16.mxu1 %v1135_v50 }
  0x81   :  { %631 = vmatmul.mubr.bf16.gmra.mrb[32].mxu0 %v1137_v51  ;;  %759 = vmatmul.mubr.bf16.gmra.mrb[32].mxu1 %v1138_v52 }
  0x82   :  { %638 = vmatprep.mubr.bf16.mxu0 %v1139_v53  ;;  %766 = vmatprep.mubr.bf16.mxu1 %v1141_v54 }
  0x89   :  { %639 = vmatmul.mubr.bf16.gmra.mrb[36].mxu0 %v1143_v55  ;;  %767 = vmatmul.mubr.bf16.gmra.mrb[36].mxu1 %v1144_v56 }
  0x8a   :  { %646 = vmatprep.mubr.bf16.mxu0 %v1145_v57  ;;  %774 = vmatprep.mubr.bf16.mxu1 %v1147_v58 }
  0x91   :  { %647 = vmatmul.mubr.bf16.gmra.mrb[40].mxu0 %v1149_v59  ;;  %775 = vmatmul.mubr.bf16.gmra.mrb[40].mxu1 %v1150_v60 }
  0x92   :  { %654 = vmatprep.mubr.bf16.mxu0 %v1151_v61  ;;  %782 = vmatprep.mubr.bf16.mxu1 %v1153_v62 }
  0x99   :  { %655 = vmatmul.mubr.bf16.gmra.mrb[44].mxu0 %v1155_v63  ;;  %783 = vmatmul.mubr.bf16.gmra.mrb[44].mxu1 %v1156_v0 }
  0x9a   :  { %662 = vmatprep.mubr.bf16.mxu0 %v1157_v1  ;;  %790 = vmatprep.mubr.bf16.mxu1 %v1159_v2 }
  0xa1   :  { %663 = vmatmul.mubr.bf16.gmra.mrb[48].mxu0 %v1161_v3  ;;  %791 = vmatmul.mubr.bf16.gmra.mrb[48].mxu1 %v1162_v4 }
  0xa2   :  { %670 = vmatprep.mubr.bf16.mxu0 %v1163_v5  ;;  %798 = vmatprep.mubr.bf16.mxu1 %v1165_v6 }
  0xa9   :  { %671 = vmatmul.mubr.bf16.gmra.mrb[52].mxu0 %v1167_v7  ;;  %799 = vmatmul.mubr.bf16.gmra.mrb[52].mxu1 %v1168_v8 }
  0xaa   :  { %678 = vmatprep.mubr.bf16.mxu0 %v1169_v9  ;;  %806 = vmatprep.mubr.bf16.mxu1 %v1171_v10 }
  0xb1   :  { %679 = vmatmul.mubr.bf16.gmra.mrb[56].mxu0 %v1173_v11  ;;  %807 = vmatmul.mubr.bf16.gmra.mrb[56].mxu1 %v1174_v12 }
  0xb2   :  { %686 = vmatprep.mubr.bf16.mxu0 %v1175_v13  ;;  %814 = vmatprep.mubr.bf16.mxu1 %v1177_v14 }
  0xb9   :  { %687 = vmatmul.mubr.bf16.gmra.mrb[60].mxu0 %v1179_v15  ;;  %815 = vmatmul.mubr.bf16.gmra.mrb[60].mxu1 %v1180_v16 }
 0x114   :  { %v568_v18 = vpop.f32.mrb[0].mxu0  ;;  %v696_v19 = vpop.f32.mrb[0].mxu1 }
 0x115   :  { %v569_v20 = vadd.f32 %v1477_v17, %v568_v18  ;;  %v697_v21 = vadd.f32 %v1477_v17, %v696_v19  ;;  %v570_v22 = vpop.f32.mrb[1].mxu0  ;;  %v698_v23 = vpop.f32.mrb[1].mxu1 }
 0x116   :  { %v571_v24 = vpop.f32.mrb[2].mxu0  ;;  %v699_v25 = vpop.f32.mrb[2].mxu1 }
 0x117   :  { %v823_v26 = vmax.f32 %v569_v20, 0.0  ;;  %v855_v27 = vmax.f32 %v697_v21, 0.0  ;;  %v572_v28 = vadd.f32 %v1477_v17, %v571_v24  ;;  %v700_v29 = vadd.f32 %v1477_v17, %v699_v25  ;;  %v573_v30 = vpop.f32.mrb[3].mxu0  ;;  %v701_v31 = vpop.f32.mrb[3].mxu1 }
 0x119   :  { %887 = vst [vmem:[%s1738_s3] sm:$0xff] %v823_v26  ;;  %919 = vst [vmem:[%s1738_s3 + $0x100] sm:$0xff] %v855_v27  ;;  %v824_v32 = vmax.f32 %v572_v28, 0.0  ;;  %v856_v33 = vmax.f32 %v700_v29, 0.0 }
 0x11b   :  { %888 = vst [vmem:[%s1738_s3 + $0x8] sm:$0xff] %v824_v32  ;;  %920 = vst [vmem:[%s1738_s3 + $0x108] sm:$0xff] %v856_v33 }
 0x11c   :  { %v576_v34 = vpop.f32.mrb[4].mxu0  ;;  %v704_v35 = vpop.f32.mrb[4].mxu1 }
 0x11d   :  { %v577_v36 = vadd.f32 %v1477_v17, %v576_v34  ;;  %v705_v37 = vadd.f32 %v1477_v17, %v704_v35  ;;  %v578_v38 = vpop.f32.mrb[5].mxu0  ;;  %v706_v39 = vpop.f32.mrb[5].mxu1 }
 0x11e   :  { %v579_v40 = vpop.f32.mrb[6].mxu0  ;;  %v707_v41 = vpop.f32.mrb[6].mxu1 }
 0x11f   :  { %v825_v42 = vmax.f32 %v577_v36, 0.0  ;;  %v857_v43 = vmax.f32 %v705_v37, 0.0  ;;  %v580_v44 = vadd.f32 %v1477_v17, %v579_v40  ;;  %v708_v45 = vadd.f32 %v1477_v17, %v707_v41  ;;  %v581_v46 = vpop.f32.mrb[7].mxu0  ;;  %v709_v47 = vpop.f32.mrb[7].mxu1 }
 0x121   :  { %889 = vst [vmem:[%s1738_s3 + $0x10] sm:$0xff] %v825_v42  ;;  %921 = vst [vmem:[%s1738_s3 + $0x110] sm:$0xff] %v857_v43  ;;  %v826_v48 = vmax.f32 %v580_v44, 0.0  ;;  %v858_v49 = vmax.f32 %v708_v45, 0.0 }
 0x123   :  { %890 = vst [vmem:[%s1738_s3 + $0x18] sm:$0xff] %v826_v48  ;;  %922 = vst [vmem:[%s1738_s3 + $0x118] sm:$0xff] %v858_v49 }
 0x124   :  { %v584_v50 = vpop.f32.mrb[8].mxu0  ;;  %v712_v51 = vpop.f32.mrb[8].mxu1 }
 0x125   :  { %v585_v52 = vadd.f32 %v1477_v17, %v584_v50  ;;  %v713_v53 = vadd.f32 %v1477_v17, %v712_v51  ;;  %v586_v54 = vpop.f32.mrb[9].mxu0  ;;  %v714_v55 = vpop.f32.mrb[9].mxu1 }
 0x126   :  { %v587_v56 = vpop.f32.mrb[10].mxu0  ;;  %v715_v57 = vpop.f32.mrb[10].mxu1 }
 0x127   :  { %v827_v58 = vmax.f32 %v585_v52, 0.0  ;;  %v859_v59 = vmax.f32 %v713_v53, 0.0  ;;  %v588_v60 = vadd.f32 %v1477_v17, %v587_v56  ;;  %v716_v61 = vadd.f32 %v1477_v17, %v715_v57  ;;  %v589_v62 = vpop.f32.mrb[11].mxu0  ;;  %v717_v63 = vpop.f32.mrb[11].mxu1 }
 0x129   :  { %891 = vst [vmem:[%s1738_s3 + $0x20] sm:$0xff] %v827_v58  ;;  %923 = vst [vmem:[%s1738_s3 + $0x120] sm:$0xff] %v859_v59  ;;  %v828_v0 = vmax.f32 %v588_v60, 0.0  ;;  %v860_v1 = vmax.f32 %v716_v61, 0.0 }
 0x12b   :  { %892 = vst [vmem:[%s1738_s3 + $0x28] sm:$0xff] %v828_v0  ;;  %924 = vst [vmem:[%s1738_s3 + $0x128] sm:$0xff] %v860_v1 }
 0x12c   :  { %v592_v2 = vpop.f32.mrb[12].mxu0  ;;  %v720_v3 = vpop.f32.mrb[12].mxu1 }
 0x12d   :  { %v593_v4 = vadd.f32 %v1477_v17, %v592_v2  ;;  %v721_v5 = vadd.f32 %v1477_v17, %v720_v3  ;;  %v594_v6 = vpop.f32.mrb[13].mxu0  ;;  %v722_v7 = vpop.f32.mrb[13].mxu1 }
 0x12e   :  { %v595_v8 = vpop.f32.mrb[14].mxu0  ;;  %v723_v9 = vpop.f32.mrb[14].mxu1 }
 0x12f   :  { %v829_v10 = vmax.f32 %v593_v4, 0.0  ;;  %v861_v11 = vmax.f32 %v721_v5, 0.0  ;;  %v596_v12 = vadd.f32 %v1477_v17, %v595_v8  ;;  %v724_v13 = vadd.f32 %v1477_v17, %v723_v9  ;;  %v597_v14 = vpop.f32.mrb[15].mxu0  ;;  %v725_v15 = vpop.f32.mrb[15].mxu1 }
 0x131   :  { %893 = vst [vmem:[%s1738_s3 + $0x30] sm:$0xff] %v829_v10  ;;  %925 = vst [vmem:[%s1738_s3 + $0x130] sm:$0xff] %v861_v11  ;;  %v830_v16 = vmax.f32 %v596_v12, 0.0  ;;  %v862_v18 = vmax.f32 %v724_v13, 0.0 }
 0x133   :  { %894 = vst [vmem:[%s1738_s3 + $0x38] sm:$0xff] %v830_v16  ;;  %926 = vst [vmem:[%s1738_s3 + $0x138] sm:$0xff] %v862_v18 }
 0x134   :  { %v600_v19 = vpop.f32.mrb[16].mxu0  ;;  %v728_v20 = vpop.f32.mrb[16].mxu1 }
 0x135   :  { %v601_v21 = vadd.f32 %v1477_v17, %v600_v19  ;;  %v729_v22 = vadd.f32 %v1477_v17, %v728_v20  ;;  %v602_v23 = vpop.f32.mrb[17].mxu0  ;;  %v730_v24 = vpop.f32.mrb[17].mxu1 }
 0x136   :  { %v603_v25 = vpop.f32.mrb[18].mxu0  ;;  %v731_v26 = vpop.f32.mrb[18].mxu1 }
 0x137   :  { %v831_v27 = vmax.f32 %v601_v21, 0.0  ;;  %v863_v28 = vmax.f32 %v729_v22, 0.0  ;;  %v604_v29 = vadd.f32 %v1477_v17, %v603_v25  ;;  %v732_v30 = vadd.f32 %v1477_v17, %v731_v26  ;;  %v605_v31 = vpop.f32.mrb[19].mxu0  ;;  %v733_v32 = vpop.f32.mrb[19].mxu1 }
 0x139   :  { %895 = vst [vmem:[%s1738_s3 + $0x40] sm:$0xff] %v831_v27  ;;  %927 = vst [vmem:[%s1738_s3 + $0x140] sm:$0xff] %v863_v28  ;;  %v832_v33 = vmax.f32 %v604_v29, 0.0  ;;  %v864_v34 = vmax.f32 %v732_v30, 0.0 }
 0x13b   :  { %896 = vst [vmem:[%s1738_s3 + $0x48] sm:$0xff] %v832_v33  ;;  %928 = vst [vmem:[%s1738_s3 + $0x148] sm:$0xff] %v864_v34 }
 0x13c   :  { %v608_v35 = vpop.f32.mrb[20].mxu0  ;;  %v736_v36 = vpop.f32.mrb[20].mxu1 }
 0x13d   :  { %v609_v37 = vadd.f32 %v1477_v17, %v608_v35  ;;  %v737_v38 = vadd.f32 %v1477_v17, %v736_v36  ;;  %v610_v39 = vpop.f32.mrb[21].mxu0  ;;  %v738_v40 = vpop.f32.mrb[21].mxu1 }
 0x13e   :  { %v611_v41 = vpop.f32.mrb[22].mxu0  ;;  %v739_v42 = vpop.f32.mrb[22].mxu1 }
 0x13f   :  { %v833_v43 = vmax.f32 %v609_v37, 0.0  ;;  %v865_v44 = vmax.f32 %v737_v38, 0.0  ;;  %v612_v45 = vadd.f32 %v1477_v17, %v611_v41  ;;  %v740_v46 = vadd.f32 %v1477_v17, %v739_v42  ;;  %v613_v47 = vpop.f32.mrb[23].mxu0  ;;  %v741_v48 = vpop.f32.mrb[23].mxu1 }
 0x141   :  { %897 = vst [vmem:[%s1738_s3 + $0x50] sm:$0xff] %v833_v43  ;;  %929 = vst [vmem:[%s1738_s3 + $0x150] sm:$0xff] %v865_v44  ;;  %v834_v49 = vmax.f32 %v612_v45, 0.0  ;;  %v866_v50 = vmax.f32 %v740_v46, 0.0 }
 0x143   :  { %898 = vst [vmem:[%s1738_s3 + $0x58] sm:$0xff] %v834_v49  ;;  %930 = vst [vmem:[%s1738_s3 + $0x158] sm:$0xff] %v866_v50 }
 0x144   :  { %v616_v51 = vpop.f32.mrb[24].mxu0  ;;  %v744_v52 = vpop.f32.mrb[24].mxu1 }
 0x145   :  { %v617_v53 = vadd.f32 %v1477_v17, %v616_v51  ;;  %v745_v54 = vadd.f32 %v1477_v17, %v744_v52  ;;  %v618_v55 = vpop.f32.mrb[25].mxu0  ;;  %v746_v56 = vpop.f32.mrb[25].mxu1 }
 0x146   :  { %v619_v57 = vpop.f32.mrb[26].mxu0  ;;  %v747_v58 = vpop.f32.mrb[26].mxu1 }
 0x147   :  { %v835_v59 = vmax.f32 %v617_v53, 0.0  ;;  %v867_v60 = vmax.f32 %v745_v54, 0.0  ;;  %v620_v61 = vadd.f32 %v1477_v17, %v619_v57  ;;  %v748_v62 = vadd.f32 %v1477_v17, %v747_v58  ;;  %v621_v63 = vpop.f32.mrb[27].mxu0  ;;  %v749_v0 = vpop.f32.mrb[27].mxu1 }
 0x149   :  { %899 = vst [vmem:[%s1738_s3 + $0x60] sm:$0xff] %v835_v59  ;;  %931 = vst [vmem:[%s1738_s3 + $0x160] sm:$0xff] %v867_v60  ;;  %v836_v1 = vmax.f32 %v620_v61, 0.0  ;;  %v868_v2 = vmax.f32 %v748_v62, 0.0 }
 0x14b   :  { %900 = vst [vmem:[%s1738_s3 + $0x68] sm:$0xff] %v836_v1  ;;  %932 = vst [vmem:[%s1738_s3 + $0x168] sm:$0xff] %v868_v2 }
 0x14c   :  { %v624_v3 = vpop.f32.mrb[28].mxu0  ;;  %v752_v4 = vpop.f32.mrb[28].mxu1 }
 0x14d   :  { %v625_v5 = vadd.f32 %v1477_v17, %v624_v3  ;;  %v753_v6 = vadd.f32 %v1477_v17, %v752_v4  ;;  %v626_v7 = vpop.f32.mrb[29].mxu0  ;;  %v754_v8 = vpop.f32.mrb[29].mxu1 }
 0x14e   :  { %v627_v9 = vpop.f32.mrb[30].mxu0  ;;  %v755_v10 = vpop.f32.mrb[30].mxu1 }
 0x14f   :  { %v837_v11 = vmax.f32 %v625_v5, 0.0  ;;  %v869_v12 = vmax.f32 %v753_v6, 0.0  ;;  %v628_v13 = vadd.f32 %v1477_v17, %v627_v9  ;;  %v756_v14 = vadd.f32 %v1477_v17, %v755_v10  ;;  %v629_v15 = vpop.f32.mrb[31].mxu0  ;;  %v757_v16 = vpop.f32.mrb[31].mxu1 }
 0x151   :  { %901 = vst [vmem:[%s1738_s3 + $0x70] sm:$0xff] %v837_v11  ;;  %933 = vst [vmem:[%s1738_s3 + $0x170] sm:$0xff] %v869_v12  ;;  %v838_v18 = vmax.f32 %v628_v13, 0.0  ;;  %v870_v19 = vmax.f32 %v756_v14, 0.0 }
 0x153   :  { %902 = vst [vmem:[%s1738_s3 + $0x78] sm:$0xff] %v838_v18  ;;  %934 = vst [vmem:[%s1738_s3 + $0x178] sm:$0xff] %v870_v19 }
 0x154   :  { %v632_v20 = vpop.f32.mrb[32].mxu0  ;;  %v760_v21 = vpop.f32.mrb[32].mxu1 }
 0x155   :  { %v633_v22 = vadd.f32 %v1477_v17, %v632_v20  ;;  %v761_v23 = vadd.f32 %v1477_v17, %v760_v21  ;;  %v634_v24 = vpop.f32.mrb[33].mxu0  ;;  %v762_v25 = vpop.f32.mrb[33].mxu1 }
 0x156   :  { %v635_v26 = vpop.f32.mrb[34].mxu0  ;;  %v763_v27 = vpop.f32.mrb[34].mxu1 }
 0x157   :  { %v839_v28 = vmax.f32 %v633_v22, 0.0  ;;  %v871_v29 = vmax.f32 %v761_v23, 0.0  ;;  %v636_v30 = vadd.f32 %v1477_v17, %v635_v26  ;;  %v764_v31 = vadd.f32 %v1477_v17, %v763_v27  ;;  %v637_v32 = vpop.f32.mrb[35].mxu0  ;;  %v765_v33 = vpop.f32.mrb[35].mxu1 }
 0x159   :  { %903 = vst [vmem:[%s1738_s3 + $0x80] sm:$0xff] %v839_v28  ;;  %935 = vst [vmem:[%s1738_s3 + $0x180] sm:$0xff] %v871_v29  ;;  %v840_v34 = vmax.f32 %v636_v30, 0.0  ;;  %v872_v35 = vmax.f32 %v764_v31, 0.0 }
 0x15b   :  { %904 = vst [vmem:[%s1738_s3 + $0x88] sm:$0xff] %v840_v34  ;;  %936 = vst [vmem:[%s1738_s3 + $0x188] sm:$0xff] %v872_v35 }
 0x15c   :  { %v640_v36 = vpop.f32.mrb[36].mxu0  ;;  %v768_v37 = vpop.f32.mrb[36].mxu1 }
 0x15d   :  { %v641_v38 = vadd.f32 %v1477_v17, %v640_v36  ;;  %v769_v39 = vadd.f32 %v1477_v17, %v768_v37  ;;  %v642_v40 = vpop.f32.mrb[37].mxu0  ;;  %v770_v41 = vpop.f32.mrb[37].mxu1 }
 0x15e   :  { %v643_v42 = vpop.f32.mrb[38].mxu0  ;;  %v771_v43 = vpop.f32.mrb[38].mxu1 }
 0x15f   :  { %v841_v44 = vmax.f32 %v641_v38, 0.0  ;;  %v873_v45 = vmax.f32 %v769_v39, 0.0  ;;  %v644_v46 = vadd.f32 %v1477_v17, %v643_v42  ;;  %v772_v47 = vadd.f32 %v1477_v17, %v771_v43  ;;  %v645_v48 = vpop.f32.mrb[39].mxu0  ;;  %v773_v49 = vpop.f32.mrb[39].mxu1 }
 0x161   :  { %905 = vst [vmem:[%s1738_s3 + $0x90] sm:$0xff] %v841_v44  ;;  %937 = vst [vmem:[%s1738_s3 + $0x190] sm:$0xff] %v873_v45  ;;  %v842_v50 = vmax.f32 %v644_v46, 0.0  ;;  %v874_v51 = vmax.f32 %v772_v47, 0.0 }
 0x163   :  { %906 = vst [vmem:[%s1738_s3 + $0x98] sm:$0xff] %v842_v50  ;;  %938 = vst [vmem:[%s1738_s3 + $0x198] sm:$0xff] %v874_v51 }
 0x164   :  { %v648_v52 = vpop.f32.mrb[40].mxu0  ;;  %v776_v53 = vpop.f32.mrb[40].mxu1 }
 0x165   :  { %v649_v54 = vadd.f32 %v1477_v17, %v648_v52  ;;  %v777_v55 = vadd.f32 %v1477_v17, %v776_v53  ;;  %v650_v56 = vpop.f32.mrb[41].mxu0  ;;  %v778_v57 = vpop.f32.mrb[41].mxu1 }
 0x166   :  { %v651_v58 = vpop.f32.mrb[42].mxu0  ;;  %v779_v59 = vpop.f32.mrb[42].mxu1 }
 0x167   :  { %v843_v60 = vmax.f32 %v649_v54, 0.0  ;;  %v875_v61 = vmax.f32 %v777_v55, 0.0  ;;  %v652_v62 = vadd.f32 %v1477_v17, %v651_v58  ;;  %v780_v63 = vadd.f32 %v1477_v17, %v779_v59  ;;  %v653_v0 = vpop.f32.mrb[43].mxu0  ;;  %v781_v1 = vpop.f32.mrb[43].mxu1 }
 0x169   :  { %907 = vst [vmem:[%s1738_s3 + $0xa0] sm:$0xff] %v843_v60  ;;  %939 = vst [vmem:[%s1738_s3 + $0x1a0] sm:$0xff] %v875_v61  ;;  %v844_v2 = vmax.f32 %v652_v62, 0.0  ;;  %v876_v3 = vmax.f32 %v780_v63, 0.0 }
 0x16b   :  { %908 = vst [vmem:[%s1738_s3 + $0xa8] sm:$0xff] %v844_v2  ;;  %940 = vst [vmem:[%s1738_s3 + $0x1a8] sm:$0xff] %v876_v3 }
 0x16c   :  { %v656_v4 = vpop.f32.mrb[44].mxu0  ;;  %v784_v5 = vpop.f32.mrb[44].mxu1 }
 0x16d   :  { %v657_v6 = vadd.f32 %v1477_v17, %v656_v4  ;;  %v785_v7 = vadd.f32 %v1477_v17, %v784_v5  ;;  %v658_v8 = vpop.f32.mrb[45].mxu0  ;;  %v786_v9 = vpop.f32.mrb[45].mxu1 }
 0x16e   :  { %v659_v10 = vpop.f32.mrb[46].mxu0  ;;  %v787_v11 = vpop.f32.mrb[46].mxu1 }
 0x16f   :  { %v845_v12 = vmax.f32 %v657_v6, 0.0  ;;  %v877_v13 = vmax.f32 %v785_v7, 0.0  ;;  %v660_v14 = vadd.f32 %v1477_v17, %v659_v10  ;;  %v788_v15 = vadd.f32 %v1477_v17, %v787_v11  ;;  %v661_v16 = vpop.f32.mrb[47].mxu0  ;;  %v789_v18 = vpop.f32.mrb[47].mxu1 }
 0x171   :  { %909 = vst [vmem:[%s1738_s3 + $0xb0] sm:$0xff] %v845_v12  ;;  %941 = vst [vmem:[%s1738_s3 + $0x1b0] sm:$0xff] %v877_v13  ;;  %v846_v19 = vmax.f32 %v660_v14, 0.0  ;;  %v878_v20 = vmax.f32 %v788_v15, 0.0 }
 0x173   :  { %910 = vst [vmem:[%s1738_s3 + $0xb8] sm:$0xff] %v846_v19  ;;  %942 = vst [vmem:[%s1738_s3 + $0x1b8] sm:$0xff] %v878_v20 }
 0x174   :  { %v664_v21 = vpop.f32.mrb[48].mxu0  ;;  %v792_v22 = vpop.f32.mrb[48].mxu1 }
 0x175   :  { %v665_v23 = vadd.f32 %v1477_v17, %v664_v21  ;;  %v793_v24 = vadd.f32 %v1477_v17, %v792_v22  ;;  %v666_v25 = vpop.f32.mrb[49].mxu0  ;;  %v794_v26 = vpop.f32.mrb[49].mxu1 }
 0x176   :  { %v667_v27 = vpop.f32.mrb[50].mxu0  ;;  %v795_v28 = vpop.f32.mrb[50].mxu1 }
 0x177   :  { %v847_v29 = vmax.f32 %v665_v23, 0.0  ;;  %v879_v30 = vmax.f32 %v793_v24, 0.0  ;;  %v668_v31 = vadd.f32 %v1477_v17, %v667_v27  ;;  %v796_v32 = vadd.f32 %v1477_v17, %v795_v28  ;;  %v669_v33 = vpop.f32.mrb[51].mxu0  ;;  %v797_v34 = vpop.f32.mrb[51].mxu1 }
 0x179   :  { %911 = vst [vmem:[%s1738_s3 + $0xc0] sm:$0xff] %v847_v29  ;;  %943 = vst [vmem:[%s1738_s3 + $0x1c0] sm:$0xff] %v879_v30  ;;  %v848_v35 = vmax.f32 %v668_v31, 0.0  ;;  %v880_v36 = vmax.f32 %v796_v32, 0.0 }
 0x17b   :  { %912 = vst [vmem:[%s1738_s3 + $0xc8] sm:$0xff] %v848_v35  ;;  %944 = vst [vmem:[%s1738_s3 + $0x1c8] sm:$0xff] %v880_v36 }
 0x17c   :  { %v672_v37 = vpop.f32.mrb[52].mxu0  ;;  %v800_v38 = vpop.f32.mrb[52].mxu1 }
 0x17d   :  { %v673_v39 = vadd.f32 %v1477_v17, %v672_v37  ;;  %v801_v40 = vadd.f32 %v1477_v17, %v800_v38  ;;  %v674_v41 = vpop.f32.mrb[53].mxu0  ;;  %v802_v42 = vpop.f32.mrb[53].mxu1 }
 0x17e   :  { %v675_v43 = vpop.f32.mrb[54].mxu0  ;;  %v803_v44 = vpop.f32.mrb[54].mxu1 }
 0x17f   :  { %v849_v45 = vmax.f32 %v673_v39, 0.0  ;;  %v881_v46 = vmax.f32 %v801_v40, 0.0  ;;  %v676_v47 = vadd.f32 %v1477_v17, %v675_v43  ;;  %v804_v48 = vadd.f32 %v1477_v17, %v803_v44  ;;  %v677_v49 = vpop.f32.mrb[55].mxu0  ;;  %v805_v50 = vpop.f32.mrb[55].mxu1 }
 0x181   :  { %913 = vst [vmem:[%s1738_s3 + $0xd0] sm:$0xff] %v849_v45  ;;  %945 = vst [vmem:[%s1738_s3 + $0x1d0] sm:$0xff] %v881_v46  ;;  %v850_v51 = vmax.f32 %v676_v47, 0.0  ;;  %v882_v52 = vmax.f32 %v804_v48, 0.0 }
 0x183   :  { %914 = vst [vmem:[%s1738_s3 + $0xd8] sm:$0xff] %v850_v51  ;;  %946 = vst [vmem:[%s1738_s3 + $0x1d8] sm:$0xff] %v882_v52 }
 0x184   :  { %v680_v53 = vpop.f32.mrb[56].mxu0  ;;  %v808_v54 = vpop.f32.mrb[56].mxu1 }
 0x185   :  { %v681_v55 = vadd.f32 %v1477_v17, %v680_v53  ;;  %v809_v56 = vadd.f32 %v1477_v17, %v808_v54  ;;  %v682_v57 = vpop.f32.mrb[57].mxu0  ;;  %v810_v58 = vpop.f32.mrb[57].mxu1 }
 0x186   :  { %v683_v59 = vpop.f32.mrb[58].mxu0  ;;  %v811_v60 = vpop.f32.mrb[58].mxu1 }
 0x187   :  { %v851_v61 = vmax.f32 %v681_v55, 0.0  ;;  %v883_v62 = vmax.f32 %v809_v56, 0.0  ;;  %v684_v63 = vadd.f32 %v1477_v17, %v683_v59  ;;  %v812_v0 = vadd.f32 %v1477_v17, %v811_v60  ;;  %v685_v1 = vpop.f32.mrb[59].mxu0  ;;  %v813_v2 = vpop.f32.mrb[59].mxu1 }
 0x189   :  { %915 = vst [vmem:[%s1738_s3 + $0xe0] sm:$0xff] %v851_v61  ;;  %947 = vst [vmem:[%s1738_s3 + $0x1e0] sm:$0xff] %v883_v62  ;;  %v852_v3 = vmax.f32 %v684_v63, 0.0  ;;  %v884_v4 = vmax.f32 %v812_v0, 0.0 }
 0x18b   :  { %916 = vst [vmem:[%s1738_s3 + $0xe8] sm:$0xff] %v852_v3  ;;  %948 = vst [vmem:[%s1738_s3 + $0x1e8] sm:$0xff] %v884_v4 }
 0x18c   :  { %v688_v5 = vpop.f32.mrb[60].mxu0  ;;  %v816_v6 = vpop.f32.mrb[60].mxu1 }
 0x18d   :  { %v689_v7 = vadd.f32 %v1477_v17, %v688_v5  ;;  %v817_v8 = vadd.f32 %v1477_v17, %v816_v6  ;;  %v690_v9 = vpop.f32.mrb[61].mxu0  ;;  %v818_v10 = vpop.f32.mrb[61].mxu1 }
 0x18e   :  { %v691_v11 = vpop.f32.mrb[62].mxu0  ;;  %v819_v12 = vpop.f32.mrb[62].mxu1 }
 0x18f   :  { %v853_v13 = vmax.f32 %v689_v7, 0.0  ;;  %v885_v14 = vmax.f32 %v817_v8, 0.0  ;;  %v692_v15 = vadd.f32 %v1477_v17, %v691_v11  ;;  %v820_v16 = vadd.f32 %v1477_v17, %v819_v12  ;;  %v693_v18 = vpop.f32.mrb[63].mxu0  ;;  %v821_v19 = vpop.f32.mrb[63].mxu1 }
 0x191   :  { %917 = vst [vmem:[%s1738_s3 + $0xf0] sm:$0xff] %v853_v13  ;;  %949 = vst [vmem:[%s1738_s3 + $0x1f0] sm:$0xff] %v885_v14  ;;  %v854_v20 = vmax.f32 %v692_v15, 0.0  ;;  %v886_v21 = vmax.f32 %v820_v16, 0.0 }
 0x193   :  { %918 = vst [vmem:[%s1738_s3 + $0xf8] sm:$0xff] %v854_v20  ;;  %950 = vst [vmem:[%s1738_s3 + $0x1f8] sm:$0xff] %v886_v21 }

// kernel: eq.78
= control target key start
LH: loop header
LB: loop body
LE: loop exit
PB: predicated region body
PF: predicated region fallthrough
CT: control target
= control target key end

     0   :  { %s15_s6 = smov 3  ;;  %s18_s7 = smov 12  ;;  %vm20_vm0 = vcmask 1043458   ;;  %vm25_vm1 = vcmask 1045508   ;;  %vm30_vm2 = vcmask 1047558   ;;  %vm4_vm3 = vcmask 1047556   ;;  %s414_s0 = inlined_call_operand.vmem [shape: s32[2,16,16,2], index: 0, kind: input, shape index: {}]   ;;  %s415_s1 = inlined_call_operand.vmem [shape: s32[2,256,2], index: 1, kind: output, shape index: {}]  }
   0x1   :  { %v235_v0 = vld [vmem:[%s414_s0 + $0x7] ss:$16 sm:%s15_s6]   ;;  %v236_v1 = vld [vmem:[%s414_s0 - $0x11] ss:$16 sm:%s18_s7]   ;;  %s23_s12 = smov 48  ;;  %s28_s13 = smov 192 }
   0x2   :  { %v21_v2 = vsel %vm20_vm0, %v236_v1, %v235_v0  ;;  %v237_v3 = vld [vmem:[%s414_s0 - $0x19] ss:$16 sm:%s23_s12]   ;;  %v238_v4 = vld [vmem:[%s414_s0 - $0x31] ss:$16 sm:%s28_s13]   ;;  %s71_s18 = smov 3  ;;  %s74_s21 = smov 12 }
   0x3   :  { %v26_v5 = vsel %vm25_vm1, %v237_v3, %v21_v2  ;;  %v243_v6 = vld [vmem:[%s414_s0 + $0x5] ss:$16 sm:%s71_s18]   ;;  %s79_s22 = smov 48  ;;  %v244_v8 = vld [vmem:[%s414_s0 - $0x13] ss:$16 sm:%s74_s21]   ;;  %s84_s27 = smov 192 }
   0x4   :  { %v31_v7 = vsel %vm30_vm2, %v238_v4, %v26_v5  ;;  %v245_v9 = vld [vmem:[%s414_s0 - $0x1b] ss:$16 sm:%s79_s22]   ;;  %s273_s28 = smov 112   ;;  %v77_v10 = vsel %vm20_vm0, %v244_v8, %v243_v6  ;;  %v246_v11 = vld [vmem:[%s414_s0 - $0x33] ss:$16 sm:%s84_s27]   ;;  %s43_s2 = smov 3 }
   0x5   :  { %32 = vrot.lane.b32.xlu0 %v31_v7, %s273_s28  ;;  %s46_s3 = smov 12  ;;  %v82_v12 = vsel %vm25_vm1, %v245_v9, %v77_v10  ;;  %v239_v13 = vld [vmem:[%s414_s0 + $0x6] ss:$16 sm:%s43_s2]   ;;  %s51_s8 = smov 48  ;;  %vm6_vm4 = vcmask 130048   ;;  %vm34_vm5 = vcmask 1048448  }
   0x6   :  { %v240_v14 = vld [vmem:[%s414_s0 - $0x12] ss:$16 sm:%s46_s3]   ;;  %s56_s9 = smov 192  ;;  %v87_v15 = vsel %vm30_vm2, %v246_v11, %v82_v12  ;;  %v241_v17 = vld [vmem:[%s414_s0 - $0x1a] ss:$16 sm:%s51_s8]   ;;  %s99_s14 = smov 3 }
   0x7   :  { %v49_v16 = vsel %vm20_vm0, %v240_v14, %v239_v13  ;;  %v242_v18 = vld [vmem:[%s414_s0 - $0x32] ss:$16 sm:%s56_s9]   ;;  %s274_s15 = smov 80   ;;  %v247_v20 = vld [vmem:[%s414_s0 + $0x4] ss:$16 sm:%s99_s14]   ;;  %s102_s18 = smov 12 }
   0x8   :  { %88 = vrot.lane.b32.xlu1 %v87_v15, %s274_s15  ;;  %v54_v19 = vsel %vm25_vm1, %v241_v17, %v49_v16  ;;  %s107_s19 = smov 48  ;;  %v248_v22 = vld [vmem:[%s414_s0 - $0x14] ss:$16 sm:%s102_s18]   ;;  %s112_s24 = smov 192  ;;  %vm62_vm6 = vcmask 917248   ;;  %vm90_vm7 = vcmask 786048  }
   0x9   :  { %v59_v21 = vsel %vm30_vm2, %v242_v18, %v54_v19  ;;  %v249_v23 = vld [vmem:[%s414_s0 - $0x1c] ss:$16 sm:%s107_s19]   ;;  %s275_s25 = smov 96   ;;  %v105_v24 = vsel %vm20_vm0, %v248_v22, %v247_v20  ;;  %v250_v25 = vld [vmem:[%s414_s0 - $0x34] ss:$16 sm:%s112_s24]   ;;  %s127_s28 = smov 3 }
   0xa   :  { %60 = vrot.lane.b32.xlu0 %v59_v21, %s275_s25  ;;  %s130_s29 = smov 12  ;;  %v110_v26 = vsel %vm25_vm1, %v249_v23, %v105_v24  ;;  %v251_v27 = vld [vmem:[%s414_s0 + $0x3] ss:$16 sm:%s127_s28]   ;;  %s135_s5 = smov 48  ;;  %vm118_vm8 = vcmask 654848   ;;  %vm146_vm9 = vcmask 523648  }
   0xb   :  { %v252_v28 = vld [vmem:[%s414_s0 - $0x15] ss:$16 sm:%s130_s29]   ;;  %s140_s6 = smov 192  ;;  %v115_v29 = vsel %vm30_vm2, %v250_v25, %v110_v26  ;;  %v253_v31 = vld [vmem:[%s414_s0 - $0x1d] ss:$16 sm:%s135_s5]   ;;  %s155_s11 = smov 3 }
   0xc   :  { %v133_v30 = vsel %vm20_vm0, %v252_v28, %v251_v27  ;;  %v254_v32 = vld [vmem:[%s414_s0 - $0x35] ss:$16 sm:%s140_s6]   ;;  %s276_s12 = smov 64   ;;  %v255_v34 = vld [vmem:[%s414_s0 + $0x2] ss:$16 sm:%s155_s11]   ;;  %s158_s15 = smov 12 }
   0xd   :  { %116 = vrot.lane.b32.xlu1 %v115_v29, %s276_s12  ;;  %v138_v33 = vsel %vm25_vm1, %v253_v31, %v133_v30  ;;  %s163_s16 = smov 48  ;;  %v256_v36 = vld [vmem:[%s414_s0 - $0x16] ss:$16 sm:%s158_s15]   ;;  %s168_s21 = smov 192  ;;  %vm174_vm10 = vcmask 392448   ;;  %vm202_vm11 = vcmask 261248  }
   0xe   :  { %v143_v35 = vsel %vm30_vm2, %v254_v32, %v138_v33  ;;  %v257_v37 = vld [vmem:[%s414_s0 - $0x1e] ss:$16 sm:%s163_s16]   ;;  %s277_s22 = smov 48   ;;  %v161_v38 = vsel %vm20_vm0, %v256_v36, %v255_v34  ;;  %v258_v39 = vld [vmem:[%s414_s0 - $0x36] ss:$16 sm:%s168_s21]   ;;  %s183_s25 = smov 3 }
   0xf   :  { %144 = vrot.lane.b32.xlu0 %v143_v35, %s277_s22  ;;  %s186_s26 = smov 12  ;;  %v166_v40 = vsel %vm25_vm1, %v257_v37, %v161_v38  ;;  %v259_v41 = vld [vmem:[%s414_s0 + $0x1] ss:$16 sm:%s183_s25]   ;;  %s191_s2 = smov 48 }
  0x10   :  { %v260_v42 = vld [vmem:[%s414_s0 - $0x17] ss:$16 sm:%s186_s26]   ;;  %s196_s3 = smov 192  ;;  %v171_v43 = vsel %vm30_vm2, %v258_v39, %v166_v40  ;;  %v261_v45 = vld [vmem:[%s414_s0 - $0x1f] ss:$16 sm:%s191_s2]   ;;  %s278_s8 = smov 32  }
  0x11   :  { %v189_v44 = vsel %vm20_vm0, %v260_v42, %v259_v41  ;;  %v262_v46 = vld [vmem:[%s414_s0 - $0x37] ss:$16 sm:%s196_s3]   ;;  %172 = vrot.lane.b32.xlu1 %v171_v43, %s278_s8  ;;  %v2_v48 = vld [vmem:[%s414_s0] ss:$8 sm:$0xf]  }
  0x12   :  { %v194_v47 = vsel %vm25_vm1, %v261_v45, %v189_v44  ;;  %v3_v49 = vld [vmem:[%s414_s0] ss:$8 sm:$0xf0]   ;;  %s279_s0 = smov 16  }
  0x13   :  { %v199_v50 = vsel %vm30_vm2, %v262_v46, %v194_v47  ;;  %v5_v51 = vsel %vm4_vm3, %v3_v49, %v2_v48 }
  0x14   :  { %200 = vrot.lane.b32.xlu0 %v199_v50, %s279_s0  ;;  %7 = vst.msk [vmem:[#allocation0] ss:$8 sm:$0x3] %vm6_vm4, %v5_v51   ;;  %9 = vst.msk [vmem:[#allocation0 - $0xf] ss:$8 sm:$0xc] %vm6_vm4, %v5_v51  }
  0x15   :  { %11 = vst.msk [vmem:[#allocation0 - $0x10] ss:$8 sm:$0x30] %vm6_vm4, %v5_v51   ;;  %13 = vst.msk [vmem:[#allocation0 - $0x1f] ss:$8 sm:$0xc0] %vm6_vm4, %v5_v51  }
  0x77   :  { %v33_v52 = vpop.permute.xlu0 %32  }
  0x78   :  { %35 = vst.msk [vmem:[#allocation0] sm:$0x3] %vm34_vm5, %v33_v52   ;;  %37 = vst.msk [vmem:[#allocation0 + $0x6] sm:$0xc] %vm34_vm5, %v33_v52  }
  0x79   :  { %39 = vst.msk [vmem:[#allocation0 + $0xc] sm:$0x30] %vm34_vm5, %v33_v52   ;;  %41 = vst.msk [vmem:[#allocation0 + $0x12] sm:$0xc0] %vm34_vm5, %v33_v52  }
  0x7a   :  { %v89_v53 = vpop.permute.xlu1 %88  }
  0x7c   :  { %v61_v54 = vpop.permute.xlu0 %60  }
  0x7d   :  { %63 = vst.msk [vmem:[#allocation0] sm:$0x3] %vm62_vm6, %v61_v54   ;;  %65 = vst.msk [vmem:[#allocation0 + $0x6] sm:$0xc] %vm62_vm6, %v61_v54  }
  0x7e   :  { %67 = vst.msk [vmem:[#allocation0 + $0xc] sm:$0x30] %vm62_vm6, %v61_v54   ;;  %69 = vst.msk [vmem:[#allocation0 + $0x12] sm:$0xc0] %vm62_vm6, %v61_v54  }
  0x7f   :  { %91 = vst.msk [vmem:[#allocation0] sm:$0x3] %vm90_vm7, %v89_v53   ;;  %93 = vst.msk [vmem:[#allocation0 + $0x6] sm:$0xc] %vm90_vm7, %v89_v53   ;;  %v117_v55 = vpop.permute.xlu1 %116  }
  0x80   :  { %95 = vst.msk [vmem:[#allocation0 + $0xc] sm:$0x30] %vm90_vm7, %v89_v53   ;;  %97 = vst.msk [vmem:[#allocation0 + $0x12] sm:$0xc0] %vm90_vm7, %v89_v53  }
  0x81   :  { %119 = vst.msk [vmem:[#allocation0] sm:$0x3] %vm118_vm8, %v117_v55   ;;  %121 = vst.msk [vmem:[#allocation0 + $0x6] sm:$0xc] %vm118_vm8, %v117_v55   ;;  %v145_v56 = vpop.permute.xlu0 %144  }
  0x82   :  { %123 = vst.msk [vmem:[#allocation0 + $0xc] sm:$0x30] %vm118_vm8, %v117_v55   ;;  %125 = vst.msk [vmem:[#allocation0 + $0x12] sm:$0xc0] %vm118_vm8, %v117_v55  }
  0x83   :  { %147 = vst.msk [vmem:[#allocation0] sm:$0x3] %vm146_vm9, %v145_v56   ;;  %149 = vst.msk [vmem:[#allocation0 + $0x6] sm:$0xc] %vm146_vm9, %v145_v56   ;;  %v173_v57 = vpop.permute.xlu1 %172  }
  0x84   :  { %151 = vst.msk [vmem:[#allocation0 + $0xc] sm:$0x30] %vm146_vm9, %v145_v56   ;;  %153 = vst.msk [vmem:[#allocation0 + $0x12] sm:$0xc0] %vm146_vm9, %v145_v56  }
  0x85   :  { %175 = vst.msk [vmem:[#allocation0] sm:$0x3] %vm174_vm10, %v173_v57   ;;  %177 = vst.msk [vmem:[#allocation0 + $0x6] sm:$0xc] %vm174_vm10, %v173_v57  }
  0x86   :  { %179 = vst.msk [vmem:[#allocation0 + $0xc] sm:$0x30] %vm174_vm10, %v173_v57   ;;  %181 = vst.msk [vmem:[#allocation0 + $0x12] sm:$0xc0] %vm174_vm10, %v173_v57   ;;  %v201_v58 = vpop.permute.xlu0 %200  }
  0x87   :  { %203 = vst.msk [vmem:[#allocation0] sm:$0x3] %vm202_vm11, %v201_v58   ;;  %205 = vst.msk [vmem:[#allocation0 + $0x6] sm:$0xc] %vm202_vm11, %v201_v58  }
  0x88   :  { %207 = vst.msk [vmem:[#allocation0 + $0xc] sm:$0x30] %vm202_vm11, %v201_v58   ;;  %209 = vst.msk [vmem:[#allocation0 + $0x12] sm:$0xc0] %vm202_vm11, %v201_v58  }
  0x8e   :  { %v213_v59 = vld [vmem:[#allocation0] sm:$0x3]  ;;  %v217_v60 = vld [vmem:[#allocation0 + $0x8] sm:$0x3] }
  0x8f   :  { %v222_v61 = vld [vmem:[#allocation0 + $0x10] sm:$0x3]  ;;  %215 = vst [vmem:[%s415_s1] sm:$0x3] %v213_v59  ;;  %263 = vst [vmem:[%s415_s1 + $0x2] sm:$0x3] %v217_v60 }
  0x90   :  { %264 = vst [vmem:[%s415_s1 + $0x4] sm:$0x3] %v222_v61  ;;  %v228_v62 = vld [vmem:[#allocation0 + $0x18] sm:$0x3] }
  0x91   :  { %265 = vst [vmem:[%s415_s1 + $0x6] sm:$0x3] %v228_v62 }

// kernel: squeeze.10
= control target key start
LH: loop header
LB: loop body
LE: loop exit
PB: predicated region body
PF: predicated region fallthrough
CT: control target
= control target key end

     0   :  { %s8_s6 = smov 3  ;;  %s11_s7 = smov 12  ;;  %vm13_vm0 = vcmask 1043458   ;;  %vm3_vm1 = vcmask 130048   ;;  %vm17_vm2 = vcmask 1048448   ;;  %vm31_vm3 = vcmask 917248   ;;  %s213_s0 = inlined_call_operand.vmem [shape: f32[2,1,16,16,1], index: 0, kind: input, shape index: {}]   ;;  %s214_s1 = inlined_call_operand.vmem [shape: f32[2,256], index: 1, kind: output, shape index: {}]  }
   0x1   :  { %v116_v0 = vld [vmem:[%s213_s0 + $0x7] ss:$16 sm:%s8_s6]   ;;  %v117_v1 = vld [vmem:[%s213_s0 - $0x11] ss:$16 sm:%s11_s7]   ;;  %s36_s12 = smov 3  ;;  %s39_s15 = smov 12 }
   0x2   :  { %v14_v2 = vsel %vm13_vm0, %v117_v1, %v116_v0  ;;  %v120_v3 = vld [vmem:[%s213_s0 + $0x5] ss:$16 sm:%s36_s12]   ;;  %s138_s16 = smov 112   ;;  %v121_v4 = vld [vmem:[%s213_s0 - $0x13] ss:$16 sm:%s39_s15]   ;;  %s22_s19 = smov 3 }
   0x3   :  { %15 = vrot.lane.b32.xlu0 %v14_v2, %s138_s16  ;;  %s25_s20 = smov 12  ;;  %v42_v5 = vsel %vm13_vm0, %v121_v4, %v120_v3  ;;  %v118_v6 = vld [vmem:[%s213_s0 + $0x6] ss:$16 sm:%s22_s19]   ;;  %s50_s25 = smov 3  ;;  %vm45_vm4 = vcmask 786048   ;;  %vm59_vm5 = vcmask 654848  }
   0x4   :  { %v119_v7 = vld [vmem:[%s213_s0 - $0x12] ss:$16 sm:%s25_s20]   ;;  %s139_s26 = smov 80   ;;  %v122_v9 = vld [vmem:[%s213_s0 + $0x4] ss:$16 sm:%s50_s25]   ;;  %s53_s29 = smov 12 }
   0x5   :  { %43 = vrot.lane.b32.xlu1 %v42_v5, %s139_s26  ;;  %v28_v8 = vsel %vm13_vm0, %v119_v7, %v118_v6  ;;  %v123_v10 = vld [vmem:[%s213_s0 - $0x14] ss:$16 sm:%s53_s29]   ;;  %s64_s3 = smov 3  ;;  %s67_s4 = smov 12  ;;  %vm73_vm6 = vcmask 523648   ;;  %vm87_vm7 = vcmask 392448  }
   0x6   :  { %s140_s5 = smov 96   ;;  %v56_v11 = vsel %vm13_vm0, %v123_v10, %v122_v9  ;;  %v124_v12 = vld [vmem:[%s213_s0 + $0x3] ss:$16 sm:%s64_s3]   ;;  %s78_s8 = smov 3  ;;  %v125_v13 = vld [vmem:[%s213_s0 - $0x15] ss:$16 sm:%s67_s4]  }
   0x7   :  { %29 = vrot.lane.b32.xlu0 %v28_v8, %s140_s5  ;;  %v126_v14 = vld [vmem:[%s213_s0 + $0x2] ss:$16 sm:%s78_s8]   ;;  %s81_s13 = smov 12  ;;  %s141_s14 = smov 64   ;;  %v70_v15 = vsel %vm13_vm0, %v125_v13, %v124_v12  ;;  %vm101_vm8 = vcmask 261248  }
   0x8   :  { %v127_v16 = vld [vmem:[%s213_s0 - $0x16] ss:$16 sm:%s81_s13]   ;;  %s92_s17 = smov 3  ;;  %s95_s18 = smov 12 }
   0x9   :  { %57 = vrot.lane.b32.xlu1 %v56_v11, %s141_s14  ;;  %v84_v17 = vsel %vm13_vm0, %v127_v16, %v126_v14  ;;  %v128_v18 = vld [vmem:[%s213_s0 + $0x1] ss:$16 sm:%s92_s17]   ;;  %s142_s23 = smov 48   ;;  %v2_v20 = vld [vmem:[%s213_s0] ss:$8 sm:$0xf]  }
   0xa   :  { %v129_v19 = vld [vmem:[%s213_s0 - $0x17] ss:$16 sm:%s95_s18]   ;;  %4 = vst.msk [vmem:[#allocation0] ss:$8 sm:$0x3] %vm3_vm1, %v2_v20   ;;  %s143_s0 = smov 32  }
   0xb   :  { %71 = vrot.lane.b32.xlu0 %v70_v15, %s142_s23  ;;  %v98_v21 = vsel %vm13_vm0, %v129_v19, %v128_v18  ;;  %6 = vst.msk [vmem:[#allocation0 - $0xf] ss:$8 sm:$0xc] %vm3_vm1, %v2_v20   ;;  %s144_s26 = smov 16  }
   0xd   :  { %85 = vrot.lane.b32.xlu1 %v84_v17, %s143_s0 }
   0xf   :  { %99 = vrot.lane.b32.xlu0 %v98_v21, %s144_s26 }
  0x75   :  { %v16_v22 = vpop.permute.xlu0 %15  }
  0x76   :  { %18 = vst.msk [vmem:[#allocation0] sm:$0x3] %vm17_vm2, %v16_v22   ;;  %20 = vst.msk [vmem:[#allocation0 + $0x6] sm:$0xc] %vm17_vm2, %v16_v22  }
  0x77   :  { %v44_v23 = vpop.permute.xlu1 %43  }
  0x79   :  { %v30_v24 = vpop.permute.xlu0 %29  }
  0x7a   :  { %32 = vst.msk [vmem:[#allocation0] sm:$0x3] %vm31_vm3, %v30_v24   ;;  %34 = vst.msk [vmem:[#allocation0 + $0x6] sm:$0xc] %vm31_vm3, %v30_v24  }
  0x7b   :  { %46 = vst.msk [vmem:[#allocation0] sm:$0x3] %vm45_vm4, %v44_v23   ;;  %48 = vst.msk [vmem:[#allocation0 + $0x6] sm:$0xc] %vm45_vm4, %v44_v23   ;;  %v58_v25 = vpop.permute.xlu1 %57  }
  0x7c   :  { %60 = vst.msk [vmem:[#allocation0] sm:$0x3] %vm59_vm5, %v58_v25   ;;  %62 = vst.msk [vmem:[#allocation0 + $0x6] sm:$0xc] %vm59_vm5, %v58_v25  }
  0x7d   :  { %v72_v26 = vpop.permute.xlu0 %71  }
  0x7e   :  { %74 = vst.msk [vmem:[#allocation0] sm:$0x3] %vm73_vm6, %v72_v26   ;;  %76 = vst.msk [vmem:[#allocation0 + $0x6] sm:$0xc] %vm73_vm6, %v72_v26  }
  0x7f   :  { %v86_v27 = vpop.permute.xlu1 %85  }
  0x80   :  { %88 = vst.msk [vmem:[#allocation0] sm:$0x3] %vm87_vm7, %v86_v27   ;;  %90 = vst.msk [vmem:[#allocation0 + $0x6] sm:$0xc] %vm87_vm7, %v86_v27  }
  0x81   :  { %v100_v28 = vpop.permute.xlu0 %99  }
  0x82   :  { %102 = vst.msk [vmem:[#allocation0] sm:$0x3] %vm101_vm8, %v100_v28   ;;  %104 = vst.msk [vmem:[#allocation0 + $0x6] sm:$0xc] %vm101_vm8, %v100_v28  }
  0x89   :  { %v108_v29 = vld [vmem:[#allocation0] sm:$0x3]  ;;  %v112_v30 = vld [vmem:[#allocation0 + $0x8] sm:$0x3] }
  0x8a   :  { %110 = vst [vmem:[%s214_s1] sm:$0x3] %v108_v29  ;;  %130 = vst [vmem:[%s214_s1 + $0x2] sm:$0x3] %v112_v30 }

</bundles_post_ra>
